<compile_context>
chip_gen: v5e
topology: v5e:2x2
jax: 0.10.0
libtpu: 0.0.40
codegen_flags: <defaults>
</compile_context>

<pallas_src>
import functools
import math

import jax
import jax.numpy as jnp
from jax.experimental import pallas as pl
from jax.experimental.pallas import tpu as pltpu

_HALF_LOG_2PI = 0.5 * math.log(2.0 * math.pi)


def _per_dim_weighted_mix_kernel(z_ref, means_ref, c0_ref, inv_var_ref, w_ref,
                                 sel_ref, out_ref, *, n_mixes, n_classes):
    z = z_ref[...]                      # (Bt, D) f32
    mu_all = means_ref[...]             # (M, D)
    c0_all = c0_ref[...]                # (M, D)   = -log_std - 0.5*log(2*pi)
    iv_all = inv_var_ref[...]           # (M, D)   = exp(-2*log_std)
    w_all = w_ref[...]                  # (C, M, D) = softmax(weights, axis=1)

    # Pass 1: per-mixture, per-dim Gaussian log-probs with a running max over
    # the mixture axis. Unrolled over M -> M-1 vreg-wise jnp.maximum ops and
    # plain VPU arithmetic; no cross-sublane XLU reductions.
    lps = []
    mx = None
    for m in range(n_mixes):
        mu = mu_all[m][None, :]                       # (1, D) sublane-broadcast
        c0 = c0_all[m][None, :]
        iv = iv_all[m][None, :]
        d = z - mu
        lp = c0 - 0.5 * (d * d) * iv                  # (Bt, D)
        lps.append(lp)
        mx = lp if mx is None else jnp.maximum(mx, lp)

    # Pass 2: single exp per (b, m, d) with the class-independent stabilizer.
    ps = [jnp.exp(lp - mx) for lp in lps]             # M x (Bt, D)   (EUP)

    # Per class: mixture reduction is an M-term VPU multiply-accumulate.
    # Floor before the log so an all-underflow class cannot yield -inf.
    tiny = jnp.float32(jnp.finfo(jnp.float32).tiny)
    cols = [mx]                                       # stabilizer row, shared
    for c in range(n_classes):
        s = ps[0] * w_all[c, 0][None, :]
        for m in range(1, n_mixes):
            s = s + ps[m] * w_all[c, m][None, :]
        cols.append(jnp.log(jnp.maximum(s, tiny)))    # (Bt, D)

    # D-reduction on the MXU: concat [mx, log s_0, ..., log s_{C-1}] along
    # lanes (each piece is exactly 128 lanes) and contract against the
    # precomputed selector sel[(C+1)*D, C]. One matmul, one full-tile store.
    big = jnp.concatenate(cols, axis=-1)              # (Bt, (C+1)*D)
    out_ref[...] = jnp.dot(big, sel_ref[...],
                           preferred_element_type=jnp.float32)  # (Bt, C)


def per_dim_weighted_mix_forward(z, class_means, class_log_stds, weights,
                                 *, block_b=512):
    """Returns (z, lp) with lp of shape (B, n_classes), matching forward()."""
    z = z.astype(jnp.float32)
    B, D = z.shape
    C, M, Dw = weights.shape
    assert Dw == D and class_means.shape == (M, D) and class_log_stds.shape == (M, D)

    # Parameter preprocessing hoisted out of the per-tile path (tiny, once/call).
    log_stds = class_log_stds.astype(jnp.float32)
    means = class_means.astype(jnp.float32)
    c0 = -log_stds - _HALF_LOG_2PI                    # (M, D)
    inv_var = jnp.exp(-2.0 * log_stds)                # (M, D)
    w_soft = jax.nn.softmax(weights.astype(jnp.float32), axis=1)  # (C, M, D)

    # Selector for the MXU D-reduction: first D rows are all-ones (adds the
    # stabilizer's D-sum to every class), then a block one-hot per class.
    sel = jnp.concatenate(
        [jnp.ones((D, C), jnp.float32),
         jnp.repeat(jnp.eye(C, dtype=jnp.float32), D, axis=0)],
        axis=0)                                       # ((C+1)*D, C)

    # Batch tiling: target block_b rows per step, but keep the batch-parallel
    # grid from collapsing (>=2 steps; >=4 steps — 2 per v7x TensorCore —
    # whenever tiles can stay >=128 rows).
    bb = min(block_b, B)
    for min_steps in (4, 2):
        cap = -(-B // min_steps)                      # ceil(B / min_steps)
        if cap >= 128:
            bb = min(bb, cap)
            break
    bb = max(8, ((min(bb, B) + 7) // 8) * 8)
    n_blocks = -(-B // bb)
    B_pad = n_blocks * bb
    z_p = z if B_pad == B else jnp.pad(z, ((0, B_pad - B), (0, 0)))

    kernel = functools.partial(_per_dim_weighted_mix_kernel,
                               n_mixes=M, n_classes=C)

    cost = pl.CostEstimate(
        flops=int(B_pad * M * D * (5 + 2 * C) + 2 * B_pad * (C + 1) * D * C),
        transcendentals=int(B_pad * D * (M + C)),
        bytes_accessed=int(4 * (B_pad * D + 3 * M * D + C * M * D
                                + (C + 1) * D * C + B_pad * C)),
    )

    lp = pl.pallas_call(
        kernel,
        out_shape=jax.ShapeDtypeStruct((B_pad, C), jnp.float32),
        grid=(n_blocks,),
        in_specs=[
            pl.BlockSpec((bb, D), lambda i: (i, 0)),            # z: tiled over batch
            pl.BlockSpec((M, D), lambda i: (0, 0)),             # means: resident
            pl.BlockSpec((M, D), lambda i: (0, 0)),             # c0: resident
            pl.BlockSpec((M, D), lambda i: (0, 0)),             # inv_var: resident
            pl.BlockSpec((C, M, D), lambda i: (0, 0, 0)),       # softmax weights
            pl.BlockSpec(((C + 1) * D, C), lambda i: (0, 0)),   # MXU selector
        ],
        out_specs=pl.BlockSpec((bb, C), lambda i: (i, 0)),      # one store / tile
        compiler_params=pltpu.CompilerParams(
            dimension_semantics=("parallel",),
            vmem_limit_bytes=32 * 1024 * 1024),
        cost_estimate=cost,
    )(z_p, means, c0, inv_var, w_soft, sel)

    return z, lp[:B]                                            # (B, C)


def _reference_forward(z, class_means, class_log_stds, weights):
    # Pure-JAX reference mirroring the PyTorch module, for validation.
    lps = (-class_log_stds[None] - _HALF_LOG_2PI
           - 0.5 * ((z[:, None, :] - class_means[None])
                    * jnp.exp(-class_log_stds[None])) ** 2)
    log_w = jax.nn.log_softmax(weights, axis=1)
    lp_weighted = lps[:, None] + log_w[None]                 # (B, C, M, D)
    lp = jax.scipy.special.logsumexp(lp_weighted, axis=2)    # (B, C, D)
    return jnp.sum(lp, axis=-1)                              # (B, C)


if __name__ == "__main__":
    # Small shapes implied by the module: z is (batch, n_dims).
    # batch=256 exercises the batch-tiled grid (2 tiles of 128 rows).
    batch, n_classes, n_mixes, n_dims = 256, 4, 8, 128
    init_std = 0.1

    key = jax.random.PRNGKey(0)
    kz, km, ks, kw = jax.random.split(key, 4)

    # Deterministic synthetic init (matches __init__ shapes; means/log_stds
    # ~ N(0, 0.1), weights given small noise to exercise the softmax path).
    class_means = init_std * jax.random.normal(km, (n_mixes, n_dims), jnp.float32)
    class_log_stds = init_std * jax.random.normal(ks, (n_mixes, n_dims), jnp.float32)
    weights = 0.05 * jax.random.normal(kw, (n_classes, n_mixes, n_dims), jnp.float32)

    z = jax.random.normal(kz, (batch, n_dims), jnp.float32)

    z_out, lp = per_dim_weighted_mix_forward(z, class_means, class_log_stds, weights)
    jax.block_until_ready(lp)

    lp_ref = _reference_forward(z, class_means, class_log_stds, weights)
    assert lp.shape == (batch, n_classes)
    assert bool(jnp.allclose(lp, lp_ref, rtol=1e-5, atol=2e-3)), "mismatch vs reference"
    assert bool(jnp.allclose(z_out, z)), "z must pass through unchanged"

    print("KERNEL_OK")
</pallas_src>

<mosaic_0001>
module attributes {stable_mosaic.version = 11 : i64} {
  func.func @_per_dim_weighted_mix_kernel(%arg0: i32, %arg1: memref<128x128xf32, #tpu.memory_space<vmem>>, %arg2: memref<8x128xf32, #tpu.memory_space<vmem>>, %arg3: memref<8x128xf32, #tpu.memory_space<vmem>>, %arg4: memref<8x128xf32, #tpu.memory_space<vmem>>, %arg5: memref<4x8x128xf32, #tpu.memory_space<vmem>>, %arg6: memref<640x4xf32, #tpu.memory_space<vmem>>, %arg7: memref<128x4xf32, #tpu.memory_space<vmem>>) attributes {dimension_semantics = [#tpu.dimension_semantics<parallel>], iteration_bounds = array<i64: 2>, scalar_prefetch = 0 : i64, scratch_operands = 0 : i64, tpu.core_type = #tpu.core_type<tc>, window_params = [{transform_indices = @transform_0, window_bounds = array<i64: 128, 128>}, {pipeline_mode = #tpu.pipeline_mode<synchronous>, transform_indices = @transform_1, window_bounds = array<i64: 8, 128>}, {pipeline_mode = #tpu.pipeline_mode<synchronous>, transform_indices = @transform_2, window_bounds = array<i64: 8, 128>}, {pipeline_mode = #tpu.pipeline_mode<synchronous>, transform_indices = @transform_3, window_bounds = array<i64: 8, 128>}, {pipeline_mode = #tpu.pipeline_mode<synchronous>, transform_indices = @transform_4, window_bounds = array<i64: 4, 8, 128>}, {pipeline_mode = #tpu.pipeline_mode<synchronous>, transform_indices = @transform_5, window_bounds = array<i64: 640, 4>}, {transform_indices = @transform_6, window_bounds = array<i64: 128, 4>}]} {
    %c0 = arith.constant 0 : index
    %c0_0 = arith.constant 0 : index
    %0 = vector.load %arg1[%c0, %c0_0] : memref<128x128xf32, #tpu.memory_space<vmem>>, vector<128x128xf32>
    %c0_1 = arith.constant 0 : index
    %c0_2 = arith.constant 0 : index
    %1 = vector.load %arg2[%c0_1, %c0_2] : memref<8x128xf32, #tpu.memory_space<vmem>>, vector<8x128xf32>
    %c0_3 = arith.constant 0 : index
    %c0_4 = arith.constant 0 : index
    %2 = vector.load %arg3[%c0_3, %c0_4] : memref<8x128xf32, #tpu.memory_space<vmem>>, vector<8x128xf32>
    %c0_5 = arith.constant 0 : index
    %c0_6 = arith.constant 0 : index
    %3 = vector.load %arg4[%c0_5, %c0_6] : memref<8x128xf32, #tpu.memory_space<vmem>>, vector<8x128xf32>
    %c0_7 = arith.constant 0 : index
    %c0_8 = arith.constant 0 : index
    %c0_9 = arith.constant 0 : index
    %4 = vector.load %arg5[%c0_7, %c0_8, %c0_9] : memref<4x8x128xf32, #tpu.memory_space<vmem>>, vector<4x8x128xf32>
    %5 = vector.extract_strided_slice %1 {offsets = [0, 0], sizes = [1, 128], strides = [1, 1]} : vector<8x128xf32> to vector<1x128xf32>
    %6 = vector.shape_cast %5 : vector<1x128xf32> to vector<128xf32>
    %7 = vector.shape_cast %6 : vector<128xf32> to vector<1x128xf32>
    %8 = vector.extract_strided_slice %2 {offsets = [0, 0], sizes = [1, 128], strides = [1, 1]} : vector<8x128xf32> to vector<1x128xf32>
    %9 = vector.shape_cast %8 : vector<1x128xf32> to vector<128xf32>
    %10 = vector.shape_cast %9 : vector<128xf32> to vector<1x128xf32>
    %11 = vector.extract_strided_slice %3 {offsets = [0, 0], sizes = [1, 128], strides = [1, 1]} : vector<8x128xf32> to vector<1x128xf32>
    %12 = vector.shape_cast %11 : vector<1x128xf32> to vector<128xf32>
    %13 = vector.shape_cast %12 : vector<128xf32> to vector<1x128xf32>
    %14 = vector.broadcast %7 : vector<1x128xf32> to vector<128x128xf32>
    %15 = arith.subf %0, %14 : vector<128x128xf32>
    %16 = arith.mulf %15, %15 : vector<128x128xf32>
    %cst = arith.constant 5.000000e-01 : f32
    %17 = vector.broadcast %cst : f32 to vector<128x128xf32>
    %18 = arith.mulf %17, %16 : vector<128x128xf32>
    %19 = vector.broadcast %13 : vector<1x128xf32> to vector<128x128xf32>
    %20 = arith.mulf %18, %19 : vector<128x128xf32>
    %21 = vector.broadcast %10 : vector<1x128xf32> to vector<128x128xf32>
    %22 = arith.subf %21, %20 : vector<128x128xf32>
    %23 = vector.extract_strided_slice %1 {offsets = [1, 0], sizes = [1, 128], strides = [1, 1]} : vector<8x128xf32> to vector<1x128xf32>
    %24 = vector.shape_cast %23 : vector<1x128xf32> to vector<128xf32>
    %25 = vector.shape_cast %24 : vector<128xf32> to vector<1x128xf32>
    %26 = vector.extract_strided_slice %2 {offsets = [1, 0], sizes = [1, 128], strides = [1, 1]} : vector<8x128xf32> to vector<1x128xf32>
    %27 = vector.shape_cast %26 : vector<1x128xf32> to vector<128xf32>
    %28 = vector.shape_cast %27 : vector<128xf32> to vector<1x128xf32>
    %29 = vector.extract_strided_slice %3 {offsets = [1, 0], sizes = [1, 128], strides = [1, 1]} : vector<8x128xf32> to vector<1x128xf32>
    %30 = vector.shape_cast %29 : vector<1x128xf32> to vector<128xf32>
    %31 = vector.shape_cast %30 : vector<128xf32> to vector<1x128xf32>
    %32 = vector.broadcast %25 : vector<1x128xf32> to vector<128x128xf32>
    %33 = arith.subf %0, %32 : vector<128x128xf32>
    %34 = arith.mulf %33, %33 : vector<128x128xf32>
    %cst_10 = arith.constant 5.000000e-01 : f32
    %35 = vector.broadcast %cst_10 : f32 to vector<128x128xf32>
    %36 = arith.mulf %35, %34 : vector<128x128xf32>
    %37 = vector.broadcast %31 : vector<1x128xf32> to vector<128x128xf32>
    %38 = arith.mulf %36, %37 : vector<128x128xf32>
    %39 = vector.broadcast %28 : vector<1x128xf32> to vector<128x128xf32>
    %40 = arith.subf %39, %38 : vector<128x128xf32>
    %41 = arith.maximumf %22, %40 : vector<128x128xf32>
    %42 = vector.extract_strided_slice %1 {offsets = [2, 0], sizes = [1, 128], strides = [1, 1]} : vector<8x128xf32> to vector<1x128xf32>
    %43 = vector.shape_cast %42 : vector<1x128xf32> to vector<128xf32>
    %44 = vector.shape_cast %43 : vector<128xf32> to vector<1x128xf32>
    %45 = vector.extract_strided_slice %2 {offsets = [2, 0], sizes = [1, 128], strides = [1, 1]} : vector<8x128xf32> to vector<1x128xf32>
    %46 = vector.shape_cast %45 : vector<1x128xf32> to vector<128xf32>
    %47 = vector.shape_cast %46 : vector<128xf32> to vector<1x128xf32>
    %48 = vector.extract_strided_slice %3 {offsets = [2, 0], sizes = [1, 128], strides = [1, 1]} : vector<8x128xf32> to vector<1x128xf32>
    %49 = vector.shape_cast %48 : vector<1x128xf32> to vector<128xf32>
    %50 = vector.shape_cast %49 : vector<128xf32> to vector<1x128xf32>
    %51 = vector.broadcast %44 : vector<1x128xf32> to vector<128x128xf32>
    %52 = arith.subf %0, %51 : vector<128x128xf32>
    %53 = arith.mulf %52, %52 : vector<128x128xf32>
    %cst_11 = arith.constant 5.000000e-01 : f32
    %54 = vector.broadcast %cst_11 : f32 to vector<128x128xf32>
    %55 = arith.mulf %54, %53 : vector<128x128xf32>
    %56 = vector.broadcast %50 : vector<1x128xf32> to vector<128x128xf32>
    %57 = arith.mulf %55, %56 : vector<128x128xf32>
    %58 = vector.broadcast %47 : vector<1x128xf32> to vector<128x128xf32>
    %59 = arith.subf %58, %57 : vector<128x128xf32>
    %60 = arith.maximumf %41, %59 : vector<128x128xf32>
    %61 = vector.extract_strided_slice %1 {offsets = [3, 0], sizes = [1, 128], strides = [1, 1]} : vector<8x128xf32> to vector<1x128xf32>
    %62 = vector.shape_cast %61 : vector<1x128xf32> to vector<128xf32>
    %63 = vector.shape_cast %62 : vector<128xf32> to vector<1x128xf32>
    %64 = vector.extract_strided_slice %2 {offsets = [3, 0], sizes = [1, 128], strides = [1, 1]} : vector<8x128xf32> to vector<1x128xf32>
    %65 = vector.shape_cast %64 : vector<1x128xf32> to vector<128xf32>
    %66 = vector.shape_cast %65 : vector<128xf32> to vector<1x128xf32>
    %67 = vector.extract_strided_slice %3 {offsets = [3, 0], sizes = [1, 128], strides = [1, 1]} : vector<8x128xf32> to vector<1x128xf32>
    %68 = vector.shape_cast %67 : vector<1x128xf32> to vector<128xf32>
    %69 = vector.shape_cast %68 : vector<128xf32> to vector<1x128xf32>
    %70 = vector.broadcast %63 : vector<1x128xf32> to vector<128x128xf32>
    %71 = arith.subf %0, %70 : vector<128x128xf32>
    %72 = arith.mulf %71, %71 : vector<128x128xf32>
    %cst_12 = arith.constant 5.000000e-01 : f32
    %73 = vector.broadcast %cst_12 : f32 to vector<128x128xf32>
    %74 = arith.mulf %73, %72 : vector<128x128xf32>
    %75 = vector.broadcast %69 : vector<1x128xf32> to vector<128x128xf32>
    %76 = arith.mulf %74, %75 : vector<128x128xf32>
    %77 = vector.broadcast %66 : vector<1x128xf32> to vector<128x128xf32>
    %78 = arith.subf %77, %76 : vector<128x128xf32>
    %79 = arith.maximumf %60, %78 : vector<128x128xf32>
    %80 = vector.extract_strided_slice %1 {offsets = [4, 0], sizes = [1, 128], strides = [1, 1]} : vector<8x128xf32> to vector<1x128xf32>
    %81 = vector.shape_cast %80 : vector<1x128xf32> to vector<128xf32>
    %82 = vector.shape_cast %81 : vector<128xf32> to vector<1x128xf32>
    %83 = vector.extract_strided_slice %2 {offsets = [4, 0], sizes = [1, 128], strides = [1, 1]} : vector<8x128xf32> to vector<1x128xf32>
    %84 = vector.shape_cast %83 : vector<1x128xf32> to vector<128xf32>
    %85 = vector.shape_cast %84 : vector<128xf32> to vector<1x128xf32>
    %86 = vector.extract_strided_slice %3 {offsets = [4, 0], sizes = [1, 128], strides = [1, 1]} : vector<8x128xf32> to vector<1x128xf32>
    %87 = vector.shape_cast %86 : vector<1x128xf32> to vector<128xf32>
    %88 = vector.shape_cast %87 : vector<128xf32> to vector<1x128xf32>
    %89 = vector.broadcast %82 : vector<1x128xf32> to vector<128x128xf32>
    %90 = arith.subf %0, %89 : vector<128x128xf32>
    %91 = arith.mulf %90, %90 : vector<128x128xf32>
    %cst_13 = arith.constant 5.000000e-01 : f32
    %92 = vector.broadcast %cst_13 : f32 to vector<128x128xf32>
    %93 = arith.mulf %92, %91 : vector<128x128xf32>
    %94 = vector.broadcast %88 : vector<1x128xf32> to vector<128x128xf32>
    %95 = arith.mulf %93, %94 : vector<128x128xf32>
    %96 = vector.broadcast %85 : vector<1x128xf32> to vector<128x128xf32>
    %97 = arith.subf %96, %95 : vector<128x128xf32>
    %98 = arith.maximumf %79, %97 : vector<128x128xf32>
    %99 = vector.extract_strided_slice %1 {offsets = [5, 0], sizes = [1, 128], strides = [1, 1]} : vector<8x128xf32> to vector<1x128xf32>
    %100 = vector.shape_cast %99 : vector<1x128xf32> to vector<128xf32>
    %101 = vector.shape_cast %100 : vector<128xf32> to vector<1x128xf32>
    %102 = vector.extract_strided_slice %2 {offsets = [5, 0], sizes = [1, 128], strides = [1, 1]} : vector<8x128xf32> to vector<1x128xf32>
    %103 = vector.shape_cast %102 : vector<1x128xf32> to vector<128xf32>
    %104 = vector.shape_cast %103 : vector<128xf32> to vector<1x128xf32>
    %105 = vector.extract_strided_slice %3 {offsets = [5, 0], sizes = [1, 128], strides = [1, 1]} : vector<8x128xf32> to vector<1x128xf32>
    %106 = vector.shape_cast %105 : vector<1x128xf32> to vector<128xf32>
    %107 = vector.shape_cast %106 : vector<128xf32> to vector<1x128xf32>
    %108 = vector.broadcast %101 : vector<1x128xf32> to vector<128x128xf32>
    %109 = arith.subf %0, %108 : vector<128x128xf32>
    %110 = arith.mulf %109, %109 : vector<128x128xf32>
    %cst_14 = arith.constant 5.000000e-01 : f32
    %111 = vector.broadcast %cst_14 : f32 to vector<128x128xf32>
    %112 = arith.mulf %111, %110 : vector<128x128xf32>
    %113 = vector.broadcast %107 : vector<1x128xf32> to vector<128x128xf32>
    %114 = arith.mulf %112, %113 : vector<128x128xf32>
    %115 = vector.broadcast %104 : vector<1x128xf32> to vector<128x128xf32>
    %116 = arith.subf %115, %114 : vector<128x128xf32>
    %117 = arith.maximumf %98, %116 : vector<128x128xf32>
    %118 = vector.extract_strided_slice %1 {offsets = [6, 0], sizes = [1, 128], strides = [1, 1]} : vector<8x128xf32> to vector<1x128xf32>
    %119 = vector.shape_cast %118 : vector<1x128xf32> to vector<128xf32>
    %120 = vector.shape_cast %119 : vector<128xf32> to vector<1x128xf32>
    %121 = vector.extract_strided_slice %2 {offsets = [6, 0], sizes = [1, 128], strides = [1, 1]} : vector<8x128xf32> to vector<1x128xf32>
    %122 = vector.shape_cast %121 : vector<1x128xf32> to vector<128xf32>
    %123 = vector.shape_cast %122 : vector<128xf32> to vector<1x128xf32>
    %124 = vector.extract_strided_slice %3 {offsets = [6, 0], sizes = [1, 128], strides = [1, 1]} : vector<8x128xf32> to vector<1x128xf32>
    %125 = vector.shape_cast %124 : vector<1x128xf32> to vector<128xf32>
    %126 = vector.shape_cast %125 : vector<128xf32> to vector<1x128xf32>
    %127 = vector.broadcast %120 : vector<1x128xf32> to vector<128x128xf32>
    %128 = arith.subf %0, %127 : vector<128x128xf32>
    %129 = arith.mulf %128, %128 : vector<128x128xf32>
    %cst_15 = arith.constant 5.000000e-01 : f32
    %130 = vector.broadcast %cst_15 : f32 to vector<128x128xf32>
    %131 = arith.mulf %130, %129 : vector<128x128xf32>
    %132 = vector.broadcast %126 : vector<1x128xf32> to vector<128x128xf32>
    %133 = arith.mulf %131, %132 : vector<128x128xf32>
    %134 = vector.broadcast %123 : vector<1x128xf32> to vector<128x128xf32>
    %135 = arith.subf %134, %133 : vector<128x128xf32>
    %136 = arith.maximumf %117, %135 : vector<128x128xf32>
    %137 = vector.extract_strided_slice %1 {offsets = [7, 0], sizes = [1, 128], strides = [1, 1]} : vector<8x128xf32> to vector<1x128xf32>
    %138 = vector.shape_cast %137 : vector<1x128xf32> to vector<128xf32>
    %139 = vector.shape_cast %138 : vector<128xf32> to vector<1x128xf32>
    %140 = vector.extract_strided_slice %2 {offsets = [7, 0], sizes = [1, 128], strides = [1, 1]} : vector<8x128xf32> to vector<1x128xf32>
    %141 = vector.shape_cast %140 : vector<1x128xf32> to vector<128xf32>
    %142 = vector.shape_cast %141 : vector<128xf32> to vector<1x128xf32>
    %143 = vector.extract_strided_slice %3 {offsets = [7, 0], sizes = [1, 128], strides = [1, 1]} : vector<8x128xf32> to vector<1x128xf32>
    %144 = vector.shape_cast %143 : vector<1x128xf32> to vector<128xf32>
    %145 = vector.shape_cast %144 : vector<128xf32> to vector<1x128xf32>
    %146 = vector.broadcast %139 : vector<1x128xf32> to vector<128x128xf32>
    %147 = arith.subf %0, %146 : vector<128x128xf32>
    %148 = arith.mulf %147, %147 : vector<128x128xf32>
    %cst_16 = arith.constant 5.000000e-01 : f32
    %149 = vector.broadcast %cst_16 : f32 to vector<128x128xf32>
    %150 = arith.mulf %149, %148 : vector<128x128xf32>
    %151 = vector.broadcast %145 : vector<1x128xf32> to vector<128x128xf32>
    %152 = arith.mulf %150, %151 : vector<128x128xf32>
    %153 = vector.broadcast %142 : vector<1x128xf32> to vector<128x128xf32>
    %154 = arith.subf %153, %152 : vector<128x128xf32>
    %155 = arith.maximumf %136, %154 : vector<128x128xf32>
    %156 = arith.subf %22, %155 : vector<128x128xf32>
    %157 = math.exp %156 : vector<128x128xf32>
    %158 = arith.subf %40, %155 : vector<128x128xf32>
    %159 = math.exp %158 : vector<128x128xf32>
    %160 = arith.subf %59, %155 : vector<128x128xf32>
    %161 = math.exp %160 : vector<128x128xf32>
    %162 = arith.subf %78, %155 : vector<128x128xf32>
    %163 = math.exp %162 : vector<128x128xf32>
    %164 = arith.subf %97, %155 : vector<128x128xf32>
    %165 = math.exp %164 : vector<128x128xf32>
    %166 = arith.subf %116, %155 : vector<128x128xf32>
    %167 = math.exp %166 : vector<128x128xf32>
    %168 = arith.subf %135, %155 : vector<128x128xf32>
    %169 = math.exp %168 : vector<128x128xf32>
    %170 = arith.subf %154, %155 : vector<128x128xf32>
    %171 = math.exp %170 : vector<128x128xf32>
    %172 = vector.extract_strided_slice %4 {offsets = [0, 0, 0], sizes = [1, 1, 128], strides = [1, 1, 1]} : vector<4x8x128xf32> to vector<1x1x128xf32>
    %173 = vector.shape_cast %172 : vector<1x1x128xf32> to vector<128xf32>
    %174 = vector.shape_cast %173 : vector<128xf32> to vector<1x128xf32>
    %175 = vector.broadcast %174 : vector<1x128xf32> to vector<128x128xf32>
    %176 = arith.mulf %157, %175 : vector<128x128xf32>
    %177 = vector.extract_strided_slice %4 {offsets = [0, 1, 0], sizes = [1, 1, 128], strides = [1, 1, 1]} : vector<4x8x128xf32> to vector<1x1x128xf32>
    %178 = vector.shape_cast %177 : vector<1x1x128xf32> to vector<128xf32>
    %179 = vector.shape_cast %178 : vector<128xf32> to vector<1x128xf32>
    %180 = vector.broadcast %179 : vector<1x128xf32> to vector<128x128xf32>
    %181 = arith.mulf %159, %180 : vector<128x128xf32>
    %182 = arith.addf %176, %181 : vector<128x128xf32>
    %183 = vector.extract_strided_slice %4 {offsets = [0, 2, 0], sizes = [1, 1, 128], strides = [1, 1, 1]} : vector<4x8x128xf32> to vector<1x1x128xf32>
    %184 = vector.shape_cast %183 : vector<1x1x128xf32> to vector<128xf32>
    %185 = vector.shape_cast %184 : vector<128xf32> to vector<1x128xf32>
    %186 = vector.broadcast %185 : vector<1x128xf32> to vector<128x128xf32>
    %187 = arith.mulf %161, %186 : vector<128x128xf32>
    %188 = arith.addf %182, %187 : vector<128x128xf32>
    %189 = vector.extract_strided_slice %4 {offsets = [0, 3, 0], sizes = [1, 1, 128], strides = [1, 1, 1]} : vector<4x8x128xf32> to vector<1x1x128xf32>
    %190 = vector.shape_cast %189 : vector<1x1x128xf32> to vector<128xf32>
    %191 = vector.shape_cast %190 : vector<128xf32> to vector<1x128xf32>
    %192 = vector.broadcast %191 : vector<1x128xf32> to vector<128x128xf32>
    %193 = arith.mulf %163, %192 : vector<128x128xf32>
    %194 = arith.addf %188, %193 : vector<128x128xf32>
    %195 = vector.extract_strided_slice %4 {offsets = [0, 4, 0], sizes = [1, 1, 128], strides = [1, 1, 1]} : vector<4x8x128xf32> to vector<1x1x128xf32>
    %196 = vector.shape_cast %195 : vector<1x1x128xf32> to vector<128xf32>
    %197 = vector.shape_cast %196 : vector<128xf32> to vector<1x128xf32>
    %198 = vector.broadcast %197 : vector<1x128xf32> to vector<128x128xf32>
    %199 = arith.mulf %165, %198 : vector<128x128xf32>
    %200 = arith.addf %194, %199 : vector<128x128xf32>
    %201 = vector.extract_strided_slice %4 {offsets = [0, 5, 0], sizes = [1, 1, 128], strides = [1, 1, 1]} : vector<4x8x128xf32> to vector<1x1x128xf32>
    %202 = vector.shape_cast %201 : vector<1x1x128xf32> to vector<128xf32>
    %203 = vector.shape_cast %202 : vector<128xf32> to vector<1x128xf32>
    %204 = vector.broadcast %203 : vector<1x128xf32> to vector<128x128xf32>
    %205 = arith.mulf %167, %204 : vector<128x128xf32>
    %206 = arith.addf %200, %205 : vector<128x128xf32>
    %207 = vector.extract_strided_slice %4 {offsets = [0, 6, 0], sizes = [1, 1, 128], strides = [1, 1, 1]} : vector<4x8x128xf32> to vector<1x1x128xf32>
    %208 = vector.shape_cast %207 : vector<1x1x128xf32> to vector<128xf32>
    %209 = vector.shape_cast %208 : vector<128xf32> to vector<1x128xf32>
    %210 = vector.broadcast %209 : vector<1x128xf32> to vector<128x128xf32>
    %211 = arith.mulf %169, %210 : vector<128x128xf32>
    %212 = arith.addf %206, %211 : vector<128x128xf32>
    %213 = vector.extract_strided_slice %4 {offsets = [0, 7, 0], sizes = [1, 1, 128], strides = [1, 1, 1]} : vector<4x8x128xf32> to vector<1x1x128xf32>
    %214 = vector.shape_cast %213 : vector<1x1x128xf32> to vector<128xf32>
    %215 = vector.shape_cast %214 : vector<128xf32> to vector<1x128xf32>
    %216 = vector.broadcast %215 : vector<1x128xf32> to vector<128x128xf32>
    %217 = arith.mulf %171, %216 : vector<128x128xf32>
    %218 = arith.addf %212, %217 : vector<128x128xf32>
    %cst_17 = arith.constant 1.17549435E-38 : f32
    %219 = vector.broadcast %cst_17 : f32 to vector<128x128xf32>
    %220 = arith.maximumf %218, %219 : vector<128x128xf32>
    %221 = math.log %220 : vector<128x128xf32>
    %222 = vector.extract_strided_slice %4 {offsets = [1, 0, 0], sizes = [1, 1, 128], strides = [1, 1, 1]} : vector<4x8x128xf32> to vector<1x1x128xf32>
    %223 = vector.shape_cast %222 : vector<1x1x128xf32> to vector<128xf32>
    %224 = vector.shape_cast %223 : vector<128xf32> to vector<1x128xf32>
    %225 = vector.broadcast %224 : vector<1x128xf32> to vector<128x128xf32>
    %226 = arith.mulf %157, %225 : vector<128x128xf32>
    %227 = vector.extract_strided_slice %4 {offsets = [1, 1, 0], sizes = [1, 1, 128], strides = [1, 1, 1]} : vector<4x8x128xf32> to vector<1x1x128xf32>
    %228 = vector.shape_cast %227 : vector<1x1x128xf32> to vector<128xf32>
    %229 = vector.shape_cast %228 : vector<128xf32> to vector<1x128xf32>
    %230 = vector.broadcast %229 : vector<1x128xf32> to vector<128x128xf32>
    %231 = arith.mulf %159, %230 : vector<128x128xf32>
    %232 = arith.addf %226, %231 : vector<128x128xf32>
    %233 = vector.extract_strided_slice %4 {offsets = [1, 2, 0], sizes = [1, 1, 128], strides = [1, 1, 1]} : vector<4x8x128xf32> to vector<1x1x128xf32>
    %234 = vector.shape_cast %233 : vector<1x1x128xf32> to vector<128xf32>
    %235 = vector.shape_cast %234 : vector<128xf32> to vector<1x128xf32>
    %236 = vector.broadcast %235 : vector<1x128xf32> to vector<128x128xf32>
    %237 = arith.mulf %161, %236 : vector<128x128xf32>
    %238 = arith.addf %232, %237 : vector<128x128xf32>
    %239 = vector.extract_strided_slice %4 {offsets = [1, 3, 0], sizes = [1, 1, 128], strides = [1, 1, 1]} : vector<4x8x128xf32> to vector<1x1x128xf32>
    %240 = vector.shape_cast %239 : vector<1x1x128xf32> to vector<128xf32>
    %241 = vector.shape_cast %240 : vector<128xf32> to vector<1x128xf32>
    %242 = vector.broadcast %241 : vector<1x128xf32> to vector<128x128xf32>
    %243 = arith.mulf %163, %242 : vector<128x128xf32>
    %244 = arith.addf %238, %243 : vector<128x128xf32>
    %245 = vector.extract_strided_slice %4 {offsets = [1, 4, 0], sizes = [1, 1, 128], strides = [1, 1, 1]} : vector<4x8x128xf32> to vector<1x1x128xf32>
    %246 = vector.shape_cast %245 : vector<1x1x128xf32> to vector<128xf32>
    %247 = vector.shape_cast %246 : vector<128xf32> to vector<1x128xf32>
    %248 = vector.broadcast %247 : vector<1x128xf32> to vector<128x128xf32>
    %249 = arith.mulf %165, %248 : vector<128x128xf32>
    %250 = arith.addf %244, %249 : vector<128x128xf32>
    %251 = vector.extract_strided_slice %4 {offsets = [1, 5, 0], sizes = [1, 1, 128], strides = [1, 1, 1]} : vector<4x8x128xf32> to vector<1x1x128xf32>
    %252 = vector.shape_cast %251 : vector<1x1x128xf32> to vector<128xf32>
    %253 = vector.shape_cast %252 : vector<128xf32> to vector<1x128xf32>
    %254 = vector.broadcast %253 : vector<1x128xf32> to vector<128x128xf32>
    %255 = arith.mulf %167, %254 : vector<128x128xf32>
    %256 = arith.addf %250, %255 : vector<128x128xf32>
    %257 = vector.extract_strided_slice %4 {offsets = [1, 6, 0], sizes = [1, 1, 128], strides = [1, 1, 1]} : vector<4x8x128xf32> to vector<1x1x128xf32>
    %258 = vector.shape_cast %257 : vector<1x1x128xf32> to vector<128xf32>
    %259 = vector.shape_cast %258 : vector<128xf32> to vector<1x128xf32>
    %260 = vector.broadcast %259 : vector<1x128xf32> to vector<128x128xf32>
    %261 = arith.mulf %169, %260 : vector<128x128xf32>
    %262 = arith.addf %256, %261 : vector<128x128xf32>
    %263 = vector.extract_strided_slice %4 {offsets = [1, 7, 0], sizes = [1, 1, 128], strides = [1, 1, 1]} : vector<4x8x128xf32> to vector<1x1x128xf32>
    %264 = vector.shape_cast %263 : vector<1x1x128xf32> to vector<128xf32>
    %265 = vector.shape_cast %264 : vector<128xf32> to vector<1x128xf32>
    %266 = vector.broadcast %265 : vector<1x128xf32> to vector<128x128xf32>
    %267 = arith.mulf %171, %266 : vector<128x128xf32>
    %268 = arith.addf %262, %267 : vector<128x128xf32>
    %cst_18 = arith.constant 1.17549435E-38 : f32
    %269 = vector.broadcast %cst_18 : f32 to vector<128x128xf32>
    %270 = arith.maximumf %268, %269 : vector<128x128xf32>
    %271 = math.log %270 : vector<128x128xf32>
    %272 = vector.extract_strided_slice %4 {offsets = [2, 0, 0], sizes = [1, 1, 128], strides = [1, 1, 1]} : vector<4x8x128xf32> to vector<1x1x128xf32>
    %273 = vector.shape_cast %272 : vector<1x1x128xf32> to vector<128xf32>
    %274 = vector.shape_cast %273 : vector<128xf32> to vector<1x128xf32>
    %275 = vector.broadcast %274 : vector<1x128xf32> to vector<128x128xf32>
    %276 = arith.mulf %157, %275 : vector<128x128xf32>
    %277 = vector.extract_strided_slice %4 {offsets = [2, 1, 0], sizes = [1, 1, 128], strides = [1, 1, 1]} : vector<4x8x128xf32> to vector<1x1x128xf32>
    %278 = vector.shape_cast %277 : vector<1x1x128xf32> to vector<128xf32>
    %279 = vector.shape_cast %278 : vector<128xf32> to vector<1x128xf32>
    %280 = vector.broadcast %279 : vector<1x128xf32> to vector<128x128xf32>
    %281 = arith.mulf %159, %280 : vector<128x128xf32>
    %282 = arith.addf %276, %281 : vector<128x128xf32>
    %283 = vector.extract_strided_slice %4 {offsets = [2, 2, 0], sizes = [1, 1, 128], strides = [1, 1, 1]} : vector<4x8x128xf32> to vector<1x1x128xf32>
    %284 = vector.shape_cast %283 : vector<1x1x128xf32> to vector<128xf32>
    %285 = vector.shape_cast %284 : vector<128xf32> to vector<1x128xf32>
    %286 = vector.broadcast %285 : vector<1x128xf32> to vector<128x128xf32>
    %287 = arith.mulf %161, %286 : vector<128x128xf32>
    %288 = arith.addf %282, %287 : vector<128x128xf32>
    %289 = vector.extract_strided_slice %4 {offsets = [2, 3, 0], sizes = [1, 1, 128], strides = [1, 1, 1]} : vector<4x8x128xf32> to vector<1x1x128xf32>
    %290 = vector.shape_cast %289 : vector<1x1x128xf32> to vector<128xf32>
    %291 = vector.shape_cast %290 : vector<128xf32> to vector<1x128xf32>
    %292 = vector.broadcast %291 : vector<1x128xf32> to vector<128x128xf32>
    %293 = arith.mulf %163, %292 : vector<128x128xf32>
    %294 = arith.addf %288, %293 : vector<128x128xf32>
    %295 = vector.extract_strided_slice %4 {offsets = [2, 4, 0], sizes = [1, 1, 128], strides = [1, 1, 1]} : vector<4x8x128xf32> to vector<1x1x128xf32>
    %296 = vector.shape_cast %295 : vector<1x1x128xf32> to vector<128xf32>
    %297 = vector.shape_cast %296 : vector<128xf32> to vector<1x128xf32>
    %298 = vector.broadcast %297 : vector<1x128xf32> to vector<128x128xf32>
    %299 = arith.mulf %165, %298 : vector<128x128xf32>
    %300 = arith.addf %294, %299 : vector<128x128xf32>
    %301 = vector.extract_strided_slice %4 {offsets = [2, 5, 0], sizes = [1, 1, 128], strides = [1, 1, 1]} : vector<4x8x128xf32> to vector<1x1x128xf32>
    %302 = vector.shape_cast %301 : vector<1x1x128xf32> to vector<128xf32>
    %303 = vector.shape_cast %302 : vector<128xf32> to vector<1x128xf32>
    %304 = vector.broadcast %303 : vector<1x128xf32> to vector<128x128xf32>
    %305 = arith.mulf %167, %304 : vector<128x128xf32>
    %306 = arith.addf %300, %305 : vector<128x128xf32>
    %307 = vector.extract_strided_slice %4 {offsets = [2, 6, 0], sizes = [1, 1, 128], strides = [1, 1, 1]} : vector<4x8x128xf32> to vector<1x1x128xf32>
    %308 = vector.shape_cast %307 : vector<1x1x128xf32> to vector<128xf32>
    %309 = vector.shape_cast %308 : vector<128xf32> to vector<1x128xf32>
    %310 = vector.broadcast %309 : vector<1x128xf32> to vector<128x128xf32>
    %311 = arith.mulf %169, %310 : vector<128x128xf32>
    %312 = arith.addf %306, %311 : vector<128x128xf32>
    %313 = vector.extract_strided_slice %4 {offsets = [2, 7, 0], sizes = [1, 1, 128], strides = [1, 1, 1]} : vector<4x8x128xf32> to vector<1x1x128xf32>
    %314 = vector.shape_cast %313 : vector<1x1x128xf32> to vector<128xf32>
    %315 = vector.shape_cast %314 : vector<128xf32> to vector<1x128xf32>
    %316 = vector.broadcast %315 : vector<1x128xf32> to vector<128x128xf32>
    %317 = arith.mulf %171, %316 : vector<128x128xf32>
    %318 = arith.addf %312, %317 : vector<128x128xf32>
    %cst_19 = arith.constant 1.17549435E-38 : f32
    %319 = vector.broadcast %cst_19 : f32 to vector<128x128xf32>
    %320 = arith.maximumf %318, %319 : vector<128x128xf32>
    %321 = math.log %320 : vector<128x128xf32>
    %322 = vector.extract_strided_slice %4 {offsets = [3, 0, 0], sizes = [1, 1, 128], strides = [1, 1, 1]} : vector<4x8x128xf32> to vector<1x1x128xf32>
    %323 = vector.shape_cast %322 : vector<1x1x128xf32> to vector<128xf32>
    %324 = vector.shape_cast %323 : vector<128xf32> to vector<1x128xf32>
    %325 = vector.broadcast %324 : vector<1x128xf32> to vector<128x128xf32>
    %326 = arith.mulf %157, %325 : vector<128x128xf32>
    %327 = vector.extract_strided_slice %4 {offsets = [3, 1, 0], sizes = [1, 1, 128], strides = [1, 1, 1]} : vector<4x8x128xf32> to vector<1x1x128xf32>
    %328 = vector.shape_cast %327 : vector<1x1x128xf32> to vector<128xf32>
    %329 = vector.shape_cast %328 : vector<128xf32> to vector<1x128xf32>
    %330 = vector.broadcast %329 : vector<1x128xf32> to vector<128x128xf32>
    %331 = arith.mulf %159, %330 : vector<128x128xf32>
    %332 = arith.addf %326, %331 : vector<128x128xf32>
    %333 = vector.extract_strided_slice %4 {offsets = [3, 2, 0], sizes = [1, 1, 128], strides = [1, 1, 1]} : vector<4x8x128xf32> to vector<1x1x128xf32>
    %334 = vector.shape_cast %333 : vector<1x1x128xf32> to vector<128xf32>
    %335 = vector.shape_cast %334 : vector<128xf32> to vector<1x128xf32>
    %336 = vector.broadcast %335 : vector<1x128xf32> to vector<128x128xf32>
    %337 = arith.mulf %161, %336 : vector<128x128xf32>
    %338 = arith.addf %332, %337 : vector<128x128xf32>
    %339 = vector.extract_strided_slice %4 {offsets = [3, 3, 0], sizes = [1, 1, 128], strides = [1, 1, 1]} : vector<4x8x128xf32> to vector<1x1x128xf32>
    %340 = vector.shape_cast %339 : vector<1x1x128xf32> to vector<128xf32>
    %341 = vector.shape_cast %340 : vector<128xf32> to vector<1x128xf32>
    %342 = vector.broadcast %341 : vector<1x128xf32> to vector<128x128xf32>
    %343 = arith.mulf %163, %342 : vector<128x128xf32>
    %344 = arith.addf %338, %343 : vector<128x128xf32>
    %345 = vector.extract_strided_slice %4 {offsets = [3, 4, 0], sizes = [1, 1, 128], strides = [1, 1, 1]} : vector<4x8x128xf32> to vector<1x1x128xf32>
    %346 = vector.shape_cast %345 : vector<1x1x128xf32> to vector<128xf32>
    %347 = vector.shape_cast %346 : vector<128xf32> to vector<1x128xf32>
    %348 = vector.broadcast %347 : vector<1x128xf32> to vector<128x128xf32>
    %349 = arith.mulf %165, %348 : vector<128x128xf32>
    %350 = arith.addf %344, %349 : vector<128x128xf32>
    %351 = vector.extract_strided_slice %4 {offsets = [3, 5, 0], sizes = [1, 1, 128], strides = [1, 1, 1]} : vector<4x8x128xf32> to vector<1x1x128xf32>
    %352 = vector.shape_cast %351 : vector<1x1x128xf32> to vector<128xf32>
    %353 = vector.shape_cast %352 : vector<128xf32> to vector<1x128xf32>
    %354 = vector.broadcast %353 : vector<1x128xf32> to vector<128x128xf32>
    %355 = arith.mulf %167, %354 : vector<128x128xf32>
    %356 = arith.addf %350, %355 : vector<128x128xf32>
    %357 = vector.extract_strided_slice %4 {offsets = [3, 6, 0], sizes = [1, 1, 128], strides = [1, 1, 1]} : vector<4x8x128xf32> to vector<1x1x128xf32>
    %358 = vector.shape_cast %357 : vector<1x1x128xf32> to vector<128xf32>
    %359 = vector.shape_cast %358 : vector<128xf32> to vector<1x128xf32>
    %360 = vector.broadcast %359 : vector<1x128xf32> to vector<128x128xf32>
    %361 = arith.mulf %169, %360 : vector<128x128xf32>
    %362 = arith.addf %356, %361 : vector<128x128xf32>
    %363 = vector.extract_strided_slice %4 {offsets = [3, 7, 0], sizes = [1, 1, 128], strides = [1, 1, 1]} : vector<4x8x128xf32> to vector<1x1x128xf32>
    %364 = vector.shape_cast %363 : vector<1x1x128xf32> to vector<128xf32>
    %365 = vector.shape_cast %364 : vector<128xf32> to vector<1x128xf32>
    %366 = vector.broadcast %365 : vector<1x128xf32> to vector<128x128xf32>
    %367 = arith.mulf %171, %366 : vector<128x128xf32>
    %368 = arith.addf %362, %367 : vector<128x128xf32>
    %cst_20 = arith.constant 1.17549435E-38 : f32
    %369 = vector.broadcast %cst_20 : f32 to vector<128x128xf32>
    %370 = arith.maximumf %368, %369 : vector<128x128xf32>
    %371 = math.log %370 : vector<128x128xf32>
    %372 = tpu.concatenate %155, %221, %271, %321, %371 in 1 : vector<128x128xf32>, vector<128x128xf32>, vector<128x128xf32>, vector<128x128xf32>, vector<128x128xf32> -> vector<128x640xf32>
    %c0_21 = arith.constant 0 : index
    %c0_22 = arith.constant 0 : index
    %373 = vector.load %arg6[%c0_21, %c0_22] : memref<640x4xf32, #tpu.memory_space<vmem>>, vector<640x4xf32>
    %cst_23 = arith.constant dense<0.000000e+00> : vector<128x4xf32>
    %374 = tpu.matmul %372, %373, %cst_23 {dimension_numbers = #tpu.dot_dimension_numbers<[1], [0], [0], [1], [0, 0, 1, 1], [], []>} : vector<128x640xf32>, vector<640x4xf32>, vector<128x4xf32> -> vector<128x4xf32>
    %c0_24 = arith.constant 0 : index
    %c0_25 = arith.constant 0 : index
    %375 = vector.load %arg7[%c0_24, %c0_25] : memref<128x4xf32, #tpu.memory_space<vmem>>, vector<128x4xf32>
    tpu.vector_store %arg7[%c0_24, %c0_25], %374 {strides = array<i32>} : memref<128x4xf32, #tpu.memory_space<vmem>>, vector<128x4xf32>,
    return
  }
  func.func @transform_0(%arg0: i32) -> (i32, i32) {
    %c0_i32 = arith.constant 0 : i32
    %c0_i32_0 = arith.constant 0 : i32
    return %arg0, %c0_i32 : i32, i32
  }
  func.func @transform_1(%arg0: i32) -> (i32, i32) {
    %c0_i32 = arith.constant 0 : i32
    %c0_i32_0 = arith.constant 0 : i32
    %c0_i32_1 = arith.constant 0 : i32
    return %c0_i32, %c0_i32_0 : i32, i32
  }
  func.func @transform_2(%arg0: i32) -> (i32, i32) {
    %c0_i32 = arith.constant 0 : i32
    %c0_i32_0 = arith.constant 0 : i32
    %c0_i32_1 = arith.constant 0 : i32
    return %c0_i32, %c0_i32_0 : i32, i32
  }
  func.func @transform_3(%arg0: i32) -> (i32, i32) {
    %c0_i32 = arith.constant 0 : i32
    %c0_i32_0 = arith.constant 0 : i32
    %c0_i32_1 = arith.constant 0 : i32
    return %c0_i32, %c0_i32_0 : i32, i32
  }
  func.func @transform_4(%arg0: i32) -> (i32, i32, i32) {
    %c0_i32 = arith.constant 0 : i32
    %c0_i32_0 = arith.constant 0 : i32
    %c0_i32_1 = arith.constant 0 : i32
    %c0_i32_2 = arith.constant 0 : i32
    return %c0_i32, %c0_i32_0, %c0_i32_1 : i32, i32, i32
  }
  func.func @transform_5(%arg0: i32) -> (i32, i32) {
    %c0_i32 = arith.constant 0 : i32
    %c0_i32_0 = arith.constant 0 : i32
    %c0_i32_1 = arith.constant 0 : i32
    return %c0_i32, %c0_i32_0 : i32, i32
  }
  func.func @transform_6(%arg0: i32) -> (i32, i32) {
    %c0_i32 = arith.constant 0 : i32
    %c0_i32_0 = arith.constant 0 : i32
    return %arg0, %c0_i32 : i32, i32
  }
}

</mosaic_0001>

<bundles_post_ra>
// kernel: tpu_custom_call.1
= control target key start
LH: loop header
LB: loop body
LE: loop exit
PB: predicated region body
PF: predicated region fallthrough
CT: control target
= control target key end

     0   :  { %s3594_s21 = smov 0   ;;  %s6603_s0 = inlined_call_operand.vmem [shape: f32[256,128], index: 0, kind: input, shape index: {}]   ;;  %s6604_s1 = inlined_call_operand.vmem [shape: f32[8,128], index: 1, kind: input, shape index: {}]   ;;  %s6605_s2 = inlined_call_operand.vmem [shape: f32[8,128], index: 2, kind: input, shape index: {}]   ;;  %s6606_s3 = inlined_call_operand.vmem [shape: f32[8,128], index: 3, kind: input, shape index: {}]   ;;  %s6607_s4 = inlined_call_operand.vmem [shape: f32[4,8,128], index: 4, kind: input, shape index: {}]   ;;  %s6608_s5 = inlined_call_operand.vmem [shape: f32[640,4], index: 5, kind: input, shape index: {}]   ;;  %s6609_s6 = inlined_call_operand.vmem [shape: f32[256,4], index: 6, kind: output, shape index: {}]  }
   0x1 LB: > { %s3100_s22 = sadd.s32 4294967295, %s3557_s21   ;;  %p3104_p0 = scmp.ge.s32.totalorder %s3557_s21, 1  ;;  %s3557_s21 = sphi %s3594_s21, %s16_s21  }
   0x2   : > { %p213_p1 = scmp.lt.s32.totalorder %s3557_s21, 3 }
   0x4   : > { %p214_p2 = pnand %p3104_p0, %p213_p1 }
   0x6   : > { %217 = sbr.rel (%p214_p2) target bundleno = 758 (0x2f6), region = 44 }
   0xb   : > { %v2637_v0 = vld [vmem:[%s6608_s5 + $0x78] sm:$0xff]  ;;  %v2636_v1 = vld [vmem:[%s6608_s5 + $0x70] sm:$0xff]  ;;  %s3105_s27 = sshll.u32 %s3100_s22, 4  ;;  %v2635_v2 = vld [vmem:[%s6608_s5 + $0x68] sm:$0xff]  ;;  %vm3027_vm0 = vcmask 31744  }
   0xc   : > { %3111 = vmatpush.msra.mxu1 %v2637_v0  ;;  %3112 = vmatpush.msra.mxu2 %v2637_v0  ;;  %p244_p3 = scmp.lt.s32.totalorder %s3105_s27, 31  ;;  %v2634_v3 = vld [vmem:[%s6608_s5 + $0x60] sm:$0xff]  ;;  %v2633_v6 = vld [vmem:[%s6608_s5 + $0x58] sm:$0xff]  ;;  %v2632_v14 = vld [vmem:[%s6608_s5 + $0x50] sm:$0xff] }
   0xd   : > { %3113 = vmatpush.msra.mxu3 %v2637_v0  ;;  %2702 = vmatpush.msra.mxu0 %v2637_v0  ;;  %v3620_v4 = vld [vmem:[%s6604_s1] sm:$0xff]  ;;  %v2631_v23 = vld [vmem:[%s6608_s5 + $0x48] sm:$0xff]  ;;  %v2629_v41 = vld [vmem:[%s6608_s5 + $0x38] sm:$0xff] }
   0xe   : > { %3114 = vmatpush.msra.mxu1 %v2636_v1  ;;  %3115 = vmatpush.msra.mxu2 %v2636_v1  ;;  %s7264_s27 = smov (!%p244_p3, %s3105_s27), 31  ;;  %v3625_v5 = vld [vmem:[%s6605_s2] sm:$0xff]  ;;  %v3643_v8 = vperm.slane %v3620_v4, 0  ;;  %v3646_v9 = vperm.slane %v3620_v4, 1  ;;  %v3658_v13 = vperm.slane %v3620_v4, 2  ;;  %v3671_v18 = vperm.slane %v3620_v4, 3 }
   0xf   : > { %3116 = vmatpush.msra.mxu3 %v2636_v1  ;;  %2703 = vmatpush.msra.mxu0 %v2636_v1  ;;  %s3106_s8 = sshll.u32 %s7264_s27, 3  ;;  %v3640_v7 = vld [vmem:[%s6606_s3] sm:$0xff]  ;;  %v3652_v11 = vperm.slane %v3625_v5, 0  ;;  %v3655_v12 = vperm.slane %v3625_v5, 1  ;;  %v3682_v22 = vperm.slane %v3620_v4, 4  ;;  %v3688_v26 = vperm.slane %v3625_v5, 2 }
  0x10   : > { %3117 = vmatpush.msra.mxu1 %v2635_v2  ;;  %3118 = vmatpush.msra.mxu2 %v2635_v2  ;;  %s3635_s17 = scalar_lea.vmem %s6603_s0, %s3106_s8  ;;  %v3666_v16 = vperm.slane %v3640_v7, 0  ;;  %v3674_v19 = vperm.slane %v3640_v7, 1  ;;  %v3679_v21 = vperm.slane %v3640_v7, 2  ;;  %v3693_v29 = vperm.slane %v3640_v7, 3  ;;  %v2630_v32 = vld [vmem:[%s6608_s5 + $0x40] sm:$0xff]  ;;  %v2628_v50 = vld [vmem:[%s6608_s5 + $0x30] sm:$0xff]  ;;  %s6550_s19 = scalar_lea.vmem %s6609_s6, %s3106_s8 }
  0x11   : > { %3119 = vmatpush.msra.mxu3 %v2635_v2  ;;  %2704 = vmatpush.msra.mxu0 %v2635_v2  ;;  %v3649_v10 = vld [vmem:[%s3635_s17 + $0x20] sm:$0xff]  ;;  %v3698_v31 = vperm.slane %v3620_v4, 5  ;;  %v3704_v36 = vperm.slane %v3625_v5, 3  ;;  %v3707_v39 = vperm.slane %v3640_v7, 4  ;;  %v3717_v45 = vperm.slane %v3625_v5, 4  ;;  %v2627_v60 = vld [vmem:[%s6608_s5 + $0x28] sm:$0xff] }
  0x12   : > { %3120 = vmatpush.msra.mxu1 %v2634_v3  ;;  %3121 = vmatpush.msra.mxu2 %v2634_v3  ;;  %v283_v15 = vsub.f32 %v3649_v10, %v3643_v8  ;;  %v366_v17 = vsub.f32 %v3649_v10, %v3646_v9  ;;  %v465_v20 = vsub.f32 %v3649_v10, %v3658_v13  ;;  %v3721_v49 = vperm.slane %v3620_v4, 6  ;;  %v3743_v59 = vld [vmem:[%s3635_s17 + $0x40] sm:$0xff] }
  0x13   : > { %3122 = vmatpush.msra.mxu3 %v2634_v3  ;;  %2705 = vmatpush.msra.mxu0 %v2634_v3  ;;  %v564_v27 = vsub.f32 %v3649_v10, %v3671_v18  ;;  %v663_v30 = vsub.f32 %v3649_v10, %v3682_v22  ;;  %v762_v40 = vsub.f32 %v3649_v10, %v3698_v31  ;;  %v3734_v54 = vperm.slane %v3640_v7, 5 }
  0x14   : > { %3123 = vmatpush.msra.mxu1 %v2633_v6  ;;  %3124 = vmatpush.msra.mxu2 %v2633_v6  ;;  %v299_v24 = vmul.f32 %v283_v15, %v283_v15  ;;  %v382_v25 = vmul.f32 %v366_v17, %v366_v17  ;;  %v481_v28 = vmul.f32 %v465_v20, %v465_v20  ;;  %v3754_v63 = vperm.slane %v3625_v5, 5 }
  0x15   : > { %3125 = vmatpush.msra.mxu3 %v2633_v6  ;;  %2706 = vmatpush.msra.mxu0 %v2633_v6  ;;  %v580_v35 = vmul.f32 %v564_v27, %v564_v27  ;;  %v679_v38 = vmul.f32 %v663_v30, %v663_v30  ;;  %v778_v48 = vmul.f32 %v762_v40, %v762_v40  ;;  %v3757_v0 = vperm.slane %v3620_v4, 7  ;;  %v3798_v40 = vld [vmem:[%s6608_s5 + $0x10] sm:$0xff] }
  0x16   : > { %3126 = vmatpush.msra.mxu1 %v2632_v14  ;;  %3127 = vmatpush.msra.mxu2 %v2632_v14  ;;  %v315_v33 = vmul.f32 0.5, %v299_v24  ;;  %v398_v34 = vmul.f32 0.5, %v382_v25  ;;  %v497_v37 = vmul.f32 0.5, %v481_v28  ;;  %v861_v58 = vsub.f32 %v3649_v10, %v3721_v49 }
  0x17   : > { %3128 = vmatpush.msra.mxu3 %v2632_v14  ;;  %2707 = vmatpush.msra.mxu0 %v2632_v14  ;;  %v596_v44 = vmul.f32 0.5, %v580_v35  ;;  %v695_v47 = vmul.f32 0.5, %v679_v38  ;;  %v794_v57 = vmul.f32 0.5, %v778_v48  ;;  %v3764_v6 = vperm.slane %v3640_v7, 6  ;;  %v2626_v14 = vld [vmem:[%s6608_s5 + $0x20] sm:$0xff]  ;;  %v3811_v48 = vld [vmem:[%s6608_s5 + $0x8] sm:$0xff] }
  0x18   : > { %3129 = vmatpush.msra.mxu1 %v2631_v23  ;;  %3130 = vmatpush.msra.mxu2 %v2631_v23  ;;  %v332_v42 = vmul.f32 %v3666_v16, %v315_v33  ;;  %v415_v43 = vmul.f32 %v3674_v19, %v398_v34  ;;  %v514_v46 = vmul.f32 %v3679_v21, %v497_v37  ;;  %v3771_v15 = vperm.slane %v3625_v5, 6 }
  0x19   : > { %3131 = vmatpush.msra.mxu3 %v2631_v23  ;;  %2708 = vmatpush.msra.mxu0 %v2631_v23  ;;  %v613_v53 = vmul.f32 %v3693_v29, %v596_v44  ;;  %v712_v56 = vmul.f32 %v3707_v39, %v695_v47  ;;  %v811_v2 = vmul.f32 %v3734_v54, %v794_v57  ;;  %v3793_v35 = vperm.slane %v3625_v5, 7 }
  0x1a   : > { %3132 = vmatpush.msra.mxu1 %v2630_v32  ;;  %3133 = vmatpush.msra.mxu2 %v2630_v32  ;;  %v3727_v51 = vsub.f32 %v3652_v11, %v332_v42  ;;  %v3730_v52 = vsub.f32 %v3655_v12, %v415_v43  ;;  %v3737_v55 = vsub.f32 %v3688_v26, %v514_v46 }
  0x1b   : > { %3134 = vmatpush.msra.mxu3 %v2630_v32  ;;  %2709 = vmatpush.msra.mxu0 %v2630_v32  ;;  %v3751_v62 = vsub.f32 %v3704_v36, %v613_v53  ;;  %v3760_v1 = vsub.f32 %v3717_v45, %v712_v56  ;;  %v877_v3 = vmul.f32 %v861_v58, %v861_v58  ;;  %v3789_v32 = vperm.slane %v3640_v7, 7 }
  0x1c   : > { %6816 = vst [vmem:[#allocation2_spill] sm:$0xff] %v3727_v51  ;;  %3135 = vmatpush.msra.mxu1 %v2629_v41  ;;  %3136 = vmatpush.msra.mxu2 %v2629_v41  ;;  %v448_v61 = vmax.f32 %v3727_v51, %v3730_v52  ;;  %v960_v17 = vsub.f32 %v3649_v10, %v3757_v0  ;;  %v2625_v10 = vld [vmem:[%s6608_s5 + $0x18] sm:$0xff] }
  0x1d   : > { %6817 = vst [vmem:[#allocation3_spill] sm:$0xff] %v3730_v52  ;;  %3137 = vmatpush.msra.mxu3 %v2629_v41  ;;  %2710 = vmatpush.msra.mxu0 %v2629_v41  ;;  %v287_v20 = vsub.f32 %v3743_v59, %v3643_v8  ;;  %v3778_v23 = vsub.f32 %v3754_v63, %v811_v2  ;;  %v893_v24 = vmul.f32 0.5, %v877_v3  ;;  %v3824_v2 = vld [vmem:[%s6608_s5] sm:$0xff] }
  0x1e   : > { %6818 = vst [vmem:[#allocation4_spill] sm:$0xff] %v3737_v55  ;;  %3138 = vmatpush.msra.mxu1 %v2628_v50  ;;  %3139 = vmatpush.msra.mxu2 %v2628_v50  ;;  %v547_v4 = vmax.f32 %v448_v61, %v3737_v55  ;;  %v370_v25 = vsub.f32 %v3743_v59, %v3646_v9 }
  0x1f   : > { %6819 = vst [vmem:[#allocation5_spill] sm:$0xff] %v3751_v62  ;;  %3140 = vmatpush.msra.mxu3 %v2628_v50  ;;  %2711 = vmatpush.msra.mxu0 %v2628_v50  ;;  %v469_v27 = vsub.f32 %v3743_v59, %v3658_v13  ;;  %v976_v30 = vmul.f32 %v960_v17, %v960_v17 }
  0x20   : > { %6820 = vst [vmem:[#allocation6_spill] sm:$0xff] %v3760_v1  ;;  %3141 = vmatpush.msra.mxu1 %v2627_v60  ;;  %3142 = vmatpush.msra.mxu2 %v2627_v60  ;;  %v646_v28 = vmax.f32 %v547_v4, %v3751_v62  ;;  %v303_v33 = vmul.f32 %v287_v20, %v287_v20 }
  0x21   : > { %6821 = vst [vmem:[#allocation7_spill] sm:$0xff] %v3778_v23  ;;  %3143 = vmatpush.msra.mxu3 %v2627_v60  ;;  %2712 = vmatpush.msra.mxu0 %v2627_v60  ;;  %v910_v34 = vmul.f32 %v3764_v6, %v893_v24  ;;  %v386_v37 = vmul.f32 %v370_v25, %v370_v25  ;;  %v992_v7 = vmul.f32 0.5, %v976_v30 }
  0x22   : > { %3144 = vmatpush.msra.mxu1 %v2626_v14  ;;  %3145 = vmatpush.msra.mxu2 %v2626_v14  ;;  %v485_v38 = vmul.f32 %v469_v27, %v469_v27  ;;  %v745_v41 = vmax.f32 %v646_v28, %v3760_v1  ;;  %v319_v42 = vmul.f32 0.5, %v303_v33  ;;  %v568_v43 = vsub.f32 %v3743_v59, %v3671_v18  ;;  %v2669_v28 = vld [vmem:[%s6608_s5 + $0x178] sm:$0xff] }
  0x23   : > { %3146 = vmatpush.msra.mxu3 %v2626_v14  ;;  %2713 = vmatpush.msra.mxu0 %v2626_v14  ;;  %v3804_v5 = vsub.f32 %v3771_v15, %v910_v34  ;;  %v402_v44 = vmul.f32 0.5, %v386_v37  ;;  %v667_v47 = vsub.f32 %v3743_v59, %v3682_v22  ;;  %v1009_v53 = vmul.f32 %v3789_v32, %v992_v7  ;;  %v2653_v37 = vld [vmem:[%s6608_s5 + $0xf8] sm:$0xff] }
  0x24   : > { %3147 = vmatpush.msra.mxu1 %v2625_v10  ;;  %3148 = vmatpush.msra.mxu2 %v2625_v10  ;;  %v501_v46 = vmul.f32 0.5, %v485_v38  ;;  %v844_v50 = vmax.f32 %v745_v41, %v3778_v23  ;;  %v336_v56 = vmul.f32 %v3666_v16, %v319_v42  ;;  %v584_v57 = vmul.f32 %v568_v43, %v568_v43  ;;  %v3859_v38 = vld [vmem:[%s3635_s17 + $0x60] sm:$0xff]  ;;  %v2685_v43 = vld [vmem:[%s6608_s5 + $0x1f8] sm:$0xff] }
  0x25   : > { %6822 = vst [vmem:[#allocation8_spill] sm:$0xff] %v3804_v5  ;;  %3149 = vmatpush.msra.mxu3 %v2625_v10  ;;  %v419_v58 = vmul.f32 %v3674_v19, %v402_v44  ;;  %v683_v61 = vmul.f32 %v667_v47, %v667_v47  ;;  %v3828_v14 = vsub.f32 %v3793_v35, %v1009_v53 }
  0x26   : > { %3150 = vmatpush.msra.mxu1 %v3798_v40  ;;  %3151 = vmatpush.msra.mxu2 %v3798_v40  ;;  %v518_v60 = vmul.f32 %v3679_v21, %v501_v46  ;;  %v943_v3 = vmax.f32 %v844_v50, %v3804_v5  ;;  %v3831_v4 = vsub.f32 %v3652_v11, %v336_v56  ;;  %v600_v17 = vmul.f32 0.5, %v584_v57  ;;  %v2652_v50 = vld [vmem:[%s6608_s5 + $0xf0] sm:$0xff] }
  0x27   : > { %3152 = vmatpush.msra.mxu3 %v3798_v40  ;;  %6823 = vst [vmem:[#allocation9_spill] sm:$0xff] %v3828_v14  ;;  %2714 = vmatpush.msra.mxu0 %v2625_v10  ;;  %v3836_v20 = vsub.f32 %v3655_v12, %v419_v58  ;;  %v699_v25 = vmul.f32 0.5, %v683_v61  ;;  %v766_v27 = vsub.f32 %v3743_v59, %v3698_v31 }
  0x28   : > { %6824 = vst [vmem:[#allocation10_spill] sm:$0xff] %v3831_v4  ;;  %3153 = vmatpush.msra.mxu1 %v3811_v48  ;;  %3154 = vmatpush.msra.mxu2 %v3811_v48  ;;  %v3839_v24 = vsub.f32 %v3688_v26, %v518_v60  ;;  %v3848_v10 = vmax.f32 %v943_v3, %v3828_v14  ;;  %v2667_v60 = vld [vmem:[%s6608_s5 + $0x168] sm:$0xff] }
  0x29   : > { %6825 = vst [vmem:[#allocation11_spill] sm:$0xff] %v3836_v20  ;;  %3155 = vmatpush.msra.mxu3 %v3811_v48  ;;  %v617_v30 = vmul.f32 %v3693_v29, %v600_v17  ;;  %v865_v33 = vsub.f32 %v3743_v59, %v3721_v49  ;;  %v964_v34 = vsub.f32 %v3743_v59, %v3757_v0  ;;  %v2668_v59 = vld [vmem:[%s6608_s5 + $0x170] sm:$0xff] }
  0x2a   : > { %6826 = vst [vmem:[#allocation12_spill] sm:$0xff] %v3839_v24  ;;  %3156 = vmatpush.msra.mxu1 %v3824_v2  ;;  %3157 = vmatpush.msra.mxu2 %v3824_v2  ;;  %v452_v41 = vmax.f32 %v3831_v4, %v3836_v20  ;;  %v716_v7 = vmul.f32 %v3707_v39, %v699_v25  ;;  %v2647_v4 = vld [vmem:[%s6608_s5 + $0xc8] sm:$0xff] }
  0x2b   : > { %6827 = vst [vmem:[#allocation13_spill] sm:$0xff] %v3848_v10  ;;  %v782_v42 = vmul.f32 %v766_v27, %v766_v27  ;;  %2730 = vmatmul.f32.vlgmr.msra.gmra.mxu1 %v3848_v10  ;;  %v3874_v44 = vsub.f32 %v3704_v36, %v617_v30  ;;  %v881_v46 = vmul.f32 %v865_v33, %v865_v33  ;;  %v2684_v27 = vld [vmem:[%s6608_s5 + $0x1f0] sm:$0xff] }
  0x2c   : > { %v980_v47 = vmul.f32 %v964_v34, %v964_v34  ;;  %2832 = vmatpush.msrb.mxu2 %v2669_v28  ;;  %v551_v53 = vmax.f32 %v452_v41, %v3839_v24  ;;  %v3881_v56 = vsub.f32 %v3717_v45, %v716_v7  ;;  %3158 = vmatpush.msra.mxu3 %v3824_v2  ;;  %v2666_v41 = vld [vmem:[%s6608_s5 + $0x160] sm:$0xff] }
  0x2d   : > { %6828 = vst [vmem:[#allocation14_spill] sm:$0xff] %v3874_v44  ;;  %v798_v57 = vmul.f32 0.5, %v782_v42  ;;  %2767 = vmatpush.msrb.mxu1 %v2653_v37  ;;  %v291_v58 = vsub.f32 %v3859_v38, %v3643_v8  ;;  %v897_v61 = vmul.f32 0.5, %v881_v46  ;;  %v374_v17 = vsub.f32 %v3859_v38, %v3646_v9  ;;  %v2651_v37 = vld [vmem:[%s6608_s5 + $0xe8] sm:$0xff]  ;;  %2715 = vmatpush.msra.mxu0 %v3798_v40 }
  0x2e   : > { %6829 = vst [vmem:[#allocation15_spill] sm:$0xff] %v3881_v56  ;;  %v996_v3 = vmul.f32 0.5, %v980_v47  ;;  %v473_v25 = vsub.f32 %v3859_v38, %v3658_v13  ;;  %2833 = vmatpush.msrb.mxu2 %v2668_v59  ;;  %2897 = vmatpush.msrb.mxu3 %v2685_v43  ;;  %v650_v28 = vmax.f32 %v551_v53, %v3874_v44  ;;  %v2683_v46 = vld [vmem:[%s6608_s5 + $0x1e8] sm:$0xff] }
  0x2f   : > { %v815_v30 = vmul.f32 %v3734_v54, %v798_v57  ;;  %v307_v33 = vmul.f32 %v291_v58, %v291_v58  ;;  %v572_v34 = vsub.f32 %v3859_v38, %v3671_v18  ;;  %2768 = vmatpush.msrb.mxu1 %v2652_v50  ;;  %v914_v7 = vmul.f32 %v3764_v6, %v897_v61  ;;  %v2650_v58 = vld [vmem:[%s6608_s5 + $0xe0] sm:$0xff] }
  0x30   : > { %v1013_v42 = vmul.f32 %v3789_v32, %v996_v3  ;;  %v390_v59 = vmul.f32 %v374_v17, %v374_v17  ;;  %v489_v43 = vmul.f32 %v473_v25, %v473_v25  ;;  %2834 = vmatpush.msrb.mxu2 %v2667_v60  ;;  %v749_v47 = vmax.f32 %v650_v28, %v3881_v56 }
  0x31   : > { %v3913_v50 = vsub.f32 %v3754_v63, %v815_v30  ;;  %v323_v53 = vmul.f32 0.5, %v307_v33  ;;  %v588_v57 = vmul.f32 %v572_v34, %v572_v34  ;;  %2898 = vmatpush.msrb.mxu3 %v2684_v27  ;;  %v3920_v60 = vsub.f32 %v3771_v15, %v914_v7  ;;  %2769 = vmatpush.msrb.mxu1 %v2651_v37 }
  0x32   : > { %v3923_v61 = vsub.f32 %v3793_v35, %v1013_v42  ;;  %v406_v3 = vmul.f32 0.5, %v390_v59  ;;  %v505_v17 = vmul.f32 0.5, %v489_v43  ;;  %2835 = vmatpush.msrb.mxu2 %v2666_v41  ;;  %v671_v28 = vsub.f32 %v3859_v38, %v3682_v22  ;;  %2716 = vmatpush.msra.mxu0 %v3811_v48  ;;  %v260_v48 = vld [vmem:[%s3635_s17 + $0x28] sm:$0xff] }
  0x33   : > { %6830 = vst [vmem:[#allocation16_spill] sm:$0xff] %v3913_v50  ;;  %v848_v25 = vmax.f32 %v749_v47, %v3913_v50  ;;  %v340_v27 = vmul.f32 %v3666_v16, %v323_v53  ;;  %v604_v40 = vmul.f32 0.5, %v588_v57  ;;  %2899 = vmatpush.msrb.mxu3 %v2683_v46  ;;  %v770_v34 = vsub.f32 %v3859_v38, %v3698_v31 }
  0x34   : > { %6831 = vst [vmem:[#allocation17_spill] sm:$0xff] %v3920_v60  ;;  %v423_v30 = vmul.f32 %v3674_v19, %v406_v3  ;;  %v522_v33 = vmul.f32 %v3679_v21, %v505_v17  ;;  %v869_v37 = vsub.f32 %v3859_v38, %v3721_v49  ;;  %2770 = vmatpush.msrb.mxu1 %v2650_v58 }
  0x35   : > { %6832 = vst [vmem:[#allocation18_spill] sm:$0xff] %v3923_v61  ;;  %v947_v41 = vmax.f32 %v848_v25, %v3920_v60  ;;  %v3938_v7 = vsub.f32 %v3652_v11, %v340_v27  ;;  %v621_v42 = vmul.f32 %v3693_v29, %v604_v40  ;;  %v687_v59 = vmul.f32 %v671_v28, %v671_v28 }
  0x36   : > { %2717 = vmatpush.msra.mxu0 %v3824_v2  ;;  %v3944_v43 = vsub.f32 %v3655_v12, %v423_v30  ;;  %v3947_v46 = vsub.f32 %v3688_v26, %v522_v33  ;;  %v786_v47 = vmul.f32 %v770_v34, %v770_v34  ;;  %v885_v53 = vmul.f32 %v869_v37, %v869_v37 }
  0x37   : > { %6833 = vst [vmem:[#allocation19_spill] sm:$0xff] %v3938_v7  ;;  %v3950_v57 = vmax.f32 %v947_v41, %v3923_v61  ;;  %v3953_v58 = vsub.f32 %v3704_v36, %v621_v42  ;;  %v703_v3 = vmul.f32 0.5, %v687_v59  ;;  %v968_v17 = vsub.f32 %v3859_v38, %v3757_v0  ;;  %v264_v61 = vld [vmem:[%s3635_s17 + $0x48] sm:$0xff] }
  0x38   : > { %6834 = vst [vmem:[#allocation20_spill] sm:$0xff] %v3944_v43  ;;  %v456_v2 = vmax.f32 %v3938_v7, %v3944_v43  ;;  %v802_v25 = vmul.f32 0.5, %v786_v47  ;;  %v901_v27 = vmul.f32 0.5, %v885_v53  ;;  %v284_v40 = vsub.f32 %v260_v48, %v3643_v8 }
  0x39   : > { %6835 = vst [vmem:[#allocation21_spill] sm:$0xff] %v3947_v46  ;;  %2742 = vmatmul.f32.vlgmr.msra.gmra.mxu2 %v3950_v57  ;;  %v720_v28 = vmul.f32 %v3707_v39, %v703_v3  ;;  %v984_v30 = vmul.f32 %v968_v17, %v968_v17  ;;  %v367_v33 = vsub.f32 %v260_v48, %v3646_v9 }
  0x3a   : > { %6836 = vst [vmem:[#allocation22_spill] sm:$0xff] %v3950_v57  ;;  %v466_v34 = vsub.f32 %v260_v48, %v3658_v13  ;;  %v555_v37 = vmax.f32 %v456_v2, %v3947_v46  ;;  %v819_v38 = vmul.f32 %v3734_v54, %v802_v25  ;;  %v918_v41 = vmul.f32 %v3764_v6, %v901_v27 }
  0x3b   : > { %6837 = vst [vmem:[#allocation23_spill] sm:$0xff] %v3953_v58  ;;  %v300_v42 = vmul.f32 %v284_v40, %v284_v40  ;;  %v3968_v59 = vsub.f32 %v3717_v45, %v720_v28  ;;  %v1000_v47 = vmul.f32 0.5, %v984_v30  ;;  %v383_v53 = vmul.f32 %v367_v33, %v367_v33 }
  0x3c   : > { %v482_v43 = vmul.f32 %v466_v34, %v466_v34  ;;  %v654_v3 = vmax.f32 %v555_v37, %v3953_v58  ;;  %v3972_v17 = vsub.f32 %v3754_v63, %v819_v38  ;;  %v3975_v7 = vsub.f32 %v3771_v15, %v918_v41  ;;  %v2665_v37 = vld [vmem:[%s6608_s5 + $0x158] sm:$0xff]  ;;  %v2682_v38 = vld [vmem:[%s6608_s5 + $0x1e0] sm:$0xff] }
  0x3d   : > { %6838 = vst [vmem:[#allocation24_spill] sm:$0xff] %v3968_v59  ;;  %v316_v2 = vmul.f32 0.5, %v300_v42  ;;  %v1017_v25 = vmul.f32 %v3789_v32, %v1000_v47  ;;  %v399_v46 = vmul.f32 0.5, %v383_v53  ;;  %v565_v40 = vsub.f32 %v260_v48, %v3671_v18  ;;  %2836 = vmatpush.msrb.mxu2 %v2665_v37  ;;  %2900 = vmatpush.msrb.mxu3 %v2682_v38 }
  0x3e   : > { %6839 = vst [vmem:[#allocation25_spill] sm:$0xff] %v3972_v17  ;;  %v498_v27 = vmul.f32 0.5, %v482_v43  ;;  %v753_v28 = vmax.f32 %v654_v3, %v3968_v59  ;;  %v664_v33 = vsub.f32 %v260_v48, %v3682_v22  ;;  %v763_v34 = vsub.f32 %v260_v48, %v3698_v31  ;;  %v2649_v43 = vld [vmem:[%s6608_s5 + $0xd8] sm:$0xff] }
  0x3f   : > { %6840 = vst [vmem:[#allocation26_spill] sm:$0xff] %v3975_v7  ;;  %v333_v30 = vmul.f32 %v3666_v16, %v316_v2  ;;  %v3993_v41 = vsub.f32 %v3793_v35, %v1017_v25  ;;  %v416_v42 = vmul.f32 %v3674_v19, %v399_v46  ;;  %v581_v53 = vmul.f32 %v565_v40, %v565_v40 }
  0x40   : > { %v515_v47 = vmul.f32 %v3679_v21, %v498_v27  ;;  %v852_v3 = vmax.f32 %v753_v28, %v3972_v17  ;;  %v680_v59 = vmul.f32 %v664_v33, %v664_v33  ;;  %v779_v58 = vmul.f32 %v763_v34, %v763_v34  ;;  %2771 = vmatpush.msrb.mxu1 %v2649_v43 }
  0x41   : > { %6841 = vst [vmem:[#allocation27_spill] sm:$0xff] %v3993_v41  ;;  %v3999_v2 = vsub.f32 %v3652_v11, %v333_v30  ;;  %v4003_v60 = vsub.f32 %v3655_v12, %v416_v42  ;;  %v597_v46 = vmul.f32 0.5, %v581_v53  ;;  %v862_v27 = vsub.f32 %v260_v48, %v3721_v49 }
  0x42   : > { %v4006_v25 = vsub.f32 %v3688_v26, %v515_v47  ;;  %v951_v40 = vmax.f32 %v852_v3, %v3975_v7  ;;  %v696_v28 = vmul.f32 0.5, %v680_v59  ;;  %v795_v37 = vmul.f32 0.5, %v779_v58 }
  0x43   : > { %6842 = vst [vmem:[#allocation28_spill] sm:$0xff] %v3999_v2  ;;  %v961_v30 = vsub.f32 %v260_v48, %v3757_v0  ;;  %v449_v33 = vmax.f32 %v3999_v2, %v4003_v60  ;;  %v614_v34 = vmul.f32 %v3693_v29, %v597_v46  ;;  %v878_v38 = vmul.f32 %v862_v27, %v862_v27 }
  0x44   : > { %6843 = vst [vmem:[#allocation29_spill] sm:$0xff] %v4003_v60  ;;  %v288_v42 = vsub.f32 %v264_v61, %v3643_v8  ;;  %v4016_v47 = vmax.f32 %v951_v40, %v3993_v41  ;;  %v713_v53 = vmul.f32 %v3707_v39, %v696_v28  ;;  %v812_v43 = vmul.f32 %v3734_v54, %v795_v37 }
  0x45   : > { %6844 = vst [vmem:[#allocation30_spill] sm:$0xff] %v4006_v25  ;;  %v977_v3 = vmul.f32 %v961_v30, %v961_v30  ;;  %v548_v58 = vmax.f32 %v449_v33, %v4006_v25  ;;  %v4022_v48 = vsub.f32 %v3704_v36, %v614_v34  ;;  %v894_v59 = vmul.f32 0.5, %v878_v38 }
  0x46   : > { %6845 = vst [vmem:[#allocation31_spill] sm:$0xff] %v4016_v47  ;;  %v304_v7 = vmul.f32 %v288_v42, %v288_v42  ;;  %2754 = vmatmul.f32.vlgmr.msra.gmra.mxu3 %v4016_v47  ;;  %v4026_v46 = vsub.f32 %v3717_v45, %v713_v53  ;;  %v4029_v27 = vsub.f32 %v3754_v63, %v812_v43 }
  0x47   : > { %6846 = vst [vmem:[#allocation32_spill] sm:$0xff] %v4022_v48  ;;  %v993_v40 = vmul.f32 0.5, %v977_v3  ;;  %v371_v28 = vsub.f32 %v264_v61, %v3646_v9  ;;  %v647_v37 = vmax.f32 %v548_v58, %v4022_v48  ;;  %v911_v30 = vmul.f32 %v3764_v6, %v894_v59 }
  0x48   : > { %6847 = vst [vmem:[#allocation33_spill] sm:$0xff] %v4026_v46  ;;  %v320_v33 = vmul.f32 0.5, %v304_v7  ;;  %v470_v34 = vsub.f32 %v264_v61, %v3658_v13  ;;  %v569_v41 = vsub.f32 %v264_v61, %v3671_v18  ;;  %v668_v53 = vsub.f32 %v264_v61, %v3682_v22 }
  0x49   : > { %6848 = vst [vmem:[#allocation34_spill] sm:$0xff] %v4029_v27  ;;  %v1010_v38 = vmul.f32 %v3789_v32, %v993_v40  ;;  %v387_v42 = vmul.f32 %v371_v28, %v371_v28  ;;  %v746_v43 = vmax.f32 %v647_v37, %v4026_v46  ;;  %v4040_v3 = vsub.f32 %v3771_v15, %v911_v30 }
  0x4a   : > { %v337_v17 = vmul.f32 %v3666_v16, %v320_v33  ;;  %v486_v58 = vmul.f32 %v470_v34, %v470_v34  ;;  %v585_v47 = vmul.f32 %v569_v41, %v569_v41  ;;  %v684_v50 = vmul.f32 %v668_v53, %v668_v53 }
  0x4b   : > { %6849 = vst [vmem:[#allocation35_spill] sm:$0xff] %v4040_v3  ;;  %v4044_v59 = vsub.f32 %v3793_v35, %v1010_v38  ;;  %v403_v7 = vmul.f32 0.5, %v387_v42  ;;  %v845_v40 = vmax.f32 %v746_v43, %v4029_v27  ;;  %v767_v37 = vsub.f32 %v264_v61, %v3698_v31 }
  0x4c   : > { %v4048_v28 = vsub.f32 %v3652_v11, %v337_v17  ;;  %v502_v56 = vmul.f32 0.5, %v486_v58  ;;  %v601_v44 = vmul.f32 0.5, %v585_v47  ;;  %v700_v33 = vmul.f32 0.5, %v684_v50 }
  0x4d   : > { %6850 = vst [vmem:[#allocation36_spill] sm:$0xff] %v4044_v59  ;;  %v420_v30 = vmul.f32 %v3674_v19, %v403_v7  ;;  %v866_v34 = vsub.f32 %v264_v61, %v3721_v49  ;;  %v944_v38 = vmax.f32 %v845_v40, %v4040_v3  ;;  %v783_v42 = vmul.f32 %v767_v37, %v767_v37  ;;  %v4062_v7 = vld [vmem:[%s3635_s17] sm:$0xff] }
  0x4e   : > { %6851 = vst [vmem:[#allocation37_spill] sm:$0xff] %v4048_v28  ;;  %v519_v41 = vmul.f32 %v3679_v21, %v502_v56  ;;  %v965_v53 = vsub.f32 %v264_v61, %v3757_v0  ;;  %v618_v17 = vmul.f32 %v3693_v29, %v601_v44  ;;  %v717_v58 = vmul.f32 %v3707_v39, %v700_v33 }
  0x4f   : > { %v4057_v43 = vsub.f32 %v3655_v12, %v420_v30  ;;  %v882_v24 = vmul.f32 %v866_v34, %v866_v34  ;;  %v4065_v50 = vmax.f32 %v944_v38, %v4044_v59  ;;  %v799_v56 = vmul.f32 0.5, %v783_v42 }
  0x50   : > { %v4068_v47 = vsub.f32 %v3688_v26, %v519_v41  ;;  %v981_v40 = vmul.f32 %v965_v53, %v965_v53  ;;  %v4073_v37 = vsub.f32 %v3704_v36, %v618_v17  ;;  %v4076_v44 = vsub.f32 %v3717_v45, %v717_v58 }
  0x51   : > { %6852 = vst [vmem:[#allocation38_spill] sm:$0xff] %v4057_v43  ;;  %v453_v61 = vmax.f32 %v4048_v28, %v4057_v43  ;;  %v898_v30 = vmul.f32 0.5, %v882_v24  ;;  %2733 = vmatmul.f32.gmra.mxu1 %v4065_v50  ;;  %v816_v33 = vmul.f32 %v3734_v54, %v799_v56  ;;  %v279_v38 = vsub.f32 %v4062_v7, %v3643_v8 }
  0x52   : > { %6853 = vst [vmem:[#allocation39_spill] sm:$0xff] %v4065_v50  ;;  %v997_v34 = vmul.f32 0.5, %v981_v40  ;;  %v362_v41 = vsub.f32 %v4062_v7, %v3646_v9  ;;  %v461_v17 = vsub.f32 %v4062_v7, %v3658_v13  ;;  %v560_v24 = vsub.f32 %v4062_v7, %v3671_v18 }
  0x53   : > { %6854 = vst [vmem:[#allocation40_spill] sm:$0xff] %v4068_v47  ;;  %v552_v42 = vmax.f32 %v453_v61, %v4068_v47  ;;  %v915_v53 = vmul.f32 %v3764_v6, %v898_v30  ;;  %v4091_v58 = vsub.f32 %v3754_v63, %v816_v33  ;;  %v295_v40 = vmul.f32 %v279_v38, %v279_v38  ;;  %v2664_v47 = vld [vmem:[%s6608_s5 + $0x150] sm:$0xff]  ;;  %v2681_v33 = vld [vmem:[%s6608_s5 + $0x1d8] sm:$0xff] }
  0x54   : > { %6855 = vst [vmem:[#allocation41_spill] sm:$0xff] %v4073_v37  ;;  %v1014_v56 = vmul.f32 %v3789_v32, %v997_v34  ;;  %v378_v43 = vmul.f32 %v362_v41, %v362_v41  ;;  %v477_v61 = vmul.f32 %v461_v17, %v461_v17  ;;  %v576_v30 = vmul.f32 %v560_v24, %v560_v24  ;;  %v2701_v34 = vld [vmem:[%s6608_s5 + $0x278] sm:$0xff]  ;;  %v2648_v17 = vld [vmem:[%s6608_s5 + $0xd0] sm:$0xff]  ;;  %v2663_v24 = vld [vmem:[%s6608_s5 + $0x148] sm:$0xff] }
  0x55   : > { %6856 = vst [vmem:[#allocation42_spill] sm:$0xff] %v4076_v44  ;;  %v651_v28 = vmax.f32 %v552_v42, %v4073_v37  ;;  %v4096_v20 = vsub.f32 %v3771_v15, %v915_v53  ;;  %v311_v41 = vmul.f32 0.5, %v295_v40  ;;  %v659_v53 = vsub.f32 %v4062_v7, %v3682_v22  ;;  %2837 = vmatpush.msrb.mxu2 %v2664_v47 }
  0x56   : > { %6857 = vst [vmem:[#allocation43_spill] sm:$0xff] %v4091_v58  ;;  %v4108_v38 = vsub.f32 %v3793_v35, %v1014_v56  ;;  %v394_v42 = vmul.f32 0.5, %v378_v43  ;;  %2901 = vmatpush.msrb.mxu3 %v2681_v33  ;;  %v2680_v56 = vld [vmem:[%s6608_s5 + $0x1d0] sm:$0xff]  ;;  %v493_v43 = vmul.f32 0.5, %v477_v61  ;;  %v592_v37 = vmul.f32 0.5, %v576_v30  ;;  %2962 = vmatpush.msrb.mxu0 %v2701_v34  ;;  %v2662_v30 = vld [vmem:[%s6608_s5 + $0x140] sm:$0xff] }
  0x57   : > { %6858 = vst [vmem:[#allocation44_spill] sm:$0xff] %v4096_v20  ;;  %v750_v40 = vmax.f32 %v651_v28, %v4076_v44  ;;  %v758_v47 = vsub.f32 %v4062_v7, %v3698_v31  ;;  %2772 = vmatpush.msrb.mxu1 %v2648_v17  ;;  %v2700_v33 = vld [vmem:[%s6608_s5 + $0x270] sm:$0xff]  ;;  %v328_v57 = vmul.f32 %v3666_v16, %v311_v41  ;;  %v2679_v34 = vld [vmem:[%s6608_s5 + $0x1c8] sm:$0xff]  ;;  %v2646_v44 = vld [vmem:[%s6608_s5 + $0xc0] sm:$0xff] }
  0x58   : > { %6859 = vst [vmem:[#allocation45_spill] sm:$0xff] %v4108_v38  ;;  %v411_v59 = vmul.f32 %v3674_v19, %v394_v42  ;;  %v675_v28 = vmul.f32 %v659_v53, %v659_v53  ;;  %v857_v61 = vsub.f32 %v4062_v7, %v3721_v49  ;;  %2838 = vmatpush.msrb.mxu2 %v2663_v24  ;;  %v2699_v24 = vld [vmem:[%s6608_s5 + $0x268] sm:$0xff] }
  0x59   : > { %v849_v17 = vmax.f32 %v750_v40, %v4091_v58  ;;  %v510_v41 = vmul.f32 %v3679_v21, %v493_v43  ;;  %v609_v42 = vmul.f32 %v3693_v29, %v592_v37  ;;  %v774_v53 = vmul.f32 %v758_v47, %v758_v47  ;;  %2902 = vmatpush.msrb.mxu3 %v2680_v56  ;;  %v268_v58 = vld [vmem:[%s3635_s17 + $0x68] sm:$0xff] }
  0x5a   : > { %v4150_v3 = vsub.f32 %v3652_v11, %v328_v57  ;;  %v4153_v27 = vsub.f32 %v3655_v12, %v411_v59  ;;  %v691_v40 = vmul.f32 0.5, %v675_v28  ;;  %v873_v43 = vmul.f32 %v857_v61, %v857_v61  ;;  %2963 = vmatpush.msrb.mxu0 %v2700_v33  ;;  %2773 = vmatpush.msrb.mxu1 %v2647_v4 }
  0x5b   : > { %v948_v37 = vmax.f32 %v849_v17, %v4096_v20  ;;  %v4158_v56 = vsub.f32 %v3688_v26, %v510_v41  ;;  %v4161_v47 = vsub.f32 %v3704_v36, %v609_v42  ;;  %v790_v46 = vmul.f32 0.5, %v774_v53  ;;  %2839 = vmatpush.msrb.mxu2 %v2662_v30  ;;  %2903 = vmatpush.msrb.mxu3 %v2679_v34 }
  0x5c   : > { %v444_v57 = vmax.f32 %v4150_v3, %v4153_v27  ;;  %v708_v59 = vmul.f32 %v3707_v39, %v691_v40  ;;  %v889_v28 = vmul.f32 0.5, %v873_v43  ;;  %v956_v4 = vsub.f32 %v4062_v7, %v3757_v0  ;;  %2964 = vmatpush.msrb.mxu0 %v2699_v24  ;;  %2774 = vmatpush.msrb.mxu1 %v2646_v44 }
  0x5d   : > { %v4169_v33 = vmax.f32 %v948_v37, %v4108_v38  ;;  %v807_v61 = vmul.f32 %v3734_v54, %v790_v46  ;;  %v292_v17 = vsub.f32 %v268_v58, %v3643_v8  ;;  %v375_v30 = vsub.f32 %v268_v58, %v3646_v9 }
  0x5e   : > { %v543_v34 = vmax.f32 %v444_v57, %v4158_v56  ;;  %v4176_v41 = vsub.f32 %v3717_v45, %v708_v59  ;;  %v906_v42 = vmul.f32 %v3764_v6, %v889_v28  ;;  %v972_v53 = vmul.f32 %v956_v4, %v956_v4 }
  0x5f   : > { %6860 = vst [vmem:[#allocation46_spill] sm:$0xff] %v4169_v33  ;;  %2745 = vmatmul.f32.gmra.mxu2 %v4169_v33  ;;  %v4181_v7 = vsub.f32 %v3754_v63, %v807_v61  ;;  %v308_v44 = vmul.f32 %v292_v17, %v292_v17  ;;  %v391_v24 = vmul.f32 %v375_v30, %v375_v30 }
  0x60   : > { %v474_v46 = vsub.f32 %v268_v58, %v3658_v13  ;;  %v642_v40 = vmax.f32 %v543_v34, %v4161_v47  ;;  %v4186_v43 = vsub.f32 %v3771_v15, %v906_v42  ;;  %v988_v37 = vmul.f32 0.5, %v972_v53 }
  0x61   : > { %v573_v57 = vsub.f32 %v268_v58, %v3671_v18  ;;  %v324_v59 = vmul.f32 0.5, %v308_v44  ;;  %v407_v28 = vmul.f32 0.5, %v391_v24  ;;  %v672_v38 = vsub.f32 %v268_v58, %v3682_v22 }
  0x62   : > { %v490_v4 = vmul.f32 %v474_v46, %v474_v46  ;;  %v741_v61 = vmax.f32 %v642_v40, %v4176_v41  ;;  %v1005_v17 = vmul.f32 %v3789_v32, %v988_v37  ;;  %v771_v20 = vsub.f32 %v268_v58, %v3698_v31 }
  0x63   : > { %v589_v30 = vmul.f32 %v573_v57, %v573_v57  ;;  %v341_v34 = vmul.f32 %v3666_v16, %v324_v59  ;;  %v424_v42 = vmul.f32 %v3674_v19, %v407_v28  ;;  %v688_v33 = vmul.f32 %v672_v38, %v672_v38 }
  0x64   : > { %v506_v53 = vmul.f32 0.5, %v490_v4  ;;  %v840_v44 = vmax.f32 %v741_v61, %v4181_v7  ;;  %v4197_v24 = vsub.f32 %v3793_v35, %v1005_v17  ;;  %v787_v48 = vmul.f32 %v771_v20, %v771_v20  ;;  %v261_v17 = vld [vmem:[%s3635_s17 + $0x30] sm:$0xff] }
  0x65   : > { %v605_v46 = vmul.f32 0.5, %v589_v30  ;;  %v4200_v40 = vsub.f32 %v3652_v11, %v341_v34  ;;  %v4203_v37 = vsub.f32 %v3655_v12, %v424_v42  ;;  %v704_v59 = vmul.f32 0.5, %v688_v33 }
  0x66   : > { %v523_v57 = vmul.f32 %v3679_v21, %v506_v53  ;;  %v939_v28 = vmax.f32 %v840_v44, %v4186_v43  ;;  %v803_v4 = vmul.f32 0.5, %v787_v48  ;;  %v870_v61 = vsub.f32 %v268_v58, %v3721_v49 }
  0x67   : > { %6861 = vst [vmem:[#allocation47_spill] sm:$0xff] %v4200_v40  ;;  %v622_v38 = vmul.f32 %v3693_v29, %v605_v46  ;;  %v457_v20 = vmax.f32 %v4200_v40, %v4203_v37  ;;  %v721_v34 = vmul.f32 %v3707_v39, %v704_v59  ;;  %v969_v42 = vsub.f32 %v268_v58, %v3757_v0 }
  0x68   : > { %6862 = vst [vmem:[#allocation48_spill] sm:$0xff] %v4203_v37  ;;  %v4213_v30 = vsub.f32 %v3688_v26, %v523_v57  ;;  %v4218_v33 = vmax.f32 %v939_v28, %v4197_v24  ;;  %v820_v48 = vmul.f32 %v3734_v54, %v803_v4  ;;  %v886_v44 = vmul.f32 %v870_v61, %v870_v61 }
  0x69   : > { %v4221_v53 = vsub.f32 %v3704_v36, %v622_v38  ;;  %v4226_v37 = vsub.f32 %v3717_v45, %v721_v34  ;;  %v985_v57 = vmul.f32 %v969_v42, %v969_v42  ;;  %v285_v40 = vsub.f32 %v261_v17, %v3643_v8 }
  0x6a   : > { %6863 = vst [vmem:[#allocation49_spill] sm:$0xff] %v4213_v30  ;;  %v556_v46 = vmax.f32 %v457_v20, %v4213_v30  ;;  %2718 = vmatmul.f32.vlgmr.msra.gmra.mxu0 %v4218_v33  ;;  %v4231_v58 = vsub.f32 %v3754_v63, %v820_v48  ;;  %v902_v59 = vmul.f32 0.5, %v886_v44  ;;  %v368_v28 = vsub.f32 %v261_v17, %v3646_v9 }
  0x6b   : > { %6864 = vst [vmem:[#allocation50_spill] sm:$0xff] %v4221_v53  ;;  %v467_v38 = vsub.f32 %v261_v17, %v3658_v13  ;;  %v1001_v61 = vmul.f32 0.5, %v985_v57  ;;  %v301_v20 = vmul.f32 %v285_v40, %v285_v40  ;;  %v566_v34 = vsub.f32 %v261_v17, %v3671_v18  ;;  %v2678_v40 = vld [vmem:[%s6608_s5 + $0x1c0] sm:$0xff] }
  0x6c   : > { %6865 = vst [vmem:[#allocation51_spill] sm:$0xff] %v4226_v37  ;;  %v655_v4 = vmax.f32 %v556_v46, %v4221_v53  ;;  %v919_v42 = vmul.f32 %v3764_v6, %v902_v59  ;;  %v384_v30 = vmul.f32 %v368_v28, %v368_v28  ;;  %v665_v60 = vsub.f32 %v261_v17, %v3682_v22  ;;  %v2661_v46 = vld [vmem:[%s6608_s5 + $0x138] sm:$0xff]  ;;  %v2698_v57 = vld [vmem:[%s6608_s5 + $0x260] sm:$0xff] }
  0x6d   : > { %6866 = vst [vmem:[#allocation52_spill] sm:$0xff] %v4231_v58  ;;  %v483_v25 = vmul.f32 %v467_v38, %v467_v38  ;;  %v1018_v44 = vmul.f32 %v3789_v32, %v1001_v61  ;;  %v317_v2 = vmul.f32 0.5, %v301_v20  ;;  %v582_v50 = vmul.f32 %v566_v34, %v566_v34  ;;  %2840 = vmatpush.msrb.mxu2 %v2661_v46  ;;  %v2645_v61 = vld [vmem:[%s6608_s5 + $0xb8] sm:$0xff] }
  0x6e   : > { %v754_v48 = vmax.f32 %v655_v4, %v4226_v37  ;;  %v4251_v59 = vsub.f32 %v3771_v15, %v919_v42  ;;  %v400_v28 = vmul.f32 0.5, %v384_v30  ;;  %v681_v4 = vmul.f32 %v665_v60, %v665_v60  ;;  %2904 = vmatpush.msrb.mxu3 %v2678_v40  ;;  %2965 = vmatpush.msrb.mxu0 %v2698_v57 }
  0x6f   : > { %v499_v38 = vmul.f32 0.5, %v483_v25  ;;  %v4258_v34 = vsub.f32 %v3793_v35, %v1018_v44  ;;  %v334_v37 = vmul.f32 %v3666_v16, %v317_v2  ;;  %v598_v53 = vmul.f32 0.5, %v582_v50  ;;  %2775 = vmatpush.msrb.mxu1 %v2645_v61  ;;  %v265_v2 = vld [vmem:[%s3635_s17 + $0x50] sm:$0xff] }
  0x70   : > { %6867 = vst [vmem:[#allocation53_spill] sm:$0xff] %v4251_v59  ;;  %v853_v20 = vmax.f32 %v754_v48, %v4231_v58  ;;  %v417_v25 = vmul.f32 %v3674_v19, %v400_v28  ;;  %v697_v30 = vmul.f32 0.5, %v681_v4  ;;  %v764_v42 = vsub.f32 %v261_v17, %v3698_v31 }
  0x71   : > { %6868 = vst [vmem:[#allocation54_spill] sm:$0xff] %v4258_v34  ;;  %v516_v60 = vmul.f32 %v3679_v21, %v499_v38  ;;  %v4266_v40 = vsub.f32 %v3652_v11, %v334_v37  ;;  %v615_v48 = vmul.f32 %v3693_v29, %v598_v53  ;;  %v863_v44 = vsub.f32 %v261_v17, %v3721_v49 }
  0x72   : > { %v952_v46 = vmax.f32 %v853_v20, %v4251_v59  ;;  %v4272_v50 = vsub.f32 %v3655_v12, %v417_v25  ;;  %v714_v28 = vmul.f32 %v3707_v39, %v697_v30  ;;  %v780_v38 = vmul.f32 %v764_v42, %v764_v42 }
  0x73   : > { %6869 = vst [vmem:[#allocation55_spill] sm:$0xff] %v4266_v40  ;;  %v4275_v57 = vsub.f32 %v3688_v26, %v516_v60  ;;  %v4282_v37 = vsub.f32 %v3704_v36, %v615_v48  ;;  %v879_v61 = vmul.f32 %v863_v44, %v863_v44  ;;  %v962_v53 = vsub.f32 %v261_v17, %v3757_v0 }
  0x74   : > { %6870 = vst [vmem:[#allocation56_spill] sm:$0xff] %v4272_v50  ;;  %v4279_v4 = vmax.f32 %v952_v46, %v4258_v34  ;;  %v450_v20 = vmax.f32 %v4266_v40, %v4272_v50  ;;  %v4288_v25 = vsub.f32 %v3717_v45, %v714_v28  ;;  %v796_v60 = vmul.f32 0.5, %v780_v38 }
  0x75   : > { %6871 = vst [vmem:[#allocation57_spill] sm:$0xff] %v4275_v57  ;;  %v289_v59 = vsub.f32 %v265_v2, %v3643_v8  ;;  %v895_v30 = vmul.f32 0.5, %v879_v61  ;;  %v978_v42 = vmul.f32 %v962_v53, %v962_v53  ;;  %v372_v46 = vsub.f32 %v265_v2, %v3646_v9 }
  0x76   : > { %6872 = vst [vmem:[#allocation58_spill] sm:$0xff] %v4279_v4  ;;  %2757 = vmatmul.f32.gmra.mxu3 %v4279_v4  ;;  %v471_v48 = vsub.f32 %v265_v2, %v3658_v13  ;;  %v549_v44 = vmax.f32 %v450_v20, %v4275_v57  ;;  %v813_v17 = vmul.f32 %v3734_v54, %v796_v60 }
  0x77   : > { %6873 = vst [vmem:[#allocation59_spill] sm:$0xff] %v4282_v37  ;;  %v305_v34 = vmul.f32 %v289_v59, %v289_v59  ;;  %v570_v58 = vsub.f32 %v265_v2, %v3671_v18  ;;  %v912_v28 = vmul.f32 %v3764_v6, %v895_v30  ;;  %v994_v38 = vmul.f32 0.5, %v978_v42 }
  0x78   : > { %6874 = vst [vmem:[#allocation60_spill] sm:$0xff] %v4288_v25  ;;  %v388_v50 = vmul.f32 %v372_v46, %v372_v46  ;;  %v487_v40 = vmul.f32 %v471_v48, %v471_v48  ;;  %v648_v4 = vmax.f32 %v549_v44, %v4282_v37  ;;  %v4300_v61 = vsub.f32 %v3754_v63, %v813_v17 }
  0x79   : > { %v321_v53 = vmul.f32 0.5, %v305_v34  ;;  %v586_v14 = vmul.f32 %v570_v58, %v570_v58  ;;  %v4303_v5 = vsub.f32 %v3771_v15, %v912_v28  ;;  %v1011_v59 = vmul.f32 %v3789_v32, %v994_v38 }
  0x7a   : > { %6875 = vst [vmem:[#allocation61_spill] sm:$0xff] %v4300_v61  ;;  %v404_v20 = vmul.f32 0.5, %v388_v50  ;;  %v503_v60 = vmul.f32 0.5, %v487_v40  ;;  %v747_v30 = vmax.f32 %v648_v4, %v4288_v25  ;;  %v669_v48 = vsub.f32 %v265_v2, %v3682_v22 }
  0x7b   : > { %6876 = vst [vmem:[#allocation62_spill] sm:$0xff] %v4303_v5  ;;  %v338_v42 = vmul.f32 %v3666_v16, %v321_v53  ;;  %v602_v46 = vmul.f32 0.5, %v586_v14  ;;  %v4310_v44 = vsub.f32 %v3793_v35, %v1011_v59  ;;  %v768_v17 = vsub.f32 %v265_v2, %v3698_v31  ;;  %v4321_v14 = vld [vmem:[%s3635_s17 + $0x8] sm:$0xff] }
  0x7c   : > { %v421_v58 = vmul.f32 %v3674_v19, %v404_v20  ;;  %v520_v34 = vmul.f32 %v3679_v21, %v503_v60  ;;  %v846_v28 = vmax.f32 %v747_v30, %v4300_v61  ;;  %v685_v4 = vmul.f32 %v669_v48, %v669_v48 }
  0x7d   : > { %6877 = vst [vmem:[#allocation63_spill] sm:$0xff] %v4310_v44  ;;  %v4317_v40 = vsub.f32 %v3652_v11, %v338_v42  ;;  %v619_v50 = vmul.f32 %v3693_v29, %v602_v46  ;;  %v784_v59 = vmul.f32 %v768_v17, %v768_v17  ;;  %v867_v20 = vsub.f32 %v265_v2, %v3721_v49 }
  0x7e   : > { %v4324_v38 = vsub.f32 %v3655_v12, %v421_v58  ;;  %v4327_v53 = vsub.f32 %v3688_v26, %v520_v34  ;;  %v945_v60 = vmax.f32 %v846_v28, %v4303_v5  ;;  %v701_v42 = vmul.f32 0.5, %v685_v4 }
  0x7f   : > { %6878 = vst [vmem:[#allocation64_spill] sm:$0xff] %v4317_v40  ;;  %v4332_v30 = vsub.f32 %v3704_v36, %v619_v50  ;;  %v966_v46 = vsub.f32 %v265_v2, %v3757_v0  ;;  %v800_v61 = vmul.f32 0.5, %v784_v59  ;;  %v883_v58 = vmul.f32 %v867_v20, %v867_v20 }
  0x80   : > { %6879 = vst [vmem:[#allocation65_spill] sm:$0xff] %v4324_v38  ;;  %v454_v48 = vmax.f32 %v4317_v40, %v4324_v38  ;;  %v280_v34 = vsub.f32 %v4321_v14, %v3643_v8  ;;  %v4340_v17 = vmax.f32 %v945_v60, %v4310_v44  ;;  %v718_v25 = vmul.f32 %v3707_v39, %v701_v42 }
  0x81   : > { %6880 = vst [vmem:[#allocation66_spill] sm:$0xff] %v4327_v53  ;;  %v982_v28 = vmul.f32 %v966_v46, %v966_v46  ;;  %v363_v50 = vsub.f32 %v4321_v14, %v3646_v9  ;;  %v817_v2 = vmul.f32 %v3734_v54, %v800_v61  ;;  %v899_v5 = vmul.f32 0.5, %v883_v58 }
  0x82   : > { %6881 = vst [vmem:[#allocation67_spill] sm:$0xff] %v4332_v30  ;;  %v553_v4 = vmax.f32 %v454_v48, %v4327_v53  ;;  %v296_v38 = vmul.f32 %v280_v34, %v280_v34  ;;  %2736 = vmatmul.f32.gmra.mxu1 %v4340_v17  ;;  %v4349_v59 = vsub.f32 %v3717_v45, %v718_v25 }
  0x83   : > { %6882 = vst [vmem:[#allocation68_spill] sm:$0xff] %v4340_v17  ;;  %v998_v20 = vmul.f32 0.5, %v982_v28  ;;  %v379_v60 = vmul.f32 %v363_v50, %v363_v50  ;;  %v462_v42 = vsub.f32 %v4321_v14, %v3658_v13  ;;  %v4355_v40 = vsub.f32 %v3754_v63, %v817_v2 }
  0x84   : > { %6883 = vst [vmem:[#allocation69_spill] sm:$0xff] %v4349_v59  ;;  %v652_v46 = vmax.f32 %v553_v4, %v4332_v30  ;;  %v916_v48 = vmul.f32 %v3764_v6, %v899_v5  ;;  %v312_v61 = vmul.f32 0.5, %v296_v38  ;;  %v561_v25 = vsub.f32 %v4321_v14, %v3671_v18  ;;  %v2660_v5 = vld [vmem:[%s6608_s5 + $0x130] sm:$0xff]  ;;  %v2677_v38 = vld [vmem:[%s6608_s5 + $0x1b8] sm:$0xff] }
  0x85   : > { %6884 = vst [vmem:[#allocation70_spill] sm:$0xff] %v4355_v40  ;;  %v1015_v58 = vmul.f32 %v3789_v32, %v998_v20  ;;  %v395_v34 = vmul.f32 0.5, %v379_v60  ;;  %v478_v53 = vmul.f32 %v462_v42, %v462_v42  ;;  %v660_v2 = vsub.f32 %v4321_v14, %v3682_v22  ;;  %v2697_v20 = vld [vmem:[%s6608_s5 + $0x258] sm:$0xff]  ;;  %2841 = vmatpush.msrb.mxu2 %v2660_v5  ;;  %v2676_v30 = vld [vmem:[%s6608_s5 + $0x1b0] sm:$0xff] }
  0x86   : > { %v751_v28 = vmax.f32 %v652_v46, %v4349_v59  ;;  %v4363_v50 = vsub.f32 %v3771_v15, %v916_v48  ;;  %v329_v4 = vmul.f32 %v3666_v16, %v312_v61  ;;  %v577_v48 = vmul.f32 %v561_v25, %v561_v25  ;;  %2905 = vmatpush.msrb.mxu3 %v2677_v38  ;;  %v2644_v61 = vld [vmem:[%s6608_s5 + $0xb0] sm:$0xff]  ;;  %v2659_v59 = vld [vmem:[%s6608_s5 + $0x128] sm:$0xff] }
  0x87   : > { %v4378_v60 = vsub.f32 %v3793_v35, %v1015_v58  ;;  %v412_v42 = vmul.f32 %v3674_v19, %v395_v34  ;;  %v494_v46 = vmul.f32 0.5, %v478_v53  ;;  %v676_v53 = vmul.f32 %v660_v2, %v660_v2  ;;  %2966 = vmatpush.msrb.mxu0 %v2697_v20  ;;  %v2696_v5 = vld [vmem:[%s6608_s5 + $0x250] sm:$0xff]  ;;  %v2643_v38 = vld [vmem:[%s6608_s5 + $0xa8] sm:$0xff]  ;;  %2776 = vmatpush.msrb.mxu1 %v2644_v61  ;;  %v2658_v20 = vld [vmem:[%s6608_s5 + $0x120] sm:$0xff] }
  0x88   : > { %6885 = vst [vmem:[#allocation71_spill] sm:$0xff] %v4363_v50  ;;  %v850_v58 = vmax.f32 %v751_v28, %v4355_v40  ;;  %v4392_v34 = vsub.f32 %v3652_v11, %v329_v4  ;;  %v759_v25 = vsub.f32 %v4321_v14, %v3698_v31  ;;  %v593_v4 = vmul.f32 0.5, %v577_v48  ;;  %2842 = vmatpush.msrb.mxu2 %v2659_v59  ;;  %v2675_v40 = vld [vmem:[%s6608_s5 + $0x1a8] sm:$0xff]  ;;  %v4418_v48 = vld [vmem:[%s3635_s17 + $0x70] sm:$0xff]  ;;  %v2642_v61 = vld [vmem:[%s6608_s5 + $0xa0] sm:$0xff] }
  0x89   : > { %6886 = vst [vmem:[#allocation72_spill] sm:$0xff] %v4378_v60  ;;  %v4403_v44 = vsub.f32 %v3655_v12, %v412_v42  ;;  %v511_v28 = vmul.f32 %v3679_v21, %v494_v46  ;;  %v858_v2 = vsub.f32 %v4321_v14, %v3721_v49  ;;  %v692_v42 = vmul.f32 0.5, %v676_v53  ;;  %2906 = vmatpush.msrb.mxu3 %v2676_v30  ;;  %v2695_v59 = vld [vmem:[%s6608_s5 + $0x248] sm:$0xff] }
  0x8a   : > { %v949_v37 = vmax.f32 %v850_v58, %v4363_v50  ;;  %v775_v57 = vmul.f32 %v759_v25, %v759_v25  ;;  %v957_v46 = vsub.f32 %v4321_v14, %v3757_v0  ;;  %2967 = vmatpush.msrb.mxu0 %v2696_v5  ;;  %v610_v14 = vmul.f32 %v3693_v29, %v593_v4 }
  0x8b   : > { %v445_v58 = vmax.f32 %v4392_v34, %v4403_v44  ;;  %v4429_v53 = vsub.f32 %v3688_v26, %v511_v28  ;;  %v874_v25 = vmul.f32 %v858_v2, %v858_v2  ;;  %2777 = vmatpush.msrb.mxu1 %v2643_v38  ;;  %v709_v5 = vmul.f32 %v3707_v39, %v692_v42 }
  0x8c   : > { %v4433_v30 = vmax.f32 %v949_v37, %v4378_v60  ;;  %v791_v50 = vmul.f32 0.5, %v775_v57  ;;  %v973_v17 = vmul.f32 %v957_v46, %v957_v46  ;;  %2843 = vmatpush.msrb.mxu2 %v2658_v20  ;;  %2907 = vmatpush.msrb.mxu3 %v2675_v40  ;;  %v4438_v1 = vsub.f32 %v3704_v36, %v610_v14 }
  0x8d   : > { %v544_v23 = vmax.f32 %v445_v58, %v4429_v53  ;;  %v890_v28 = vmul.f32 0.5, %v874_v25  ;;  %v293_v4 = vsub.f32 %v4418_v48, %v3643_v8  ;;  %2968 = vmatpush.msrb.mxu0 %v2695_v59  ;;  %2778 = vmatpush.msrb.mxu1 %v2642_v61  ;;  %v4444_v37 = vsub.f32 %v3717_v45, %v709_v5 }
  0x8e   : > { %6887 = vst [vmem:[#allocation73_spill] sm:$0xff] %v4433_v30  ;;  %2748 = vmatmul.f32.gmra.mxu2 %v4433_v30  ;;  %v808_v57 = vmul.f32 %v3734_v54, %v791_v50  ;;  %v989_v38 = vmul.f32 0.5, %v973_v17  ;;  %v376_v40 = vsub.f32 %v4418_v48, %v3646_v9  ;;  %v475_v46 = vsub.f32 %v4418_v48, %v3658_v13 }
  0x8f   : > { %v643_v2 = vmax.f32 %v544_v23, %v4438_v1  ;;  %v907_v20 = vmul.f32 %v3764_v6, %v890_v28  ;;  %v309_v42 = vmul.f32 %v293_v4, %v293_v4  ;;  %v574_v17 = vsub.f32 %v4418_v48, %v3671_v18 }
  0x90   : > { %v4454_v59 = vsub.f32 %v3754_v63, %v808_v57  ;;  %v1006_v61 = vmul.f32 %v3789_v32, %v989_v38  ;;  %v392_v58 = vmul.f32 %v376_v40, %v376_v40  ;;  %v491_v25 = vmul.f32 %v475_v46, %v475_v46 }
  0x91   : > { %v742_v50 = vmax.f32 %v643_v2, %v4444_v37  ;;  %v4461_v14 = vsub.f32 %v3771_v15, %v907_v20  ;;  %v325_v23 = vmul.f32 0.5, %v309_v42  ;;  %v590_v4 = vmul.f32 %v574_v17, %v574_v17 }
  0x92   : > { %6888 = vst [vmem:[#allocation74_spill] sm:$0xff] %v4454_v59  ;;  %v4464_v5 = vsub.f32 %v3793_v35, %v1006_v61  ;;  %v408_v28 = vmul.f32 0.5, %v392_v58  ;;  %v673_v57 = vsub.f32 %v4418_v48, %v3682_v22  ;;  %v507_v60 = vmul.f32 0.5, %v491_v25 }
  0x93   : > { %6889 = vst [vmem:[#allocation75_spill] sm:$0xff] %v4461_v14  ;;  %v841_v38 = vmax.f32 %v742_v50, %v4454_v59  ;;  %v342_v40 = vmul.f32 %v3666_v16, %v325_v23  ;;  %v772_v2 = vsub.f32 %v4418_v48, %v3698_v31  ;;  %v606_v42 = vmul.f32 0.5, %v590_v4  ;;  %v262_v4 = vld [vmem:[%s3635_s17 + $0x38] sm:$0xff] }
  0x94   : > { %6890 = vst [vmem:[#allocation76_spill] sm:$0xff] %v4464_v5  ;;  %v425_v20 = vmul.f32 %v3674_v19, %v408_v28  ;;  %v689_v46 = vmul.f32 %v673_v57, %v673_v57  ;;  %v871_v61 = vsub.f32 %v4418_v48, %v3721_v49  ;;  %v524_v50 = vmul.f32 %v3679_v21, %v507_v60 }
  0x95   : > { %v940_v58 = vmax.f32 %v841_v38, %v4461_v14  ;;  %v4477_v17 = vsub.f32 %v3652_v11, %v342_v40  ;;  %v788_v30 = vmul.f32 %v772_v2, %v772_v2  ;;  %v623_v25 = vmul.f32 %v3693_v29, %v606_v42 }
  0x96   : > { %v4481_v23 = vsub.f32 %v3655_v12, %v425_v20  ;;  %v705_v62 = vmul.f32 0.5, %v689_v46  ;;  %v887_v28 = vmul.f32 %v871_v61, %v871_v61  ;;  %v4489_v55 = vsub.f32 %v3688_v26, %v524_v50 }
  0x97   : > { %6891 = vst [vmem:[#allocation77_spill] sm:$0xff] %v4477_v17  ;;  %v4486_v57 = vmax.f32 %v940_v58, %v4464_v5  ;;  %v804_v38 = vmul.f32 0.5, %v788_v30  ;;  %v970_v40 = vsub.f32 %v4418_v48, %v3757_v0  ;;  %v4496_v2 = vsub.f32 %v3704_v36, %v623_v25 }
  0x98   : > { %6892 = vst [vmem:[#allocation78_spill] sm:$0xff] %v4481_v23  ;;  %v458_v60 = vmax.f32 %v4477_v17, %v4481_v23  ;;  %v722_v20 = vmul.f32 %v3707_v39, %v705_v62  ;;  %v903_v42 = vmul.f32 0.5, %v887_v28  ;;  %v286_v58 = vsub.f32 %v262_v4, %v3643_v8 }
  0x99   : > { %6893 = vst [vmem:[#allocation79_spill] sm:$0xff] %v4489_v55  ;;  %2721 = vmatmul.f32.gmra.mxu0 %v4486_v57  ;;  %v821_v46 = vmul.f32 %v3734_v54, %v804_v38  ;;  %v986_v61 = vmul.f32 %v970_v40, %v970_v40  ;;  %v369_v30 = vsub.f32 %v262_v4, %v3646_v9 }
  0x9a   : > { %6894 = vst [vmem:[#allocation80_spill] sm:$0xff] %v4496_v2  ;;  %v557_v48 = vmax.f32 %v458_v60, %v4489_v55  ;;  %v4505_v50 = vsub.f32 %v3717_v45, %v722_v20  ;;  %v920_v25 = vmul.f32 %v3764_v6, %v903_v42  ;;  %v468_v23 = vsub.f32 %v262_v4, %v3658_v13 }
  0x9b   : > { %v4510_v62 = vsub.f32 %v3754_v63, %v821_v46  ;;  %v1002_v28 = vmul.f32 0.5, %v986_v61  ;;  %v302_v17 = vmul.f32 %v286_v58, %v286_v58  ;;  %v385_v38 = vmul.f32 %v369_v30, %v369_v30  ;;  %v2657_v30 = vld [vmem:[%s6608_s5 + $0x118] sm:$0xff] }
  0x9c   : > { %6895 = vst [vmem:[#allocation81_spill] sm:$0xff] %v4505_v50  ;;  %v656_v40 = vmax.f32 %v557_v48, %v4496_v2  ;;  %v4514_v52 = vsub.f32 %v3771_v15, %v920_v25  ;;  %v484_v51 = vmul.f32 %v468_v23, %v468_v23  ;;  %v567_v60 = vsub.f32 %v262_v4, %v3671_v18  ;;  %v2674_v23 = vld [vmem:[%s6608_s5 + $0x1a0] sm:$0xff] }
  0x9d   : > { %6896 = vst [vmem:[#allocation82_spill] sm:$0xff] %v4510_v62  ;;  %v1019_v20 = vmul.f32 %v3789_v32, %v1002_v28  ;;  %v318_v55 = vmul.f32 0.5, %v302_v17  ;;  %v401_v42 = vmul.f32 0.5, %v385_v38  ;;  %v666_v10 = vsub.f32 %v262_v4, %v3682_v22  ;;  %v2694_v17 = vld [vmem:[%s6608_s5 + $0x240] sm:$0xff]  ;;  %2844 = vmatpush.msrb.mxu2 %v2657_v30  ;;  %v2641_v38 = vld [vmem:[%s6608_s5 + $0x98] sm:$0xff]  ;;  %2908 = vmatpush.msrb.mxu3 %v2674_v23 }
  0x9e   : > { %6897 = vst [vmem:[#allocation83_spill] sm:$0xff] %v4514_v52  ;;  %v755_v46 = vmax.f32 %v656_v40, %v4505_v50  ;;  %v500_v5 = vmul.f32 0.5, %v484_v51  ;;  %v583_v61 = vmul.f32 %v567_v60, %v567_v60  ;;  %v765_v58 = vsub.f32 %v262_v4, %v3698_v31  ;;  %2969 = vmatpush.msrb.mxu0 %v2694_v17  ;;  %v266_v30 = vld [vmem:[%s3635_s17 + $0x58] sm:$0xff] }
  0x9f   : > { %v4531_v48 = vsub.f32 %v3793_v35, %v1019_v20  ;;  %v335_v51 = vmul.f32 %v3666_v16, %v318_v55  ;;  %v418_v25 = vmul.f32 %v3674_v19, %v401_v42  ;;  %v682_v28 = vmul.f32 %v666_v10, %v666_v10  ;;  %2779 = vmatpush.msrb.mxu1 %v2641_v38 }
  0xa0   : > { %v854_v40 = vmax.f32 %v755_v46, %v4510_v62  ;;  %v517_v60 = vmul.f32 %v3679_v21, %v500_v5  ;;  %v599_v50 = vmul.f32 0.5, %v583_v61  ;;  %v781_v2 = vmul.f32 %v765_v58, %v765_v58 }
  0xa1   : > { %6898 = vst [vmem:[#allocation84_spill] sm:$0xff] %v4531_v48  ;;  %v4541_v20 = vsub.f32 %v3652_v11, %v335_v51  ;;  %v4544_v55 = vsub.f32 %v3655_v12, %v418_v25  ;;  %v698_v10 = vmul.f32 0.5, %v682_v28  ;;  %v864_v42 = vsub.f32 %v262_v4, %v3721_v49 }
  0xa2   : > { %v953_v14 = vmax.f32 %v854_v40, %v4514_v52  ;;  %v4550_v46 = vsub.f32 %v3688_v26, %v517_v60  ;;  %v616_v5 = vmul.f32 %v3693_v29, %v599_v50  ;;  %v797_v61 = vmul.f32 0.5, %v781_v2 }
  0xa3   : > { %6899 = vst [vmem:[#allocation85_spill] sm:$0xff] %v4541_v20  ;;  %v451_v58 = vmax.f32 %v4541_v20, %v4544_v55  ;;  %v715_v23 = vmul.f32 %v3707_v39, %v698_v10  ;;  %v880_v17 = vmul.f32 %v864_v42, %v864_v42  ;;  %v963_v51 = vsub.f32 %v262_v4, %v3757_v0 }
  0xa4   : > { %6900 = vst [vmem:[#allocation86_spill] sm:$0xff] %v4544_v55  ;;  %v4558_v25 = vmax.f32 %v953_v14, %v4531_v48  ;;  %v4561_v28 = vsub.f32 %v3704_v36, %v616_v5  ;;  %v814_v38 = vmul.f32 %v3734_v54, %v797_v61  ;;  %v290_v40 = vsub.f32 %v266_v30, %v3643_v8 }
  0xa5   : > { %6901 = vst [vmem:[#allocation87_spill] sm:$0xff] %v4550_v46  ;;  %v550_v2 = vmax.f32 %v451_v58, %v4550_v46  ;;  %v4567_v50 = vsub.f32 %v3717_v45, %v715_v23  ;;  %v896_v60 = vmul.f32 0.5, %v880_v17  ;;  %v979_v10 = vmul.f32 %v963_v51, %v963_v51 }
  0xa6   : > { %6902 = vst [vmem:[#allocation88_spill] sm:$0xff] %v4558_v25  ;;  %2760 = vmatmul.f32.gmra.mxu3 %v4558_v25  ;;  %v4571_v4 = vsub.f32 %v3754_v63, %v814_v38  ;;  %v306_v14 = vmul.f32 %v290_v40, %v290_v40  ;;  %v373_v42 = vsub.f32 %v266_v30, %v3646_v9 }
  0xa7   : > { %6903 = vst [vmem:[#allocation89_spill] sm:$0xff] %v4561_v28  ;;  %v472_v5 = vsub.f32 %v266_v30, %v3658_v13  ;;  %v649_v61 = vmax.f32 %v550_v2, %v4561_v28  ;;  %v913_v48 = vmul.f32 %v3764_v6, %v896_v60  ;;  %v995_v58 = vmul.f32 0.5, %v979_v10 }
  0xa8   : > { %6904 = vst [vmem:[#allocation90_spill] sm:$0xff] %v4567_v50  ;;  %v571_v23 = vsub.f32 %v266_v30, %v3671_v18  ;;  %v322_v52 = vmul.f32 0.5, %v306_v14  ;;  %v389_v17 = vmul.f32 %v373_v42, %v373_v42  ;;  %v670_v62 = vsub.f32 %v266_v30, %v3682_v22 }
  0xa9   : > { %6905 = vst [vmem:[#allocation91_spill] sm:$0xff] %v4571_v4  ;;  %v488_v51 = vmul.f32 %v472_v5, %v472_v5  ;;  %v748_v38 = vmax.f32 %v649_v61, %v4567_v50  ;;  %v4581_v40 = vsub.f32 %v3771_v15, %v913_v48  ;;  %v1012_v25 = vmul.f32 %v3789_v32, %v995_v58 }
  0xaa   : > { %v587_v46 = vmul.f32 %v571_v23, %v571_v23  ;;  %v339_v2 = vmul.f32 %v3666_v16, %v322_v52  ;;  %v405_v60 = vmul.f32 0.5, %v389_v17  ;;  %v686_v28 = vmul.f32 %v670_v62, %v670_v62 }
  0xab   : > { %6906 = vst [vmem:[#allocation92_spill] sm:$0xff] %v4581_v40  ;;  %v504_v10 = vmul.f32 0.5, %v488_v51  ;;  %v847_v14 = vmax.f32 %v748_v38, %v4571_v4  ;;  %v4587_v42 = vsub.f32 %v3793_v35, %v1012_v25  ;;  %v769_v61 = vsub.f32 %v266_v30, %v3698_v31  ;;  %v4599_v25 = vld [vmem:[%s3635_s17 + $0x10] sm:$0xff] }
  0xac   : > { %v603_v5 = vmul.f32 0.5, %v587_v46  ;;  %v4591_v48 = vsub.f32 %v3652_v11, %v339_v2  ;;  %v422_v58 = vmul.f32 %v3674_v19, %v405_v60  ;;  %v702_v52 = vmul.f32 0.5, %v686_v28 }
  0xad   : > { %6907 = vst [vmem:[#allocation93_spill] sm:$0xff] %v4587_v42  ;;  %v521_v23 = vmul.f32 %v3679_v21, %v504_v10  ;;  %v946_v17 = vmax.f32 %v847_v14, %v4581_v40  ;;  %v785_v51 = vmul.f32 %v769_v61, %v769_v61  ;;  %v868_v38 = vsub.f32 %v266_v30, %v3721_v49 }
  0xae   : > { %6908 = vst [vmem:[#allocation94_spill] sm:$0xff] %v4591_v48  ;;  %v620_v62 = vmul.f32 %v3693_v29, %v603_v5  ;;  %v4602_v46 = vsub.f32 %v3655_v12, %v422_v58  ;;  %v719_v60 = vmul.f32 %v3707_v39, %v702_v52  ;;  %v967_v10 = vsub.f32 %v266_v30, %v3757_v0 }
  0xaf   : > { %v4605_v2 = vsub.f32 %v3688_v26, %v521_v23  ;;  %v4610_v28 = vmax.f32 %v946_v17, %v4587_v42  ;;  %v801_v5 = vmul.f32 0.5, %v785_v51  ;;  %v884_v61 = vmul.f32 %v868_v38, %v868_v38 }
  0xb0   : > { %6909 = vst [vmem:[#allocation95_spill] sm:$0xff] %v4602_v46  ;;  %v4613_v14 = vsub.f32 %v3704_v36, %v620_v62  ;;  %v455_v40 = vmax.f32 %v4591_v48, %v4602_v46  ;;  %v4618_v58 = vsub.f32 %v3717_v45, %v719_v60  ;;  %v983_v23 = vmul.f32 %v967_v10, %v967_v10 }
  0xb1   : > { %6910 = vst [vmem:[#allocation96_spill] sm:$0xff] %v4605_v2  ;;  %v281_v52 = vsub.f32 %v4599_v25, %v3643_v8  ;;  %2739 = vmatmul.f32.gmra.mxu1 %v4610_v28  ;;  %v818_v30 = vmul.f32 %v3734_v54, %v801_v5  ;;  %v900_v17 = vmul.f32 0.5, %v884_v61  ;;  %v364_v62 = vsub.f32 %v4599_v25, %v3646_v9 }
  0xb2   : > { %6911 = vst [vmem:[#allocation97_spill] sm:$0xff] %v4610_v28  ;;  %v463_v51 = vsub.f32 %v4599_v25, %v3658_v13  ;;  %v554_v38 = vmax.f32 %v455_v40, %v4605_v2  ;;  %v999_v46 = vmul.f32 0.5, %v983_v23  ;;  %v562_v10 = vsub.f32 %v4599_v25, %v3671_v18  ;;  %v2656_v40 = vld [vmem:[%s6608_s5 + $0x110] sm:$0xff]  ;;  %v2673_v23 = vld [vmem:[%s6608_s5 + $0x198] sm:$0xff] }
  0xb3   : > { %6912 = vst [vmem:[#allocation98_spill] sm:$0xff] %v4613_v14  ;;  %v297_v60 = vmul.f32 %v281_v52, %v281_v52  ;;  %v4632_v48 = vsub.f32 %v3754_v63, %v818_v30  ;;  %v917_v42 = vmul.f32 %v3764_v6, %v900_v17  ;;  %v380_v5 = vmul.f32 %v364_v62, %v364_v62  ;;  %v2693_v52 = vld [vmem:[%s6608_s5 + $0x238] sm:$0xff] }
  0xb4   : > { %6913 = vst [vmem:[#allocation99_spill] sm:$0xff] %v4618_v58  ;;  %v479_v61 = vmul.f32 %v463_v51, %v463_v51  ;;  %v653_v4 = vmax.f32 %v554_v38, %v4613_v14  ;;  %v1016_v50 = vmul.f32 %v3789_v32, %v999_v46  ;;  %v578_v20 = vmul.f32 %v562_v10, %v562_v10  ;;  %v2640_v51 = vld [vmem:[%s6608_s5 + $0x90] sm:$0xff]  ;;  %v2655_v38 = vld [vmem:[%s6608_s5 + $0x108] sm:$0xff] }
  0xb5   : > { %6914 = vst [vmem:[#allocation100_spill] sm:$0xff] %v4632_v48  ;;  %v313_v55 = vmul.f32 0.5, %v297_v60  ;;  %v4647_v30 = vsub.f32 %v3771_v15, %v917_v42  ;;  %v396_v17 = vmul.f32 0.5, %v380_v5  ;;  %v661_v46 = vsub.f32 %v4599_v25, %v3682_v22  ;;  %2845 = vmatpush.msrb.mxu2 %v2656_v40  ;;  %2909 = vmatpush.msrb.mxu3 %v2673_v23  ;;  %v2672_v42 = vld [vmem:[%s6608_s5 + $0x190] sm:$0xff]  ;;  %v2639_v23 = vld [vmem:[%s6608_s5 + $0x88] sm:$0xff] }
  0xb6   : > { %v495_v62 = vmul.f32 0.5, %v479_v61  ;;  %v752_v60 = vmax.f32 %v653_v4, %v4618_v58  ;;  %v4662_v10 = vsub.f32 %v3793_v35, %v1016_v50  ;;  %v594_v61 = vmul.f32 0.5, %v578_v20  ;;  %2970 = vmatpush.msrb.mxu0 %v2693_v52  ;;  %2780 = vmatpush.msrb.mxu1 %v2640_v51  ;;  %v2692_v40 = vld [vmem:[%s6608_s5 + $0x230] sm:$0xff]  ;;  %v2654_v20 = vld [vmem:[%s6608_s5 + $0x100] sm:$0xff] }
  0xb7   : > { %6915 = vst [vmem:[#allocation101_spill] sm:$0xff] %v4647_v30  ;;  %v330_v5 = vmul.f32 %v3666_v16, %v313_v55  ;;  %v413_v14 = vmul.f32 %v3674_v19, %v396_v17  ;;  %v677_v50 = vmul.f32 %v661_v46, %v661_v46  ;;  %v760_v55 = vsub.f32 %v4599_v25, %v3698_v31  ;;  %v2671_v46 = vld [vmem:[%s6608_s5 + $0x188] sm:$0xff] }
  0xb8   : > { %6916 = vst [vmem:[#allocation102_spill] sm:$0xff] %v4662_v10  ;;  %v512_v4 = vmul.f32 %v3679_v21, %v495_v62  ;;  %2846 = vmatpush.msrb.mxu2 %v2655_v38  ;;  %v851_v52 = vmax.f32 %v752_v60, %v4632_v48  ;;  %v611_v58 = vmul.f32 %v3693_v29, %v594_v61  ;;  %v4686_v62 = vld [vmem:[%s3635_s17 + $0x78] sm:$0xff]  ;;  %v2691_v38 = vld [vmem:[%s6608_s5 + $0x228] sm:$0xff] }
  0xb9   : > { %v4680_v51 = vsub.f32 %v3652_v11, %v330_v5  ;;  %v859_v17 = vsub.f32 %v4599_v25, %v3721_v49  ;;  %2910 = vmatpush.msrb.mxu3 %v2672_v42  ;;  %v4695_v60 = vsub.f32 %v3655_v12, %v413_v14  ;;  %v693_v61 = vmul.f32 0.5, %v677_v50  ;;  %2971 = vmatpush.msrb.mxu0 %v2692_v40  ;;  %v2638_v42 = vld [vmem:[%s6608_s5 + $0x80] sm:$0xff] }
  0xba   : > { %v4698_v5 = vsub.f32 %v3688_v26, %v512_v4  ;;  %v776_v48 = vmul.f32 %v760_v55, %v760_v55  ;;  %2781 = vmatpush.msrb.mxu1 %v2639_v23  ;;  %v950_v2 = vmax.f32 %v851_v52, %v4647_v30  ;;  %v4705_v28 = vsub.f32 %v3704_v36, %v611_v58 }
  0xbb   : > { %6917 = vst [vmem:[#allocation103_spill] sm:$0xff] %v4680_v51  ;;  %v875_v59 = vmul.f32 %v859_v17, %v859_v17  ;;  %v958_v14 = vsub.f32 %v4599_v25, %v3757_v0  ;;  %2847 = vmatpush.msrb.mxu2 %v2654_v20  ;;  %v446_v4 = vmax.f32 %v4680_v51, %v4695_v60 }
  0xbc   : > { %6918 = vst [vmem:[#allocation104_spill] sm:$0xff] %v4695_v60  ;;  %v710_v40 = vmul.f32 %v3707_v39, %v693_v61  ;;  %v792_v23 = vmul.f32 0.5, %v776_v48  ;;  %v294_v50 = vsub.f32 %v4686_v62, %v3643_v8  ;;  %2911 = vmatpush.msrb.mxu3 %v2671_v46  ;;  %2972 = vmatpush.msrb.mxu0 %v2691_v38 }
  0xbd   : > { %6919 = vst [vmem:[#allocation105_spill] sm:$0xff] %v4698_v5  ;;  %v4715_v55 = vmax.f32 %v950_v2, %v4662_v10  ;;  %v891_v58 = vmul.f32 0.5, %v875_v59  ;;  %v974_v52 = vmul.f32 %v958_v14, %v958_v14  ;;  %v377_v25 = vsub.f32 %v4686_v62, %v3646_v9  ;;  %2782 = vmatpush.msrb.mxu1 %v2638_v42 }
  0xbe   : > { %6920 = vst [vmem:[#allocation106_spill] sm:$0xff] %v4705_v28  ;;  %v545_v20 = vmax.f32 %v446_v4, %v4698_v5  ;;  %v4721_v17 = vsub.f32 %v3717_v45, %v710_v40  ;;  %v809_v48 = vmul.f32 %v3734_v54, %v792_v23  ;;  %v310_v61 = vmul.f32 %v294_v50, %v294_v50 }
  0xbf   : > { %6921 = vst [vmem:[#allocation107_spill] sm:$0xff] %v4715_v55  ;;  %2751 = vmatmul.f32.gmra.mxu2 %v4715_v55  ;;  %v908_v46 = vmul.f32 %v3764_v6, %v891_v58  ;;  %v990_v2 = vmul.f32 0.5, %v974_v52  ;;  %v393_v38 = vmul.f32 %v377_v25, %v377_v25  ;;  %v476_v59 = vsub.f32 %v4686_v62, %v3658_v13 }
  0xc0   : > { %6922 = vst [vmem:[#allocation108_spill] sm:$0xff] %v4721_v17  ;;  %v644_v14 = vmax.f32 %v545_v20, %v4705_v28  ;;  %v4730_v42 = vsub.f32 %v3754_v63, %v809_v48  ;;  %v326_v4 = vmul.f32 0.5, %v310_v61  ;;  %v575_v40 = vsub.f32 %v4686_v62, %v3671_v18 }
  0xc1   : > { %v4735_v23 = vsub.f32 %v3771_v15, %v908_v46  ;;  %v1007_v50 = vmul.f32 %v3789_v32, %v990_v2  ;;  %v409_v58 = vmul.f32 0.5, %v393_v38  ;;  %v492_v52 = vmul.f32 %v476_v59, %v476_v59 }
  0xc2   : > { %6923 = vst [vmem:[#allocation109_spill] sm:$0xff] %v4730_v42  ;;  %v743_v25 = vmax.f32 %v644_v14, %v4721_v17  ;;  %v343_v10 = vmul.f32 %v3666_v16, %v326_v4  ;;  %v591_v30 = vmul.f32 %v575_v40, %v575_v40  ;;  %v674_v20 = vsub.f32 %v4686_v62, %v3682_v22 }
  0xc3   : > { %6924 = vst [vmem:[#allocation110_spill] sm:$0xff] %v4735_v23  ;;  %v4743_v48 = vsub.f32 %v3793_v35, %v1007_v50  ;;  %v426_v61 = vmul.f32 %v3674_v19, %v409_v58  ;;  %v508_v55 = vmul.f32 0.5, %v492_v52  ;;  %v773_v46 = vsub.f32 %v4686_v62, %v3698_v31 }
  0xc4   : > { %v842_v2 = vmax.f32 %v743_v25, %v4730_v42  ;;  %v4750_v38 = vsub.f32 %v3652_v11, %v343_v10  ;;  %v607_v59 = vmul.f32 0.5, %v591_v30  ;;  %v690_v14 = vmul.f32 %v674_v20, %v674_v20 }
  0xc5   : > { %6925 = vst [vmem:[#allocation111_spill] sm:$0xff] %v4743_v48  ;;  %v4753_v4 = vsub.f32 %v3655_v12, %v426_v61  ;;  %v525_v40 = vmul.f32 %v3679_v21, %v508_v55  ;;  %v789_v50 = vmul.f32 %v773_v46, %v773_v46  ;;  %v872_v58 = vsub.f32 %v4686_v62, %v3721_v49 }
  0xc6   : > { %6926 = vst [vmem:[#allocation112_spill] sm:$0xff] %v4750_v38  ;;  %v941_v52 = vmax.f32 %v842_v2, %v4735_v23  ;;  %v624_v17 = vmul.f32 %v3693_v29, %v607_v59  ;;  %v706_v28 = vmul.f32 0.5, %v690_v14  ;;  %v971_v10 = vsub.f32 %v4686_v62, %v3757_v0 }
  0xc7   : > { %6927 = vst [vmem:[#allocation113_spill] sm:$0xff] %v4753_v4  ;;  %v459_v30 = vmax.f32 %v4750_v38, %v4753_v4  ;;  %v4765_v25 = vsub.f32 %v3688_v26, %v525_v40  ;;  %v805_v20 = vmul.f32 0.5, %v789_v50  ;;  %v888_v55 = vmul.f32 %v872_v58, %v872_v58 }
  0xc8   : > { %v4768_v61 = vmax.f32 %v941_v52, %v4743_v48  ;;  %v4771_v46 = vsub.f32 %v3704_v36, %v624_v17  ;;  %v723_v2 = vmul.f32 %v3707_v39, %v706_v28  ;;  %v987_v59 = vmul.f32 %v971_v10, %v971_v10 }
  0xc9   : > { %6928 = vst [vmem:[#allocation114_spill] sm:$0xff] %v4765_v25  ;;  %v558_v14 = vmax.f32 %v459_v30, %v4765_v25  ;;  %v822_v62 = vmul.f32 %v3734_v54, %v805_v20  ;;  %v904_v23 = vmul.f32 0.5, %v888_v55  ;;  %v1054_v40 = vsub.f32 %v4150_v3, %v4218_v33 }
  0xca   : > { %6929 = vst [vmem:[#allocation115_spill] sm:$0xff] %v4768_v61  ;;  %2724 = vmatmul.f32.gmra.mxu0 %v4768_v61  ;;  %v4780_v50 = vsub.f32 %v3717_v45, %v723_v2  ;;  %v1003_v58 = vmul.f32 0.5, %v987_v59  ;;  %v1102_v17 = vsub.f32 %v4153_v27, %v4218_v33  ;;  %v1150_v28 = vsub.f32 %v4158_v56, %v4218_v33  ;;  %v274_v56 = vld [vmem:[%s6607_s4] sm:$0xff] }
  0xcb   : > { %6930 = vst [vmem:[#allocation116_spill] sm:$0xff] %v4771_v46  ;;  %v657_v52 = vmax.f32 %v558_v14, %v4771_v46  ;;  %v4788_v10 = vsub.f32 %v3754_v63, %v822_v62  ;;  %v921_v30 = vmul.f32 %v3764_v6, %v904_v23  ;;  %v1070_v3 = vmul.f32 1.442695, %v1054_v40 }
  0xcc   : > { %6931 = vst [vmem:[#allocation117_spill] sm:$0xff] %v4780_v50  ;;  %v1020_v20 = vmul.f32 %v3789_v32, %v1003_v58  ;;  %v1118_v55 = vmul.f32 1.442695, %v1102_v17  ;;  %v1166_v2 = vmul.f32 1.442695, %v1150_v28  ;;  %v1198_v59 = vsub.f32 %v4161_v47, %v4218_v33 }
  0xcd   : > { %6932 = vst [vmem:[#allocation118_spill] sm:$0xff] %v4788_v10  ;;  %v756_v27 = vmax.f32 %v657_v52, %v4780_v50  ;;  %v4796_v25 = vsub.f32 %v3771_v15, %v921_v30  ;;  %3167 = vpow2.f32 %v1070_v3  ;;  %v1246_v23 = vsub.f32 %v4176_v41, %v4218_v33 }
  0xce   : > { %v4804_v14 = vsub.f32 %v3793_v35, %v1020_v20  ;;  %3169 = vpow2.f32 %v1118_v55  ;;  %v1214_v62 = vmul.f32 1.442695, %v1198_v59  ;;  %v1294_v47 = vsub.f32 %v4181_v7, %v4218_v33  ;;  %v275_v7 = vld [vmem:[%s6607_s4 + $0x8] sm:$0xff] }
  0xcf   : > { %6933 = vst [vmem:[#allocation119_spill] sm:$0xff] %v4796_v25  ;;  %v855_v40 = vmax.f32 %v756_v27, %v4788_v10  ;;  %3171 = vpow2.f32 %v1166_v2  ;;  %v1262_v58 = vmul.f32 1.442695, %v1246_v23  ;;  %v1342_v17 = vsub.f32 %v4186_v43, %v4218_v33 }
  0xd0   : > { %6934 = vst [vmem:[#allocation120_spill] sm:$0xff] %v4804_v14  ;;  %3173 = vpow2.f32 %v1214_v62  ;;  %v1310_v28 = vmul.f32 1.442695, %v1294_v47  ;;  %v1390_v41 = vsub.f32 %v4197_v24, %v4218_v33  ;;  %v4813_v52 = vperm.slane %v274_v56, 0  ;;  %v2670_v24 = vld [vmem:[%s6608_s5 + $0x180] sm:$0xff] }
  0xd1   : > { %v954_v30 = vmax.f32 %v855_v40, %v4796_v25  ;;  %3175 = vpow2.f32 %v1262_v58  ;;  %v1358_v3 = vmul.f32 1.442695, %v1342_v17  ;;  %v4816_v20 = vperm.slane %v274_v56, 1  ;;  %v2690_v33 = vld [vmem:[%s6608_s5 + $0x220] sm:$0xff]  ;;  %2912 = vmatpush.msrb.mxu3 %v2670_v24 }
  0xd2   : > { %3177 = vpow2.f32 %v1310_v28  ;;  %v1406_v55 = vmul.f32 1.442695, %v1390_v41  ;;  %v4821_v43 = vperm.slane %v274_v56, 2  ;;  %v4823_v2 = vperm.slane %v274_v56, 3  ;;  %2973 = vmatpush.msrb.mxu0 %v2690_v33 }
  0xd3   : > { %6935 = vst [vmem:[#allocation121_spill] sm:$0xff] %v4816_v20  ;;  %v4831_v59 = vpop.eup %3167  ;;  %v4834_v27 = vmax.f32 %v954_v30, %v4804_v14  ;;  %3179 = vpow2.f32 %v1358_v3  ;;  %v4836_v23 = vperm.slane %v274_v56, 4  ;;  %v4838_v62 = vperm.slane %v274_v56, 5 }
  0xd4   : > { %6936 = vst [vmem:[#allocation122_spill] sm:$0xff] %v4821_v43  ;;  %v4840_v47 = vpop.eup %3169  ;;  %3181 = vpow2.f32 %v1406_v55  ;;  %v1439_v40 = vmul.f32 %v4831_v59, %v4813_v52  ;;  %v4844_v58 = vperm.slane %v274_v56, 6  ;;  %v4846_v17 = vperm.slane %v274_v56, 7 }
  0xd5   : > { %6937 = vst [vmem:[#allocation123_spill] sm:$0xff] %v4823_v2  ;;  %v4848_v28 = vpop.eup %3171  ;;  %2763 = vmatmul.f32.gmra.mxu3 %v4834_v27  ;;  %v1456_v41 = vmul.f32 %v4840_v47, %v4816_v20  ;;  %v4853_v30 = vperm.slane %v275_v7, 0  ;;  %v4855_v3 = vperm.slane %v275_v7, 1  ;;  %v4857_v55 = vperm.slane %v275_v7, 2 }
  0xd6   : > { %6938 = vst [vmem:[#allocation124_spill] sm:$0xff] %v4834_v27  ;;  %v4859_v24 = vpop.eup %3173  ;;  %v1489_v56 = vmul.f32 %v4848_v28, %v4821_v43  ;;  %v4863_v33 = vperm.slane %v275_v7, 3  ;;  %v4865_v14 = vperm.slane %v275_v7, 4  ;;  %v4867_v25 = vperm.slane %v275_v7, 5  ;;  %v4878_v27 = vld [vmem:[%s3635_s17 + $0x18] sm:$0xff] }
  0xd7   : > { %6939 = vst [vmem:[#allocation125_spill] sm:$0xff] %v4836_v23  ;;  %v4869_v10 = vpop.eup %3175  ;;  %v1472_v50 = vadd.f32 %v1456_v41, %v1439_v40  ;;  %v1522_v46 = vmul.f32 %v4859_v24, %v4823_v2  ;;  %v1735_v4 = vmul.f32 %v4831_v59, %v4853_v30  ;;  %v1752_v38 = vmul.f32 %v4840_v47, %v4855_v3 }
  0xd8   : > { %6940 = vst [vmem:[#allocation126_spill] sm:$0xff] %v4838_v62  ;;  %v4880_v48 = vpop.eup %3177  ;;  %v1555_v42 = vmul.f32 %v4869_v10, %v4836_v23  ;;  %v1785_v5 = vmul.f32 %v4848_v28, %v4857_v55  ;;  %v1818_v40 = vmul.f32 %v4859_v24, %v4863_v33  ;;  %v1851_v41 = vmul.f32 %v4869_v10, %v4865_v14 }
  0xd9   : > { %6941 = vst [vmem:[#allocation127_spill] sm:$0xff] %v4844_v58  ;;  %v4890_v60 = vpop.eup %3179  ;;  %v1505_v51 = vadd.f32 %v1489_v56, %v1472_v50  ;;  %v1588_v61 = vmul.f32 %v4880_v48, %v4838_v62  ;;  %v1768_v2 = vadd.f32 %v1752_v38, %v1735_v4  ;;  %v1884_v43 = vmul.f32 %v4880_v48, %v4867_v25 }
  0xda   : > { %6942 = vst [vmem:[#allocation128_spill] sm:$0xff] %v4846_v17  ;;  %v4896_v23 = vpop.eup %3181  ;;  %v365_v4 = vsub.f32 %v4878_v27, %v3646_v9  ;;  %v662_v9 = vsub.f32 %v4878_v27, %v3682_v22 }
  0xdb   : > { %6943 = vst [vmem:[#allocation129_spill] sm:$0xff] %v4853_v30  ;;  %v1538_v50 = vadd.f32 %v1522_v46, %v1505_v51  ;;  %v1654_v56 = vmul.f32 %v4896_v23, %v4846_v17  ;;  %v1801_v38 = vadd.f32 %v1785_v5, %v1768_v2  ;;  %v563_v46 = vsub.f32 %v4878_v27, %v3671_v18 }
  0xdc   : > { %6944 = vst [vmem:[#allocation130_spill] sm:$0xff] %v4855_v3  ;;  %v4900_v3 = vperm.slane %v275_v7, 6  ;;  %v381_v51 = vmul.f32 %v365_v4, %v365_v4  ;;  %v761_v17 = vsub.f32 %v4878_v27, %v3698_v31 }
  0xdd   : > { %6945 = vst [vmem:[#allocation131_spill] sm:$0xff] %v4857_v55  ;;  %v1621_v55 = vmul.f32 %v4890_v60, %v4844_v58  ;;  %v1571_v20 = vadd.f32 %v1555_v42, %v1538_v50  ;;  %v579_v30 = vmul.f32 %v563_v46, %v563_v46 }
  0xde   : > { %6946 = vst [vmem:[#allocation132_spill] sm:$0xff] %v4863_v33  ;;  %v4902_v33 = vperm.slane %v275_v7, 7  ;;  %v464_v7 = vsub.f32 %v4878_v27, %v3658_v13  ;;  %v777_v50 = vmul.f32 %v761_v17, %v761_v17 }
  0xdf   : > { %6947 = vst [vmem:[#allocation133_spill] sm:$0xff] %v4865_v14  ;;  %v282_v14 = vsub.f32 %v4878_v27, %v3643_v8  ;;  %v1834_v8 = vadd.f32 %v1818_v40, %v1801_v38  ;;  %v678_v40 = vmul.f32 %v662_v9, %v662_v9 }
  0xe0   : > { %6948 = vst [vmem:[#allocation134_spill] sm:$0xff] %v4867_v25  ;;  %v1917_v25 = vmul.f32 %v4890_v60, %v4900_v3  ;;  %v1950_v58 = vmul.f32 %v4896_v23, %v4902_v33  ;;  %v480_v2 = vmul.f32 %v464_v7, %v464_v7 }
  0xe1   : > { %6949 = vst [vmem:[#allocation135_spill] sm:$0xff] %v4900_v3  ;;  %v298_v62 = vmul.f32 %v282_v14, %v282_v14  ;;  %v1604_v3 = vadd.f32 %v1588_v61, %v1571_v20  ;;  %v397_v14 = vmul.f32 0.5, %v381_v51  ;;  %v694_v31 = vmul.f32 0.5, %v678_v40 }
  0xe2   : > { %6950 = vst [vmem:[#allocation136_spill] sm:$0xff] %v4902_v33  ;;  %v1867_v33 = vadd.f32 %v1851_v41, %v1834_v8  ;;  %v496_v42 = vmul.f32 0.5, %v480_v2  ;;  %v793_v61 = vmul.f32 0.5, %v777_v50 }
  0xe3   : > { %v314_v5 = vmul.f32 0.5, %v298_v62  ;;  %v1637_v38 = vadd.f32 %v1621_v55, %v1604_v3  ;;  %v414_v18 = vmul.f32 %v3674_v19, %v397_v14  ;;  %v595_v62 = vmul.f32 0.5, %v579_v30 }
  0xe4   : > { %v1900_v4 = vadd.f32 %v1884_v43, %v1867_v33  ;;  %v513_v22 = vmul.f32 %v3679_v21, %v496_v42  ;;  %v711_v19 = vmul.f32 %v3707_v39, %v694_v31  ;;  %v810_v43 = vmul.f32 %v3734_v54, %v793_v61  ;;  %v276_v21 = vld [vmem:[%s6607_s4 + $0x10] sm:$0xff] }
  0xe5   : > { %v331_v13 = vmul.f32 %v3666_v16, %v314_v5  ;;  %v1670_v20 = vadd.f32 %v1654_v56, %v1637_v38  ;;  %v4929_v8 = vsub.f32 %v3655_v12, %v414_v18  ;;  %v612_v16 = vmul.f32 %v3693_v29, %v595_v62  ;;  %v2688_v39 = vld [vmem:[%s6608_s5 + $0x210] sm:$0xff]  ;;  %v2687_v56 = vld [vmem:[%s6608_s5 + $0x208] sm:$0xff] }
  0xe6   : > { %v1933_v41 = vadd.f32 %v1917_v25, %v1900_v4  ;;  %v4933_v17 = vsub.f32 %v3688_v26, %v513_v22  ;;  %v2689_v26 = vld [vmem:[%s6608_s5 + $0x218] sm:$0xff]  ;;  %v4957_v54 = vsub.f32 %v3754_v63, %v810_v43  ;;  %v959_v3 = vsub.f32 %v4878_v27, %v3757_v0 }
  0xe7   : > { %v4925_v7 = vsub.f32 %v3652_v11, %v331_v13  ;;  %6952 = vst [vmem:[#allocation138_spill] sm:$0xff] %v4929_v8  ;;  %v860_v11 = vsub.f32 %v4878_v27, %v3721_v49  ;;  %v1686_v25 = vmax.f32 %v1670_v20, 1.1754944e-38  ;;  %v4945_v29 = vsub.f32 %v3704_v36, %v612_v16  ;;  %2974 = vmatpush.msrb.mxu0 %v2689_v26 }
  0xe8   : > { %6953 = vst [vmem:[#allocation139_spill] sm:$0xff] %v4933_v17  ;;  %v1966_v30 = vadd.f32 %v1950_v58, %v1933_v41  ;;  %v4954_v49 = vsub.f32 %v3717_v45, %v711_v19  ;;  %v4962_v33 = vperm.slane %v276_v21, 0  ;;  %v975_v51 = vmul.f32 %v959_v3, %v959_v3 }
  0xe9   : > { %6951 = vst [vmem:[#allocation137_spill] sm:$0xff] %v4925_v7  ;;  %v447_v12 = vmax.f32 %v4925_v7, %v4929_v8  ;;  %v876_v58 = vmul.f32 %v860_v11, %v860_v11  ;;  %3183 = vlog2.f32 %v1686_v25  ;;  %v4967_v46 = vperm.slane %v276_v21, 1  ;;  %2975 = vmatpush.msrb.mxu0 %v2688_v39  ;;  %v6980_v8 = vld [vmem:[#allocation135_spill] sm:$0xff] }
  0xea   : > { %6954 = vst [vmem:[#allocation140_spill] sm:$0xff] %v4945_v29  ;;  %v1982_v36 = vmax.f32 %v1966_v30, 1.1754944e-38  ;;  %v4969_v63 = vperm.slane %v276_v21, 2  ;;  %v2031_v27 = vmul.f32 %v4831_v59, %v4962_v33  ;;  %v4974_v5 = vperm.slane %v276_v21, 3 }
  0xeb   : > { %6955 = vst [vmem:[#allocation141_spill] sm:$0xff] %v4954_v49  ;;  %v546_v55 = vmax.f32 %v447_v12, %v4933_v17  ;;  %v892_v45 = vmul.f32 0.5, %v876_v58  ;;  %v991_v9 = vmul.f32 0.5, %v975_v51  ;;  %v2048_v14 = vmul.f32 %v4840_v47, %v4967_v46  ;;  %2976 = vmatpush.msrb.mxu0 %v2687_v56 }
  0xec   : > { %6956 = vst [vmem:[#allocation142_spill] sm:$0xff] %v4957_v54  ;;  %3185 = vlog2.f32 %v1982_v36  ;;  %v2081_v13 = vmul.f32 %v4848_v28, %v4969_v63  ;;  %v2114_v40 = vmul.f32 %v4859_v24, %v4974_v5  ;;  %v4984_v50 = vperm.slane %v276_v21, 4 }
  0xed   : > { %v645_v0 = vmax.f32 %v546_v55, %v4945_v29  ;;  %v909_v2 = vmul.f32 %v3764_v6, %v892_v45  ;;  %v4986_v38 = vperm.slane %v276_v21, 5  ;;  %v1008_v6 = vmul.f32 %v3789_v32, %v991_v9  ;;  %v6964_v45 = vld [vmem:[#allocation74_spill] sm:$0xff]  ;;  %v6979_v29 = vld [vmem:[#allocation127_spill] sm:$0xff] }
  0xee   : > { %6957 = vst [vmem:[#allocation143_spill] sm:$0xff] %v4984_v50  ;;  %v2064_v18 = vadd.f32 %v2048_v14, %v2031_v27  ;;  %v4992_v62 = vperm.slane %v276_v21, 6  ;;  %v2147_v61 = vmul.f32 %v4869_v10, %v4984_v50  ;;  %v4999_v41 = vperm.slane %v276_v21, 7 }
  0xef   : > { %v744_v42 = vmax.f32 %v645_v0, %v4954_v49  ;;  %6958 = vst [vmem:[#allocation144_spill] sm:$0xff] %v4986_v38  ;;  %v4989_v4 = vsub.f32 %v3771_v15, %v909_v2  ;;  %v3184_v22 = vpop.eup %3183  ;;  %v2180_v20 = vmul.f32 %v4880_v48, %v4986_v38  ;;  %v5002_v15 = vsub.f32 %v3793_v35, %v1008_v6  ;;  %v6965_v0 = vld [vmem:[#allocation75_spill] sm:$0xff] }
  0xf0   : > { %6960 = vst [vmem:[#allocation146_spill] sm:$0xff] %v4992_v62  ;;  %v1703_v16 = vmul.f32 0.6931472, %v3184_v22  ;;  %v2097_v19 = vadd.f32 %v2081_v13, %v2064_v18  ;;  %v2213_v32 = vmul.f32 %v4890_v60, %v4992_v62  ;;  %v2246_v25 = vmul.f32 %v4896_v23, %v4999_v41 }
  0xf1   : > { %6959 = vst [vmem:[#allocation145_spill] sm:$0xff] %v4989_v4  ;;  %v843_v31 = vmax.f32 %v744_v42, %v4957_v54  ;;  %v1055_v30 = vsub.f32 %v4392_v34, %v4486_v57  ;;  %v1103_v21 = vsub.f32 %v4403_v44, %v4486_v57  ;;  %v1151_v26 = vsub.f32 %v4429_v53, %v4486_v57  ;;  %v5025_v44 = vld [vmem:[%s6607_s4 + $0x18] sm:$0xff] }
  0xf2   : > { %6961 = vst [vmem:[#allocation147_spill] sm:$0xff] %v4999_v41  ;;  %v3186_v43 = vpop.eup %3185  ;;  %2783 = vmatmul.f32.vlgmr.msrb.gmra.mxu1 %v1703_v16  ;;  %v2130_v35 = vadd.f32 %v2114_v40, %v2097_v19  ;;  %v1199_v39 = vsub.f32 %v4438_v1, %v4486_v57  ;;  %v1247_v34 = vsub.f32 %v4444_v37, %v4486_v57  ;;  %v6966_v37 = vld [vmem:[#allocation76_spill] sm:$0xff]  ;;  %v5035_v13 = vperm.slane %v5025_v44, 0 }
  0xf3   : > { %6962 = vst [vmem:[#allocation148_spill] sm:$0xff] %v5002_v15  ;;  %v942_v11 = vmax.f32 %v843_v31, %v4989_v4  ;;  %v1999_v12 = vmul.f32 0.6931472, %v3186_v43  ;;  %v1072_v3 = vmul.f32 1.442695, %v1055_v30  ;;  %v1295_v1 = vsub.f32 %v6964_v45, %v4486_v57  ;;  %v6971_v45 = vld [vmem:[#allocation131_spill] sm:$0xff] }
  0xf4   : > { %v1120_v36 = vmul.f32 1.442695, %v1103_v21  ;;  %v2163_v55 = vadd.f32 %v2147_v61, %v2130_v35  ;;  %v1168_v56 = vmul.f32 1.442695, %v1151_v26  ;;  %v1216_v53 = vmul.f32 1.442695, %v1199_v39 }
  0xf5   : > { %v5018_v58 = vmax.f32 %v942_v11, %v5002_v15  ;;  %2848 = vmatmul.f32.vlgmr.msrb.gmra.mxu2 %v1999_v12  ;;  %3187 = vpow2.f32 %v1072_v3  ;;  %v1264_v51 = vmul.f32 1.442695, %v1247_v34  ;;  %v1343_v27 = vsub.f32 %v6965_v0, %v4486_v57  ;;  %v6967_v12 = vld [vmem:[#allocation129_spill] sm:$0xff]  ;;  %v6976_v15 = vld [vmem:[#allocation126_spill] sm:$0xff] }
  0xf6   : > { %v1391_v2 = vsub.f32 %v6966_v37, %v4486_v57  ;;  %v2196_v9 = vadd.f32 %v2180_v20, %v2163_v55  ;;  %3189 = vpow2.f32 %v1120_v36  ;;  %v1312_v14 = vmul.f32 1.442695, %v1295_v1  ;;  %v2686_v57 = vld [vmem:[%s6608_s5 + $0x200] sm:$0xff]  ;;  %v6968_v39 = vld [vmem:[#allocation121_spill] sm:$0xff]  ;;  %v6972_v37 = vld [vmem:[#allocation123_spill] sm:$0xff] }
  0xf7   : > { %6963 = vst [vmem:[#allocation149_spill] sm:$0xff] %v5018_v58  ;;  %2727 = vmatmul.f32.gmra.mxu0 %v5018_v58  ;;  %3191 = vpow2.f32 %v1168_v56  ;;  %v1360_v42 = vmul.f32 1.442695, %v1343_v27  ;;  %v5038_v6 = vperm.slane %v5025_v44, 1  ;;  %v2327_v22 = vmul.f32 %v4831_v59, %v5035_v13  ;;  %v6970_v56 = vld [vmem:[#allocation122_spill] sm:$0xff] }
  0xf8   : > { %v1408_v40 = vmul.f32 1.442695, %v1391_v2  ;;  %v2229_v18 = vadd.f32 %v2213_v32, %v2196_v9  ;;  %3193 = vpow2.f32 %v1216_v53  ;;  %v5043_v31 = vperm.slane %v5025_v44, 2  ;;  %2977 = vmatpush.msrb.mxu0 %v2686_v57  ;;  %v6975_v57 = vld [vmem:[#allocation133_spill] sm:$0xff]  ;;  %v6977_v4 = vld [vmem:[#allocation134_spill] sm:$0xff] }
  0xf9   : > { %3195 = vpow2.f32 %v1264_v51  ;;  %v2344_v61 = vmul.f32 %v4840_v47, %v5038_v6  ;;  %v5051_v20 = vperm.slane %v5025_v44, 3  ;;  %v5054_v16 = vperm.slane %v5025_v44, 4 }
  0xfa   : > { %v2262_v19 = vadd.f32 %v2246_v25, %v2229_v18  ;;  %3197 = vpow2.f32 %v1312_v14  ;;  %v2377_v59 = vmul.f32 %v4848_v28, %v5043_v31  ;;  %v5059_v32 = vperm.slane %v5025_v44, 5  ;;  %v6973_v14 = vld [vmem:[#allocation132_spill] sm:$0xff]  ;;  %v6974_v18 = vld [vmem:[#allocation125_spill] sm:$0xff] }
  0xfb   : > { %v5061_v43 = vpop.eup %3187  ;;  %3199 = vpow2.f32 %v1360_v42  ;;  %v2360_v11 = vadd.f32 %v2344_v61, %v2327_v22  ;;  %v2410_v47 = vmul.f32 %v4859_v24, %v5051_v20  ;;  %v5067_v30 = vmul.f32 %v4869_v10, %v5054_v16  ;;  %v6969_v24 = vld [vmem:[#allocation130_spill] sm:$0xff] }
  0xfc   : > { %v5069_v25 = vpop.eup %3189  ;;  %v2278_v21 = vmax.f32 %v2262_v19, 1.1754944e-38  ;;  %3201 = vpow2.f32 %v1408_v40  ;;  %v1440_v28 = vmul.f32 %v5061_v43, %v4813_v52  ;;  %v1736_v35 = vmul.f32 %v5061_v43, %v6967_v12 }
  0xfd   : > { %v5075_v26 = vpop.eup %3191  ;;  %v1457_v3 = vmul.f32 %v5069_v25, %v6968_v39  ;;  %v1753_v36 = vmul.f32 %v5069_v25, %v6969_v24  ;;  %v2032_v10 = vmul.f32 %v5061_v43, %v4962_v33  ;;  %v2049_v34 = vmul.f32 %v5069_v25, %v4967_v46 }
  0xfe   : > { %v5085_v55 = vpop.eup %3193  ;;  %3203 = vlog2.f32 %v2278_v21  ;;  %v1490_v53 = vmul.f32 %v5075_v26, %v6970_v56  ;;  %v1786_v1 = vmul.f32 %v5075_v26, %v6971_v45  ;;  %v2082_v51 = vmul.f32 %v5075_v26, %v4969_v63 }
  0xff   : > { %v5093_v0 = vpop.eup %3195  ;;  %v1473_v27 = vadd.f32 %v1457_v3, %v1440_v28  ;;  %v1523_v2 = vmul.f32 %v5085_v55, %v6972_v37  ;;  %v1769_v9 = vadd.f32 %v1753_v36, %v1736_v35  ;;  %v1819_v42 = vmul.f32 %v5085_v55, %v6973_v14 }
 0x100   : > { %v5099_v40 = vpop.eup %3197  ;;  %v1556_v22 = vmul.f32 %v5093_v0, %v6974_v18  ;;  %v1852_v61 = vmul.f32 %v5093_v0, %v6975_v57  ;;  %v2065_v19 = vadd.f32 %v2049_v34, %v2032_v10  ;;  %v2115_v21 = vmul.f32 %v5085_v55, %v4974_v5 }
 0x101   : > { %v5107_v28 = vpop.eup %3199  ;;  %v1506_v3 = vadd.f32 %v1490_v53, %v1473_v27  ;;  %v1589_v35 = vmul.f32 %v5099_v40, %v6976_v15  ;;  %v1802_v36 = vadd.f32 %v1786_v1, %v1769_v9  ;;  %v1885_v54 = vmul.f32 %v5099_v40, %v6977_v4  ;;  %v6981_v27 = vld [vmem:[#allocation128_spill] sm:$0xff] }
 0x102   : > { %v5113_v49 = vpop.eup %3201  ;;  %v1622_v17 = vmul.f32 %v5107_v28, %v6979_v29  ;;  %v1918_v10 = vmul.f32 %v5107_v28, %v6980_v8  ;;  %v2098_v34 = vadd.f32 %v2082_v51, %v2065_v19  ;;  %v2148_v7 = vmul.f32 %v5093_v0, %v4984_v50  ;;  %v6982_v9 = vld [vmem:[#allocation136_spill] sm:$0xff] }
 0x103   : > { %6978 = vst [vmem:[#allocation74_spill] sm:$0xff] %v5113_v49  ;;  %v1539_v53 = vadd.f32 %v1523_v2, %v1506_v3  ;;  %v1655_v58 = vmul.f32 %v5113_v49, %v6981_v27  ;;  %v1835_v1 = vadd.f32 %v1819_v42, %v1802_v36  ;;  %v1951_v4 = vmul.f32 %v5113_v49, %v6982_v9  ;;  %v6984_v9 = vld [vmem:[#allocation115_spill] sm:$0xff] }
 0x104   : > { %v3204_v15 = vpop.eup %3203  ;;  %v2131_v57 = vadd.f32 %v2115_v21, %v2098_v34  ;;  %v2181_v29 = vmul.f32 %v5099_v40, %v4986_v38  ;;  %v2214_v8 = vmul.f32 %v5107_v28, %v4992_v62  ;;  %v2247_v51 = vmul.f32 %v5113_v49, %v4999_v41  ;;  %v6985_v49 = vld [vmem:[#allocation103_spill] sm:$0xff] }
 0x105   : > { %v2295_v19 = vmul.f32 0.6931472, %v3204_v15  ;;  %v1572_v2 = vadd.f32 %v1556_v22, %v1539_v53  ;;  %v1868_v3 = vadd.f32 %v1852_v61, %v1835_v1  ;;  %v2393_v50 = vadd.f32 %v2377_v59, %v2360_v11  ;;  %v6986_v59 = vld [vmem:[#allocation104_spill] sm:$0xff] }
 0x106   : > { %v2164_v27 = vadd.f32 %v2148_v7, %v2131_v57  ;;  %v2476_v42 = vmul.f32 %v4880_v48, %v5059_v32  ;;  %v5134_v36 = vperm.slane %v5025_v44, 6  ;;  %v5137_v21 = vperm.slane %v5025_v44, 7 }
 0x107   : > { %2913 = vmatmul.f32.vlgmr.msrb.gmra.mxu3 %v2295_v19  ;;  %v1605_v34 = vadd.f32 %v1589_v35, %v1572_v2  ;;  %v1901_v62 = vadd.f32 %v1885_v54, %v1868_v3  ;;  %v2426_v38 = vadd.f32 %v2410_v47, %v2393_v50  ;;  %v1056_v15 = vsub.f32 %v6985_v49, %v6984_v9  ;;  %v6987_v47 = vld [vmem:[#allocation105_spill] sm:$0xff] }
 0x108   : > { %6983 = vst [vmem:[#allocation75_spill] sm:$0xff] %v5137_v21  ;;  %v2197_v22 = vadd.f32 %v2181_v29, %v2164_v27  ;;  %v2509_v7 = vmul.f32 %v4890_v60, %v5134_v36  ;;  %v2542_v48 = vmul.f32 %v4896_v23, %v5137_v21  ;;  %v1104_v11 = vsub.f32 %v6986_v59, %v6984_v9  ;;  %v6988_v29 = vld [vmem:[#allocation106_spill] sm:$0xff]  ;;  %v6990_v3 = vld [vmem:[#allocation109_spill] sm:$0xff] }
 0x109   : > { %v1638_v57 = vadd.f32 %v1622_v17, %v1605_v34  ;;  %v1934_v44 = vadd.f32 %v1918_v10, %v1901_v62  ;;  %v2459_v61 = vadd.f32 %v5067_v30, %v2426_v38  ;;  %v1074_v35 = vmul.f32 1.442695, %v1056_v15  ;;  %v6992_v15 = vld [vmem:[#allocation111_spill] sm:$0xff] }
 0x10a   : > { %v2230_v54 = vadd.f32 %v2214_v8, %v2197_v22  ;;  %v1122_v50 = vmul.f32 1.442695, %v1104_v11  ;;  %v1152_v49 = vsub.f32 %v6987_v47, %v6984_v9  ;;  %v1200_v53 = vsub.f32 %v6988_v29, %v6984_v9  ;;  %v6989_v8 = vld [vmem:[#allocation108_spill] sm:$0xff] }
 0x10b   : > { %v1671_v60 = vadd.f32 %v1655_v58, %v1638_v57  ;;  %v1967_v27 = vadd.f32 %v1951_v4, %v1934_v44  ;;  %v2492_v1 = vadd.f32 %v2476_v42, %v2459_v61  ;;  %3205 = vpow2.f32 %v1074_v35  ;;  %v6991_v58 = vld [vmem:[#allocation110_spill] sm:$0xff] }
 0x10c   : > { %v2263_v23 = vadd.f32 %v2247_v51, %v2230_v54  ;;  %3207 = vpow2.f32 %v1122_v50  ;;  %v1170_v19 = vmul.f32 1.442695, %v1152_v49  ;;  %v1218_v17 = vmul.f32 1.442695, %v1200_v53 }
 0x10d   : > { %v1687_v62 = vmax.f32 %v1671_v60, 1.1754944e-38  ;;  %v1983_v10 = vmax.f32 %v1967_v27, 1.1754944e-38  ;;  %v2525_v38 = vadd.f32 %v2509_v7, %v2492_v1  ;;  %v1248_v30 = vsub.f32 %v6989_v8, %v6984_v9 }
 0x10e   : > { %v2279_v2 = vmax.f32 %v2263_v23, 1.1754944e-38  ;;  %3209 = vpow2.f32 %v1170_v19  ;;  %v1296_v34 = vsub.f32 %v6990_v3, %v6984_v9  ;;  %v1344_v4 = vsub.f32 %v6991_v58, %v6984_v9 }
 0x10f   : > { %3211 = vlog2.f32 %v1687_v62  ;;  %v2558_v42 = vadd.f32 %v2542_v48, %v2525_v38  ;;  %v1266_v51 = vmul.f32 1.442695, %v1248_v30  ;;  %v1392_v22 = vsub.f32 %v6992_v15, %v6984_v9 }
 0x110   : > { %3213 = vlog2.f32 %v1983_v10  ;;  %v1314_v59 = vmul.f32 1.442695, %v1296_v34  ;;  %v1362_v7 = vmul.f32 1.442695, %v1344_v4  ;;  %v2328_v11 = vmul.f32 %v5061_v43, %v5035_v13 }
 0x111   : > { %v5162_v57 = vpop.eup %3205  ;;  %3215 = vlog2.f32 %v2279_v2  ;;  %v2574_v44 = vmax.f32 %v2558_v42, 1.1754944e-38  ;;  %v1410_v61 = vmul.f32 1.442695, %v1392_v22  ;;  %v2345_v35 = vmul.f32 %v5069_v25, %v5038_v6 }
 0x112   : > { %v5166_v54 = vpop.eup %3207  ;;  %3217 = vpow2.f32 %v1218_v17  ;;  %v1441_v9 = vmul.f32 %v5162_v57, %v4813_v52  ;;  %v1737_v48 = vmul.f32 %v5162_v57, %v6967_v12  ;;  %v2033_v43 = vmul.f32 %v5162_v57, %v4962_v33 }
 0x113   : > { %3219 = vlog2.f32 %v2574_v44  ;;  %v1458_v50 = vmul.f32 %v5166_v54, %v6968_v39  ;;  %v1754_v47 = vmul.f32 %v5166_v54, %v6969_v24  ;;  %v2050_v25 = vmul.f32 %v5166_v54, %v4967_v46 }
 0x114   : > { %v5180_v49 = vpop.eup %3209  ;;  %3221 = vpow2.f32 %v1266_v51  ;;  %v2361_v29 = vadd.f32 %v2345_v35, %v2328_v11  ;;  %v2378_v53 = vmul.f32 %v5075_v26, %v5043_v31  ;;  %v2411_v60 = vmul.f32 %v5085_v55, %v5051_v20 }
 0x115   : > { %v3212_v27 = vpop.eup %3211  ;;  %3223 = vpow2.f32 %v1314_v59  ;;  %v1474_v1 = vadd.f32 %v1458_v50, %v1441_v9  ;;  %v1491_v23 = vmul.f32 %v5180_v49, %v6970_v56  ;;  %v1770_v19 = vadd.f32 %v1754_v47, %v1737_v48  ;;  %v6993_v50 = vld [vmem:[#allocation133_spill] sm:$0xff] }
 0x116   : > { %v3214_v17 = vpop.eup %3213  ;;  %v1705_v62 = vmul.f32 0.6931472, %v3212_v27  ;;  %3225 = vpow2.f32 %v1362_v7  ;;  %v1787_v10 = vmul.f32 %v5180_v49, %v6971_v45  ;;  %v2066_v38 = vadd.f32 %v2050_v25, %v2033_v43  ;;  %v6996_v27 = vld [vmem:[#allocation143_spill] sm:$0xff] }
 0x117   : > { %v3216_v8 = vpop.eup %3215  ;;  %v2001_v30 = vmul.f32 0.6931472, %v3214_v17  ;;  %3227 = vpow2.f32 %v1410_v61  ;;  %v1507_v26 = vadd.f32 %v1491_v23, %v1474_v1  ;;  %v2083_v55 = vmul.f32 %v5180_v49, %v4969_v63  ;;  %v6997_v17 = vld [vmem:[#allocation127_spill] sm:$0xff] }
 0x118   : > { %v5192_v2 = vpop.eup %3217  ;;  %2786 = vmatmul.f32.gmra.mxu1 %v1705_v62  ;;  %v2297_v3 = vmul.f32 0.6931472, %v3216_v8  ;;  %v1803_v34 = vadd.f32 %v1787_v10, %v1770_v19  ;;  %v2394_v58 = vadd.f32 %v2378_v53, %v2361_v29  ;;  %v2444_v4 = vmul.f32 %v5093_v0, %v5054_v16  ;;  %v6994_v29 = vld [vmem:[#allocation126_spill] sm:$0xff] }
 0x119   : > { %v3220_v42 = vpop.eup %3219  ;;  %2851 = vmatmul.f32.gmra.mxu2 %v2001_v30  ;;  %v1524_v51 = vmul.f32 %v5192_v2, %v6972_v37  ;;  %v1820_v15 = vmul.f32 %v5192_v2, %v6973_v14  ;;  %v2099_v22 = vadd.f32 %v2083_v55, %v2066_v38  ;;  %v2116_v59 = vmul.f32 %v5192_v2, %v4974_v5  ;;  %v6998_v38 = vld [vmem:[#allocation135_spill] sm:$0xff]  ;;  %v6999_v30 = vld [vmem:[#allocation128_spill] sm:$0xff] }
 0x11a   : > { %v5202_v7 = vpop.eup %3221  ;;  %2916 = vmatmul.f32.gmra.mxu3 %v2297_v3  ;;  %v2591_v11 = vmul.f32 0.6931472, %v3220_v42  ;;  %v2427_v44 = vadd.f32 %v2411_v60, %v2394_v58  ;;  %v2477_v0 = vmul.f32 %v5099_v40, %v5059_v32  ;;  %v2510_v61 = vmul.f32 %v5107_v28, %v5134_v36  ;;  %v6995_v40 = vld [vmem:[#allocation134_spill] sm:$0xff]  ;;  %v7000_v55 = vld [vmem:[#allocation136_spill] sm:$0xff] }
 0x11b   : > { %v5208_v35 = vpop.eup %3223  ;;  %v1540_v9 = vadd.f32 %v1524_v51, %v1507_v26  ;;  %v1557_v48 = vmul.f32 %v5202_v7, %v6974_v18  ;;  %v1836_v43 = vadd.f32 %v1820_v15, %v1803_v34  ;;  %v1853_v47 = vmul.f32 %v5202_v7, %v6993_v50  ;;  %v7001_v58 = vld [vmem:[#allocation144_spill] sm:$0xff] }
 0x11c   : > { %v5214_v25 = vpop.eup %3225  ;;  %2978 = vmatmul.f32.vlgmr.msrb.gmra.mxu0 %v2591_v11  ;;  %v1590_v53 = vmul.f32 %v5208_v35, %v6994_v29  ;;  %v1886_v60 = vmul.f32 %v5208_v35, %v6995_v40  ;;  %v2132_v28 = vadd.f32 %v2116_v59, %v2099_v22  ;;  %v2149_v1 = vmul.f32 %v5202_v7, %v6996_v27  ;;  %v7002_v22 = vld [vmem:[#allocation146_spill] sm:$0xff] }
 0x11d   : > { %v5222_v23 = vpop.eup %3227  ;;  %v1573_v19 = vadd.f32 %v1557_v48, %v1540_v9  ;;  %v1623_v62 = vmul.f32 %v5214_v25, %v6997_v17  ;;  %v1869_v10 = vadd.f32 %v1853_v47, %v1836_v43  ;;  %v1919_v8 = vmul.f32 %v5214_v25, %v6998_v38  ;;  %v7003_v43 = vld [vmem:[#allocation74_spill] sm:$0xff]  ;;  %v7005_v38 = vld [vmem:[#allocation137_spill] sm:$0xff] }
 0x11e   : > { %v1656_v26 = vmul.f32 %v5222_v23, %v6999_v30  ;;  %v1952_v3 = vmul.f32 %v5222_v23, %v7000_v55  ;;  %v2165_v34 = vadd.f32 %v2149_v1, %v2132_v28  ;;  %v2182_v42 = vmul.f32 %v5208_v35, %v7001_v58  ;;  %v7004_v30 = vld [vmem:[#allocation149_spill] sm:$0xff]  ;;  %v7006_v58 = vld [vmem:[#allocation138_spill] sm:$0xff] }
 0x11f   : > { %v1606_v51 = vadd.f32 %v1590_v53, %v1573_v19  ;;  %v1902_v15 = vadd.f32 %v1886_v60, %v1869_v10  ;;  %v2215_v59 = vmul.f32 %v5214_v25, %v7002_v22  ;;  %v2248_v11 = vmul.f32 %v5222_v23, %v4999_v41  ;;  %v7007_v60 = vld [vmem:[#allocation139_spill] sm:$0xff] }
 0x120   : > { %v2198_v9 = vadd.f32 %v2182_v42, %v2165_v34  ;;  %v2460_v48 = vadd.f32 %v2444_v4, %v2427_v44  ;;  %v2543_v47 = vmul.f32 %v7003_v43, %v5137_v21  ;;  %v1057_v55 = vsub.f32 %v7005_v38, %v7004_v30  ;;  %v7008_v34 = vld [vmem:[#allocation140_spill] sm:$0xff] }
 0x121   : > { %v1639_v28 = vadd.f32 %v1623_v62, %v1606_v51  ;;  %v1935_v1 = vadd.f32 %v1919_v8, %v1902_v15  ;;  %v1105_v53 = vsub.f32 %v7006_v58, %v7004_v30  ;;  %v1153_v19 = vsub.f32 %v7007_v60, %v7004_v30  ;;  %v7009_v58 = vld [vmem:[#allocation141_spill] sm:$0xff] }
 0x122   : > { %v2231_v10 = vadd.f32 %v2215_v59, %v2198_v9  ;;  %v2493_v22 = vadd.f32 %v2477_v0, %v2460_v48  ;;  %v1076_v17 = vmul.f32 1.442695, %v1057_v55  ;;  %v1201_v4 = vsub.f32 %v7008_v34, %v7004_v30  ;;  %v7010_v55 = vld [vmem:[#allocation142_spill] sm:$0xff] }
 0x123   : > { %v1672_v44 = vadd.f32 %v1656_v26, %v1639_v28  ;;  %v1968_v42 = vadd.f32 %v1952_v3, %v1935_v1  ;;  %v1124_v43 = vmul.f32 1.442695, %v1105_v53  ;;  %v1172_v41 = vmul.f32 1.442695, %v1153_v19  ;;  %v7011_v3 = vld [vmem:[#allocation145_spill] sm:$0xff] }
 0x124   : > { %v2264_v40 = vadd.f32 %v2248_v11, %v2231_v10  ;;  %v2526_v38 = vadd.f32 %v2510_v61, %v2493_v22  ;;  %3229 = vpow2.f32 %v1076_v17  ;;  %v1220_v62 = vmul.f32 1.442695, %v1201_v4  ;;  %v7012_v61 = vld [vmem:[#allocation148_spill] sm:$0xff] }
 0x125   : > { %v1688_v8 = vmax.f32 %v1672_v44, 1.1754944e-38  ;;  %v1984_v51 = vmax.f32 %v1968_v42, 1.1754944e-38  ;;  %3231 = vpow2.f32 %v1124_v43  ;;  %v1249_v15 = vsub.f32 %v7009_v58, %v7004_v30 }
 0x126   : > { %v2280_v59 = vmax.f32 %v2264_v40, 1.1754944e-38  ;;  %v2559_v0 = vadd.f32 %v2543_v47, %v2526_v38  ;;  %3233 = vpow2.f32 %v1172_v41  ;;  %v1297_v9 = vsub.f32 %v7010_v55, %v7004_v30 }
 0x127   : > { %3235 = vlog2.f32 %v1688_v8  ;;  %v1268_v26 = vmul.f32 1.442695, %v1249_v15  ;;  %v1345_v11 = vsub.f32 %v7011_v3, %v7004_v30  ;;  %v1393_v17 = vsub.f32 %v7012_v61, %v7004_v30 }
 0x128   : > { %3237 = vlog2.f32 %v1984_v51  ;;  %v2575_v22 = vmax.f32 %v2559_v0, 1.1754944e-38  ;;  %v1316_v48 = vmul.f32 1.442695, %v1297_v9  ;;  %v2329_v28 = vmul.f32 %v5162_v57, %v5035_v13 }
 0x129   : > { %3239 = vlog2.f32 %v2280_v59  ;;  %v1364_v40 = vmul.f32 1.442695, %v1345_v11  ;;  %v1412_v41 = vmul.f32 1.442695, %v1393_v17  ;;  %v2346_v47 = vmul.f32 %v5166_v54, %v5038_v6 }
 0x12a   : > { %v5260_v1 = vpop.eup %3229  ;;  %3241 = vlog2.f32 %v2575_v22  ;;  %v2379_v53 = vmul.f32 %v5180_v49, %v5043_v31  ;;  %v2412_v30 = vmul.f32 %v5192_v2, %v5051_v20  ;;  %v5268_v60 = vmul.f32 %v5202_v7, %v5054_v16 }
 0x12b   : > { %v5270_v57 = vpop.eup %3231  ;;  %3243 = vpow2.f32 %v1220_v62  ;;  %v1442_v19 = vmul.f32 %v5260_v1, %v4813_v52  ;;  %v1738_v54 = vmul.f32 %v5260_v1, %v6967_v12  ;;  %v2034_v10 = vmul.f32 %v5260_v1, %v4962_v33 }
 0x12c   : > { %v5278_v49 = vpop.eup %3233  ;;  %3245 = vpow2.f32 %v1268_v26  ;;  %v1459_v2 = vmul.f32 %v5270_v57, %v6968_v39  ;;  %v1755_v7 = vmul.f32 %v5270_v57, %v6969_v24  ;;  %v2051_v34 = vmul.f32 %v5270_v57, %v4967_v46 }
 0x12d   : > { %v3236_v4 = vpop.eup %3235  ;;  %3247 = vpow2.f32 %v1316_v48  ;;  %v1492_v44 = vmul.f32 %v5278_v49, %v6970_v56  ;;  %v1788_v42 = vmul.f32 %v5278_v49, %v6971_v45  ;;  %v2084_v43 = vmul.f32 %v5278_v49, %v4969_v63 }
 0x12e   : > { %v3238_v38 = vpop.eup %3237  ;;  %v1707_v62 = vmul.f32 0.6931472, %v3236_v4  ;;  %3249 = vpow2.f32 %v1364_v40  ;;  %v1475_v8 = vadd.f32 %v1459_v2, %v1442_v19  ;;  %v1771_v51 = vadd.f32 %v1755_v7, %v1738_v54 }
 0x12f   : > { %v3240_v58 = vpop.eup %3239  ;;  %v2003_v15 = vmul.f32 0.6931472, %v3238_v38  ;;  %3251 = vpow2.f32 %v1412_v41  ;;  %v2067_v59 = vadd.f32 %v2051_v34, %v2034_v10  ;;  %v2362_v0 = vadd.f32 %v2346_v47, %v2329_v28  ;;  %v7015_v38 = vld [vmem:[#allocation127_spill] sm:$0xff] }
 0x130   : > { %v3242_v55 = vpop.eup %3241  ;;  %2789 = vmatmul.f32.gmra.mxu1 %v1707_v62  ;;  %v2299_v9 = vmul.f32 0.6931472, %v3240_v58  ;;  %v1508_v26 = vadd.f32 %v1492_v44, %v1475_v8  ;;  %v1804_v3 = vadd.f32 %v1788_v42, %v1771_v51  ;;  %v2478_v11 = vmul.f32 %v5208_v35, %v5059_v32  ;;  %v7013_v44 = vld [vmem:[#allocation134_spill] sm:$0xff]  ;;  %v7016_v8 = vld [vmem:[#allocation135_spill] sm:$0xff] }
 0x131   : > { %v5294_v61 = vpop.eup %3243  ;;  %2854 = vmatmul.f32.gmra.mxu2 %v2003_v15  ;;  %v2593_v17 = vmul.f32 0.6931472, %v3242_v55  ;;  %v2100_v22 = vadd.f32 %v2084_v43, %v2067_v59  ;;  %v2395_v48 = vadd.f32 %v2379_v53, %v2362_v0  ;;  %v2511_v40 = vmul.f32 %v5214_v25, %v5134_v36  ;;  %v7018_v0 = vld [vmem:[#allocation128_spill] sm:$0xff] }
 0x132   : > { %v5298_v41 = vpop.eup %3245  ;;  %2919 = vmatmul.f32.gmra.mxu3 %v2299_v9  ;;  %v1525_v28 = vmul.f32 %v5294_v61, %v6972_v37  ;;  %v1821_v47 = vmul.f32 %v5294_v61, %v6973_v14  ;;  %v2117_v35 = vmul.f32 %v5294_v61, %v4974_v5  ;;  %v2544_v19 = vmul.f32 %v5222_v23, %v5137_v21 }
 0x133   : > { %v5308_v54 = vpop.eup %3247  ;;  %2981 = vmatmul.f32.gmra.mxu0 %v2593_v17  ;;  %v1558_v25 = vmul.f32 %v5298_v41, %v6974_v18  ;;  %v1854_v53 = vmul.f32 %v5298_v41, %v6993_v50  ;;  %v2150_v10 = vmul.f32 %v5298_v41, %v6996_v27  ;;  %v2428_v2 = vadd.f32 %v2412_v30, %v2395_v48  ;;  %v7017_v30 = vld [vmem:[#allocation144_spill] sm:$0xff]  ;;  %v7020_v48 = vld [vmem:[#allocation146_spill] sm:$0xff] }
 0x134   : > { %v5316_v7 = vpop.eup %3249  ;;  %v1541_v34 = vadd.f32 %v1525_v28, %v1508_v26  ;;  %v1591_v4 = vmul.f32 %v5308_v54, %v6994_v29  ;;  %v1837_v23 = vadd.f32 %v1821_v47, %v1804_v3  ;;  %v1887_v42 = vmul.f32 %v5308_v54, %v7013_v44  ;;  %v7019_v26 = vld [vmem:[#allocation136_spill] sm:$0xff]  ;;  %v7021_v47 = vld [vmem:[#allocation147_spill] sm:$0xff] }
 0x135   : > { %v5322_v43 = vpop.eup %3251  ;;  %v1624_v62 = vmul.f32 %v5316_v7, %v7015_v38  ;;  %v1920_v51 = vmul.f32 %v5316_v7, %v7016_v8  ;;  %v2133_v58 = vadd.f32 %v2117_v35, %v2100_v22  ;;  %v2183_v15 = vmul.f32 %v5308_v54, %v7017_v30  ;;  %v7022_v38 = vld [vmem:[#allocation13_spill] sm:$0xff] }
 0x136   : > { %7014 = vst [vmem:[#allocation76_spill] sm:$0xff] %v5322_v43  ;;  %v1574_v59 = vadd.f32 %v1558_v25, %v1541_v34  ;;  %v1657_v55 = vmul.f32 %v5322_v43, %v7018_v0  ;;  %v1870_v9 = vadd.f32 %v1854_v53, %v1837_v23  ;;  %v1953_v3 = vmul.f32 %v5322_v43, %v7019_v26  ;;  %v7023_v25 = vld [vmem:[#allocation2_spill] sm:$0xff]  ;;  %v7024_v0 = vld [vmem:[#allocation3_spill] sm:$0xff] }
 0x137   : > { %v2166_v17 = vadd.f32 %v2150_v10, %v2133_v58  ;;  %v2216_v28 = vmul.f32 %v5316_v7, %v7020_v48  ;;  %v2249_v21 = vmul.f32 %v5322_v43, %v7021_v47  ;;  %v2461_v22 = vadd.f32 %v5268_v60, %v2428_v2  ;;  %v7025_v10 = vld [vmem:[#allocation4_spill] sm:$0xff]  ;;  %v7026_v48 = vld [vmem:[#allocation5_spill] sm:$0xff] }
 0x138   : > { %v1607_v35 = vadd.f32 %v1591_v4, %v1574_v59  ;;  %v1903_v8 = vadd.f32 %v1887_v42, %v1870_v9  ;;  %v1058_v34 = vsub.f32 %v7023_v25, %v7022_v38  ;;  %v1106_v53 = vsub.f32 %v7024_v0, %v7022_v38 }
 0x139   : > { %v2199_v23 = vadd.f32 %v2183_v15, %v2166_v17  ;;  %v2494_v30 = vadd.f32 %v2478_v11, %v2461_v22  ;;  %v1154_v58 = vsub.f32 %v7025_v10, %v7022_v38  ;;  %v1202_v26 = vsub.f32 %v7026_v48, %v7022_v38  ;;  %v7027_v15 = vld [vmem:[#allocation6_spill] sm:$0xff]  ;;  %v7028_v22 = vld [vmem:[#allocation7_spill] sm:$0xff] }
 0x13a   : > { %v1640_v44 = vadd.f32 %v1624_v62, %v1607_v35  ;;  %v1936_v43 = vadd.f32 %v1920_v51, %v1903_v8  ;;  %v1078_v47 = vmul.f32 1.442695, %v1058_v34  ;;  %v1126_v60 = vmul.f32 1.442695, %v1106_v53 }
 0x13b   : > { %v2232_v2 = vadd.f32 %v2216_v28, %v2199_v23  ;;  %v2527_v4 = vadd.f32 %v2511_v40, %v2494_v30  ;;  %v1174_v42 = vmul.f32 1.442695, %v1154_v58  ;;  %v1222_v59 = vmul.f32 1.442695, %v1202_v26 }
 0x13c   : > { %v1673_v9 = vadd.f32 %v1657_v55, %v1640_v44  ;;  %v1969_v25 = vadd.f32 %v1953_v3, %v1936_v43  ;;  %3253 = vpow2.f32 %v1078_v47  ;;  %v1250_v11 = vsub.f32 %v7027_v15, %v7022_v38  ;;  %v7029_v44 = vld [vmem:[#allocation8_spill] sm:$0xff]  ;;  %v7030_v55 = vld [vmem:[#allocation9_spill] sm:$0xff] }
 0x13d   : > { %v2265_v0 = vadd.f32 %v2249_v21, %v2232_v2  ;;  %v2560_v17 = vadd.f32 %v2544_v19, %v2527_v4  ;;  %3255 = vpow2.f32 %v1126_v60  ;;  %v1298_v48 = vsub.f32 %v7028_v22, %v7022_v38 }
 0x13e   : > { %v1689_v62 = vmax.f32 %v1673_v9, 1.1754944e-38  ;;  %v1985_v8 = vmax.f32 %v1969_v25, 1.1754944e-38  ;;  %3257 = vpow2.f32 %v1174_v42  ;;  %v1270_v51 = vmul.f32 1.442695, %v1250_v11 }
 0x13f   : > { %v2281_v28 = vmax.f32 %v2265_v0, 1.1754944e-38  ;;  %v2576_v40 = vmax.f32 %v2560_v17, 1.1754944e-38  ;;  %3259 = vpow2.f32 %v1222_v59  ;;  %v1318_v30 = vmul.f32 1.442695, %v1298_v48 }
 0x140   : > { %3261 = vlog2.f32 %v1689_v62  ;;  %v1346_v43 = vsub.f32 %v7029_v44, %v7022_v38  ;;  %v1394_v21 = vsub.f32 %v7030_v55, %v7022_v38  ;;  %v2330_v19 = vmul.f32 %v5260_v1, %v5035_v13 }
 0x141   : > { %3263 = vlog2.f32 %v1985_v8  ;;  %v2347_v26 = vmul.f32 %v5270_v57, %v5038_v6  ;;  %v2380_v3 = vmul.f32 %v5278_v49, %v5043_v31  ;;  %v5363_v47 = vmul.f32 %v5294_v61, %v5051_v20 }
 0x142   : > { %v5365_v35 = vpop.eup %3253  ;;  %3265 = vlog2.f32 %v2281_v28  ;;  %v1366_v34 = vmul.f32 1.442695, %v1346_v43  ;;  %v1414_v53 = vmul.f32 1.442695, %v1394_v21  ;;  %v5369_v38 = vmul.f32 %v5298_v41, %v5054_v16 }
 0x143   : > { %v5371_v1 = vpop.eup %3255  ;;  %3267 = vlog2.f32 %v2576_v40  ;;  %v1443_v57 = vmul.f32 %v5365_v35, %v4813_v52  ;;  %v1739_v49 = vmul.f32 %v5365_v35, %v6967_v12  ;;  %v2035_v61 = vmul.f32 %v5365_v35, %v4962_v33 }
 0x144   : > { %v5379_v23 = vpop.eup %3257  ;;  %3269 = vpow2.f32 %v1270_v51  ;;  %v1460_v10 = vmul.f32 %v5371_v1, %v6968_v39  ;;  %v1756_v41 = vmul.f32 %v5371_v1, %v6969_v24  ;;  %v2052_v58 = vmul.f32 %v5371_v1, %v4967_v46 }
 0x145   : > { %v5387_v60 = vpop.eup %3259  ;;  %3271 = vpow2.f32 %v1318_v30  ;;  %v1493_v2 = vmul.f32 %v5379_v23, %v6970_v56  ;;  %v1789_v4 = vmul.f32 %v5379_v23, %v6971_v45  ;;  %v2085_v42 = vmul.f32 %v5379_v23, %v4969_v63 }
 0x146   : > { %v3262_v59 = vpop.eup %3261  ;;  %3273 = vpow2.f32 %v1366_v34  ;;  %v1476_v9 = vadd.f32 %v1460_v10, %v1443_v57  ;;  %v1526_v25 = vmul.f32 %v5387_v60, %v6972_v37  ;;  %v1772_v15 = vadd.f32 %v1756_v41, %v1739_v49 }
 0x147   : > { %v3264_v11 = vpop.eup %3263  ;;  %v1709_v0 = vmul.f32 0.6931472, %v3262_v59  ;;  %3275 = vpow2.f32 %v1414_v53  ;;  %v1822_v17 = vmul.f32 %v5387_v60, %v6973_v14  ;;  %v2068_v22 = vadd.f32 %v2052_v58, %v2035_v61 }
 0x148   : > { %v3266_v48 = vpop.eup %3265  ;;  %v2005_v62 = vmul.f32 0.6931472, %v3264_v11  ;;  %v1509_v8 = vadd.f32 %v1493_v2, %v1476_v9  ;;  %v1805_v51 = vadd.f32 %v1789_v4, %v1772_v15  ;;  %v2118_v28 = vmul.f32 %v5387_v60, %v4974_v5  ;;  %v7032_v4 = vld [vmem:[#allocation144_spill] sm:$0xff]  ;;  %v7034_v15 = vld [vmem:[#allocation127_spill] sm:$0xff] }
 0x149   : > { %v3268_v40 = vpop.eup %3267  ;;  %2792 = vmatmul.f32.gmra.mxu1 %v1709_v0  ;;  %v2301_v30 = vmul.f32 0.6931472, %v3266_v48  ;;  %v2101_v44 = vadd.f32 %v2085_v42, %v2068_v22  ;;  %v2363_v43 = vadd.f32 %v2347_v26, %v2330_v19  ;;  %v2479_v55 = vmul.f32 %v5308_v54, %v5059_v32  ;;  %v7036_v48 = vld [vmem:[#allocation128_spill] sm:$0xff] }
 0x14a   : > { %v5403_v21 = vpop.eup %3269  ;;  %2857 = vmatmul.f32.gmra.mxu2 %v2005_v62  ;;  %v2595_v34 = vmul.f32 0.6931472, %v3268_v40  ;;  %v1542_v53 = vadd.f32 %v1526_v25, %v1509_v8  ;;  %v1838_v57 = vadd.f32 %v1822_v17, %v1805_v51  ;;  %v2512_v49 = vmul.f32 %v5316_v7, %v5134_v36  ;;  %v7031_v7 = vld [vmem:[#allocation134_spill] sm:$0xff]  ;;  %v7035_v17 = vld [vmem:[#allocation135_spill] sm:$0xff]  ;;  %v7037_v8 = vld [vmem:[#allocation136_spill] sm:$0xff] }
 0x14b   : > { %v5407_v61 = vpop.eup %3271  ;;  %2922 = vmatmul.f32.gmra.mxu3 %v2301_v30  ;;  %v1559_v10 = vmul.f32 %v5403_v21, %v6974_v18  ;;  %v1855_v19 = vmul.f32 %v5403_v21, %v6993_v50  ;;  %v2134_v26 = vadd.f32 %v2118_v28, %v2101_v44  ;;  %v2151_v54 = vmul.f32 %v5403_v21, %v6996_v27  ;;  %v7038_v40 = vld [vmem:[#allocation146_spill] sm:$0xff] }
 0x14c   : > { %v5415_v41 = vpop.eup %3273  ;;  %2984 = vmatmul.f32.gmra.mxu0 %v2595_v34  ;;  %v1592_v58 = vmul.f32 %v5407_v61, %v6994_v29  ;;  %v1888_v2 = vmul.f32 %v5407_v61, %v7031_v7  ;;  %v2184_v42 = vmul.f32 %v5407_v61, %v7032_v4  ;;  %v2396_v59 = vadd.f32 %v2380_v3, %v2363_v43  ;;  %v7039_v43 = vld [vmem:[#allocation147_spill] sm:$0xff] }
 0x14d   : > { %v5423_v9 = vpop.eup %3275  ;;  %v1575_v25 = vadd.f32 %v1559_v10, %v1542_v53  ;;  %v1625_v11 = vmul.f32 %v5415_v41, %v7034_v15  ;;  %v1871_v0 = vadd.f32 %v1855_v19, %v1838_v57  ;;  %v1921_v22 = vmul.f32 %v5415_v41, %v7035_v17  ;;  %v7040_v10 = vld [vmem:[#allocation75_spill] sm:$0xff]  ;;  %v7041_v19 = vld [vmem:[#allocation76_spill] sm:$0xff] }
 0x14e   : > { %7033 = vst [vmem:[#allocation129_spill] sm:$0xff] %v5423_v9  ;;  %v1658_v62 = vmul.f32 %v5423_v9, %v7036_v48  ;;  %v1954_v51 = vmul.f32 %v5423_v9, %v7037_v8  ;;  %v2167_v28 = vadd.f32 %v2151_v54, %v2134_v26  ;;  %v2217_v3 = vmul.f32 %v5415_v41, %v7038_v40  ;;  %v7042_v17 = vld [vmem:[#allocation39_spill] sm:$0xff]  ;;  %v7043_v48 = vld [vmem:[#allocation28_spill] sm:$0xff]  ;;  %v7044_v8 = vld [vmem:[#allocation29_spill] sm:$0xff] }
 0x14f   : > { %v1608_v30 = vadd.f32 %v1592_v58, %v1575_v25  ;;  %v1904_v44 = vadd.f32 %v1888_v2, %v1871_v0  ;;  %v2250_v34 = vmul.f32 %v5423_v9, %v7039_v43  ;;  %v2429_v53 = vadd.f32 %v5363_v47, %v2396_v59  ;;  %v7045_v2 = vld [vmem:[#allocation30_spill] sm:$0xff] }
 0x150   : > { %v2200_v57 = vadd.f32 %v2184_v42, %v2167_v28  ;;  %v2545_v4 = vmul.f32 %v7041_v19, %v7040_v10  ;;  %v1059_v15 = vsub.f32 %v7043_v48, %v7042_v17  ;;  %v1107_v26 = vsub.f32 %v7044_v8, %v7042_v17  ;;  %v7046_v42 = vld [vmem:[#allocation32_spill] sm:$0xff] }
 0x151   : > { %v1641_v54 = vadd.f32 %v1625_v11, %v1608_v30  ;;  %v1937_v27 = vadd.f32 %v1921_v22, %v1904_v44  ;;  %v2462_v58 = vadd.f32 %v5369_v38, %v2429_v53  ;;  %v1155_v25 = vsub.f32 %v7045_v2, %v7042_v17  ;;  %v7047_v11 = vld [vmem:[#allocation33_spill] sm:$0xff]  ;;  %v7048_v53 = vld [vmem:[#allocation34_spill] sm:$0xff] }
 0x152   : > { %v2233_v0 = vadd.f32 %v2217_v3, %v2200_v57  ;;  %v1080_v9 = vmul.f32 1.442695, %v1059_v15  ;;  %v1128_v47 = vmul.f32 1.442695, %v1107_v26  ;;  %v1203_v59 = vsub.f32 %v7046_v42, %v7042_v17 }
 0x153   : > { %v1674_v28 = vadd.f32 %v1658_v62, %v1641_v54  ;;  %v1970_v19 = vadd.f32 %v1954_v51, %v1937_v27  ;;  %v2495_v10 = vadd.f32 %v2479_v55, %v2462_v58  ;;  %v1176_v48 = vmul.f32 1.442695, %v1155_v25  ;;  %v7049_v55 = vld [vmem:[#allocation35_spill] sm:$0xff] }
 0x154   : > { %v2266_v43 = vadd.f32 %v2250_v34, %v2233_v0  ;;  %3277 = vpow2.f32 %v1080_v9  ;;  %v1224_v8 = vmul.f32 1.442695, %v1203_v59  ;;  %v1251_v22 = vsub.f32 %v7047_v11, %v7042_v17  ;;  %v7050_v9 = vld [vmem:[#allocation36_spill] sm:$0xff] }
 0x155   : > { %v1690_v38 = vmax.f32 %v1674_v28, 1.1754944e-38  ;;  %v1986_v30 = vmax.f32 %v1970_v19, 1.1754944e-38  ;;  %v2528_v44 = vadd.f32 %v2512_v49, %v2495_v10  ;;  %3279 = vpow2.f32 %v1128_v47 }
 0x156   : > { %v2282_v3 = vmax.f32 %v2266_v43, 1.1754944e-38  ;;  %3281 = vpow2.f32 %v1176_v48  ;;  %v1272_v15 = vmul.f32 1.442695, %v1251_v22  ;;  %v1299_v57 = vsub.f32 %v7048_v53, %v7042_v17 }
 0x157   : > { %3283 = vlog2.f32 %v1690_v38  ;;  %v2561_v27 = vadd.f32 %v2545_v4, %v2528_v44  ;;  %v1347_v62 = vsub.f32 %v7049_v55, %v7042_v17  ;;  %v1395_v51 = vsub.f32 %v7050_v9, %v7042_v17 }
 0x158   : > { %3285 = vlog2.f32 %v1986_v30  ;;  %v1320_v34 = vmul.f32 1.442695, %v1299_v57  ;;  %v2331_v49 = vmul.f32 %v5365_v35, %v5035_v13  ;;  %v2348_v43 = vmul.f32 %v5371_v1, %v5038_v6 }
 0x159   : > { %3287 = vlog2.f32 %v2282_v3  ;;  %v2577_v10 = vmax.f32 %v2561_v27, 1.1754944e-38  ;;  %v1368_v26 = vmul.f32 1.442695, %v1347_v62  ;;  %v1416_v54 = vmul.f32 1.442695, %v1395_v51 }
 0x15a   : > { %v5461_v58 = vpop.eup %3277  ;;  %3289 = vpow2.f32 %v1224_v8  ;;  %v2364_v4 = vadd.f32 %v2348_v43, %v2331_v49  ;;  %v2381_v2 = vmul.f32 %v5379_v23, %v5043_v31  ;;  %v2414_v17 = vmul.f32 %v5387_v60, %v5051_v20 }
 0x15b   : > { %v5467_v25 = vpop.eup %3279  ;;  %3291 = vlog2.f32 %v2577_v10  ;;  %v1444_v35 = vmul.f32 %v5461_v58, %v4813_v52  ;;  %v1740_v1 = vmul.f32 %v5461_v58, %v6967_v12  ;;  %v2036_v0 = vmul.f32 %v5461_v58, %v4962_v33 }
 0x15c   : > { %v5475_v47 = vpop.eup %3281  ;;  %3293 = vpow2.f32 %v1272_v15  ;;  %v1461_v23 = vmul.f32 %v5467_v25, %v6968_v39  ;;  %v1757_v60 = vmul.f32 %v5467_v25, %v6969_v24  ;;  %v2053_v42 = vmul.f32 %v5467_v25, %v4967_v46 }
 0x15d   : > { %v3284_v59 = vpop.eup %3283  ;;  %3295 = vpow2.f32 %v1320_v34  ;;  %v1494_v28 = vmul.f32 %v5475_v47, %v6970_v56  ;;  %v1790_v19 = vmul.f32 %v5475_v47, %v6971_v45  ;;  %v2086_v48 = vmul.f32 %v5475_v47, %v4969_v63 }
 0x15e   : > { %v3286_v8 = vpop.eup %3285  ;;  %v1711_v11 = vmul.f32 0.6931472, %v3284_v59  ;;  %3297 = vpow2.f32 %v1368_v26  ;;  %v1477_v22 = vadd.f32 %v1461_v23, %v1444_v35  ;;  %v1773_v38 = vadd.f32 %v1757_v60, %v1740_v1 }
 0x15f   : > { %v3288_v30 = vpop.eup %3287  ;;  %v2007_v44 = vmul.f32 0.6931472, %v3286_v8  ;;  %3299 = vpow2.f32 %v1416_v54  ;;  %v2069_v3 = vadd.f32 %v2053_v42, %v2036_v0  ;;  %v2397_v15 = vadd.f32 %v2381_v2, %v2364_v4  ;;  %v7051_v42 = vld [vmem:[#allocation143_spill] sm:$0xff] }
 0x160   : > { %v5489_v53 = vpop.eup %3289  ;;  %2795 = vmatmul.f32.gmra.mxu1 %v1711_v11  ;;  %v2303_v57 = vmul.f32 0.6931472, %v3288_v30  ;;  %v1510_v27 = vadd.f32 %v1494_v28, %v1477_v22  ;;  %v1806_v55 = vadd.f32 %v1790_v19, %v1773_v38  ;;  %v2447_v62 = vmul.f32 %v5403_v21, %v5054_v16  ;;  %v7053_v22 = vld [vmem:[#allocation135_spill] sm:$0xff]  ;;  %v7054_v30 = vld [vmem:[#allocation128_spill] sm:$0xff] }
 0x161   : > { %v3292_v9 = vpop.eup %3291  ;;  %2860 = vmatmul.f32.gmra.mxu2 %v2007_v44  ;;  %v1527_v51 = vmul.f32 %v5489_v53, %v6972_v37  ;;  %v1823_v34 = vmul.f32 %v5489_v53, %v6973_v14  ;;  %v2102_v49 = vadd.f32 %v2086_v48, %v2069_v3  ;;  %v2119_v43 = vmul.f32 %v5489_v53, %v4974_v5  ;;  %v7052_v48 = vld [vmem:[#allocation127_spill] sm:$0xff]  ;;  %v7055_v3 = vld [vmem:[#allocation136_spill] sm:$0xff] }
 0x162   : > { %v5499_v10 = vpop.eup %3293  ;;  %2925 = vmatmul.f32.gmra.mxu3 %v2303_v57  ;;  %v2597_v26 = vmul.f32 0.6931472, %v3292_v9  ;;  %v2430_v54 = vadd.f32 %v2414_v17, %v2397_v15  ;;  %v2480_v21 = vmul.f32 %v5407_v61, %v5059_v32  ;;  %v2513_v4 = vmul.f32 %v5415_v41, %v5134_v36 }
 0x163   : > { %v5505_v2 = vpop.eup %3295  ;;  %v1543_v35 = vadd.f32 %v1527_v51, %v1510_v27  ;;  %v1560_v1 = vmul.f32 %v5499_v10, %v6974_v18  ;;  %v1839_v0 = vadd.f32 %v1823_v34, %v1806_v55  ;;  %v1856_v23 = vmul.f32 %v5499_v10, %v6993_v50  ;;  %v7056_v27 = vld [vmem:[#allocation144_spill] sm:$0xff] }
 0x164   : > { %v5511_v60 = vpop.eup %3297  ;;  %2987 = vmatmul.f32.gmra.mxu0 %v2597_v26  ;;  %v1593_v17 = vmul.f32 %v5505_v2, %v6994_v29  ;;  %v1889_v61 = vmul.f32 %v5505_v2, %v7031_v7  ;;  %v2135_v41 = vadd.f32 %v2119_v43, %v2102_v49  ;;  %v2152_v59 = vmul.f32 %v5499_v10, %v7051_v42  ;;  %v7057_v49 = vld [vmem:[#allocation147_spill] sm:$0xff] }
 0x165   : > { %v5519_v28 = vpop.eup %3299  ;;  %v1576_v19 = vadd.f32 %v1560_v1, %v1543_v35  ;;  %v1626_v8 = vmul.f32 %v5511_v60, %v7052_v48  ;;  %v1872_v11 = vadd.f32 %v1856_v23, %v1839_v0  ;;  %v1922_v38 = vmul.f32 %v5511_v60, %v7053_v22  ;;  %v7058_v1 = vld [vmem:[#allocation75_spill] sm:$0xff]  ;;  %v7059_v0 = vld [vmem:[#allocation129_spill] sm:$0xff] }
 0x166   : > { %v1659_v44 = vmul.f32 %v5519_v28, %v7054_v30  ;;  %v1955_v15 = vmul.f32 %v5519_v28, %v7055_v3  ;;  %v2168_v57 = vadd.f32 %v2152_v59, %v2135_v41  ;;  %v2185_v55 = vmul.f32 %v5505_v2, %v7056_v27  ;;  %v7060_v30 = vld [vmem:[#allocation68_spill] sm:$0xff]  ;;  %v7061_v22 = vld [vmem:[#allocation55_spill] sm:$0xff] }
 0x167   : > { %v1609_v9 = vadd.f32 %v1593_v17, %v1576_v19  ;;  %v1905_v51 = vadd.f32 %v1889_v61, %v1872_v11  ;;  %v2218_v34 = vmul.f32 %v5511_v60, %v7038_v40  ;;  %v2251_v43 = vmul.f32 %v5519_v28, %v7057_v49  ;;  %v7062_v27 = vld [vmem:[#allocation56_spill] sm:$0xff]  ;;  %v7063_v61 = vld [vmem:[#allocation57_spill] sm:$0xff] }
 0x168   : > { %v2201_v26 = vadd.f32 %v2185_v55, %v2168_v57  ;;  %v2463_v35 = vadd.f32 %v2447_v62, %v2430_v54  ;;  %v2546_v23 = vmul.f32 %v7059_v0, %v7058_v1  ;;  %v1060_v3 = vsub.f32 %v7061_v22, %v7060_v30  ;;  %v7064_v57 = vld [vmem:[#allocation59_spill] sm:$0xff] }
 0x169   : > { %v1642_v41 = vadd.f32 %v1626_v8, %v1609_v9  ;;  %v1938_v59 = vadd.f32 %v1922_v38, %v1905_v51  ;;  %v1108_v17 = vsub.f32 %v7062_v27, %v7060_v30  ;;  %v1156_v19 = vsub.f32 %v7063_v61, %v7060_v30  ;;  %v7065_v27 = vld [vmem:[#allocation60_spill] sm:$0xff] }
 0x16a   : > { %v2234_v11 = vadd.f32 %v2218_v34, %v2201_v26  ;;  %v2496_v40 = vadd.f32 %v2480_v21, %v2463_v35  ;;  %v1082_v48 = vmul.f32 1.442695, %v1060_v3  ;;  %v1204_v62 = vsub.f32 %v7064_v57, %v7060_v30  ;;  %v7066_v3 = vld [vmem:[#allocation61_spill] sm:$0xff] }
 0x16b   : > { %v1675_v54 = vadd.f32 %v1659_v44, %v1642_v41  ;;  %v1971_v55 = vadd.f32 %v1955_v15, %v1938_v59  ;;  %v1130_v0 = vmul.f32 1.442695, %v1108_v17  ;;  %v1178_v49 = vmul.f32 1.442695, %v1156_v19  ;;  %v7067_v15 = vld [vmem:[#allocation62_spill] sm:$0xff] }
 0x16c   : > { %v2267_v7 = vadd.f32 %v2251_v43, %v2234_v11  ;;  %v2529_v22 = vadd.f32 %v2513_v4, %v2496_v40  ;;  %3301 = vpow2.f32 %v1082_v48  ;;  %v1226_v8 = vmul.f32 1.442695, %v1204_v62  ;;  %v7068_v40 = vld [vmem:[#allocation63_spill] sm:$0xff] }
 0x16d   : > { %v1691_v38 = vmax.f32 %v1675_v54, 1.1754944e-38  ;;  %v1987_v9 = vmax.f32 %v1971_v55, 1.1754944e-38  ;;  %3303 = vpow2.f32 %v1130_v0  ;;  %v1252_v51 = vsub.f32 %v7065_v27, %v7060_v30 }
 0x16e   : > { %v2283_v34 = vmax.f32 %v2267_v7, 1.1754944e-38  ;;  %v2562_v21 = vadd.f32 %v2546_v23, %v2529_v22  ;;  %3305 = vpow2.f32 %v1178_v49  ;;  %v1300_v26 = vsub.f32 %v7066_v3, %v7060_v30 }
 0x16f   : > { %3307 = vlog2.f32 %v1691_v38  ;;  %v1274_v44 = vmul.f32 1.442695, %v1252_v51  ;;  %v1348_v43 = vsub.f32 %v7067_v15, %v7060_v30  ;;  %v1396_v4 = vsub.f32 %v7068_v40, %v7060_v30 }
 0x170   : > { %3309 = vlog2.f32 %v1987_v9  ;;  %v2578_v48 = vmax.f32 %v2562_v21, 1.1754944e-38  ;;  %v1322_v35 = vmul.f32 1.442695, %v1300_v26  ;;  %v2332_v41 = vmul.f32 %v5461_v58, %v5035_v13 }
 0x171   : > { %3311 = vlog2.f32 %v2283_v34  ;;  %v1370_v7 = vmul.f32 1.442695, %v1348_v43  ;;  %v1418_v49 = vmul.f32 1.442695, %v1396_v4  ;;  %v2349_v23 = vmul.f32 %v5467_v25, %v5038_v6 }
 0x172   : > { %v5557_v59 = vpop.eup %3301  ;;  %3313 = vlog2.f32 %v2578_v48  ;;  %v2382_v17 = vmul.f32 %v5475_v47, %v5043_v31  ;;  %v2415_v30 = vmul.f32 %v5489_v53, %v5051_v20  ;;  %v5565_v61 = vmul.f32 %v5499_v10, %v5054_v16 }
 0x173   : > { %v5567_v58 = vpop.eup %3303  ;;  %3315 = vpow2.f32 %v1226_v8  ;;  %v1445_v19 = vmul.f32 %v5557_v59, %v4813_v52  ;;  %v1741_v25 = vmul.f32 %v5557_v59, %v6967_v12  ;;  %v2037_v11 = vmul.f32 %v5557_v59, %v4962_v33 }
 0x174   : > { %v5575_v47 = vpop.eup %3305  ;;  %3317 = vpow2.f32 %v1274_v44  ;;  %v1462_v53 = vmul.f32 %v5567_v58, %v6968_v39  ;;  %v1758_v10 = vmul.f32 %v5567_v58, %v6969_v24  ;;  %v2054_v57 = vmul.f32 %v5567_v58, %v4967_v46 }
 0x175   : > { %v3308_v62 = vpop.eup %3307  ;;  %3319 = vpow2.f32 %v1322_v35  ;;  %v1495_v54 = vmul.f32 %v5575_v47, %v6970_v56  ;;  %v1791_v55 = vmul.f32 %v5575_v47, %v6971_v45  ;;  %v2087_v0 = vmul.f32 %v5575_v47, %v4969_v63 }
 0x176   : > { %v3310_v22 = vpop.eup %3309  ;;  %v1713_v8 = vmul.f32 0.6931472, %v3308_v62  ;;  %3321 = vpow2.f32 %v1370_v7  ;;  %v1478_v38 = vadd.f32 %v1462_v53, %v1445_v19  ;;  %v1774_v9 = vadd.f32 %v1758_v10, %v1741_v25 }
 0x177   : > { %v3312_v27 = vpop.eup %3311  ;;  %v2009_v51 = vmul.f32 0.6931472, %v3310_v22  ;;  %3323 = vpow2.f32 %v1418_v49  ;;  %v2070_v34 = vadd.f32 %v2054_v57, %v2037_v11  ;;  %v2365_v21 = vadd.f32 %v2349_v23, %v2332_v41  ;;  %v7071_v22 = vld [vmem:[#allocation127_spill] sm:$0xff] }
 0x178   : > { %v3314_v3 = vpop.eup %3313  ;;  %2798 = vmatmul.f32.gmra.mxu1 %v1713_v8  ;;  %v2305_v26 = vmul.f32 0.6931472, %v3312_v27  ;;  %v1511_v44 = vadd.f32 %v1495_v54, %v1478_v38  ;;  %v1807_v15 = vadd.f32 %v1791_v55, %v1774_v9  ;;  %v2481_v43 = vmul.f32 %v5505_v2, %v5059_v32  ;;  %v7069_v54 = vld [vmem:[#allocation134_spill] sm:$0xff]  ;;  %v7072_v38 = vld [vmem:[#allocation135_spill] sm:$0xff] }
 0x179   : > { %v5591_v40 = vpop.eup %3315  ;;  %2863 = vmatmul.f32.gmra.mxu2 %v2009_v51  ;;  %v2599_v4 = vmul.f32 0.6931472, %v3314_v3  ;;  %v2103_v48 = vadd.f32 %v2087_v0, %v2070_v34  ;;  %v2398_v35 = vadd.f32 %v2382_v17, %v2365_v21  ;;  %v2514_v7 = vmul.f32 %v5511_v60, %v5134_v36  ;;  %v7074_v21 = vld [vmem:[#allocation128_spill] sm:$0xff] }
 0x17a   : > { %v5595_v49 = vpop.eup %3317  ;;  %2928 = vmatmul.f32.gmra.mxu3 %v2305_v26  ;;  %v1528_v41 = vmul.f32 %v5591_v40, %v6972_v37  ;;  %v1824_v23 = vmul.f32 %v5591_v40, %v6973_v14  ;;  %v2120_v2 = vmul.f32 %v5591_v40, %v4974_v5  ;;  %v2547_v19 = vmul.f32 %v5519_v28, %v7058_v1 }
 0x17b   : > { %v5605_v25 = vpop.eup %3319  ;;  %2990 = vmatmul.f32.gmra.mxu0 %v2599_v4  ;;  %v1561_v60 = vmul.f32 %v5595_v49, %v6974_v18  ;;  %v1857_v17 = vmul.f32 %v5595_v49, %v6993_v50  ;;  %v2153_v11 = vmul.f32 %v5595_v49, %v7051_v42  ;;  %v2431_v53 = vadd.f32 %v2415_v30, %v2398_v35  ;;  %v7073_v30 = vld [vmem:[#allocation144_spill] sm:$0xff]  ;;  %v7076_v35 = vld [vmem:[#allocation146_spill] sm:$0xff] }
 0x17c   : > { %v5613_v10 = vpop.eup %3321  ;;  %v1544_v57 = vadd.f32 %v1528_v41, %v1511_v44  ;;  %v1594_v62 = vmul.f32 %v5605_v25, %v6994_v29  ;;  %v1840_v28 = vadd.f32 %v1824_v23, %v1807_v15  ;;  %v1890_v55 = vmul.f32 %v5605_v25, %v7069_v54  ;;  %v7075_v44 = vld [vmem:[#allocation136_spill] sm:$0xff]  ;;  %v7077_v23 = vld [vmem:[#allocation147_spill] sm:$0xff] }
 0x17d   : > { %v5619_v0 = vpop.eup %3323  ;;  %v1627_v8 = vmul.f32 %v5613_v10, %v7071_v22  ;;  %v1923_v9 = vmul.f32 %v5613_v10, %v7072_v38  ;;  %v2136_v27 = vadd.f32 %v2120_v2, %v2103_v48  ;;  %v2186_v51 = vmul.f32 %v5605_v25, %v7073_v30  ;;  %v7078_v22 = vld [vmem:[#allocation97_spill] sm:$0xff] }
 0x17e   : > { %7070 = vst [vmem:[#allocation121_spill] sm:$0xff] %v5619_v0  ;;  %v1577_v34 = vadd.f32 %v1561_v60, %v1544_v57  ;;  %v1660_v3 = vmul.f32 %v5619_v0, %v7074_v21  ;;  %v1873_v26 = vadd.f32 %v1857_v17, %v1840_v28  ;;  %v1956_v15 = vmul.f32 %v5619_v0, %v7075_v44  ;;  %v7079_v60 = vld [vmem:[#allocation85_spill] sm:$0xff]  ;;  %v7080_v21 = vld [vmem:[#allocation86_spill] sm:$0xff] }
 0x17f   : > { %v2169_v4 = vadd.f32 %v2153_v11, %v2136_v27  ;;  %v2219_v41 = vmul.f32 %v5613_v10, %v7076_v35  ;;  %v2252_v1 = vmul.f32 %v5619_v0, %v7077_v23  ;;  %v2464_v48 = vadd.f32 %v5565_v61, %v2431_v53  ;;  %v7081_v11 = vld [vmem:[#allocation87_spill] sm:$0xff]  ;;  %v7082_v35 = vld [vmem:[#allocation89_spill] sm:$0xff] }
 0x180   : > { %v1610_v2 = vadd.f32 %v1594_v62, %v1577_v34  ;;  %v1906_v38 = vadd.f32 %v1890_v55, %v1873_v26  ;;  %v1061_v57 = vsub.f32 %v7079_v60, %v7078_v22  ;;  %v1109_v17 = vsub.f32 %v7080_v21, %v7078_v22 }
 0x181   : > { %v2202_v28 = vadd.f32 %v2186_v51, %v2169_v4  ;;  %v2497_v30 = vadd.f32 %v2481_v43, %v2464_v48  ;;  %v1157_v27 = vsub.f32 %v7081_v11, %v7078_v22  ;;  %v1205_v44 = vsub.f32 %v7082_v35, %v7078_v22  ;;  %v7083_v51 = vld [vmem:[#allocation90_spill] sm:$0xff]  ;;  %v7084_v48 = vld [vmem:[#allocation91_spill] sm:$0xff] }
 0x182   : > { %v1643_v54 = vadd.f32 %v1627_v8, %v1610_v2  ;;  %v1939_v0 = vadd.f32 %v1923_v9, %v1906_v38  ;;  %v1084_v23 = vmul.f32 1.442695, %v1061_v57  ;;  %v1132_v61 = vmul.f32 1.442695, %v1109_v17 }
 0x183   : > { %v2235_v53 = vadd.f32 %v2219_v41, %v2202_v28  ;;  %v2530_v62 = vadd.f32 %v2514_v7, %v2497_v30  ;;  %v1180_v55 = vmul.f32 1.442695, %v1157_v27  ;;  %v1228_v34 = vmul.f32 1.442695, %v1205_v44 }
 0x184   : > { %v1676_v26 = vadd.f32 %v1660_v3, %v1643_v54  ;;  %v1972_v60 = vadd.f32 %v1956_v15, %v1939_v0  ;;  %3325 = vpow2.f32 %v1084_v23  ;;  %v1253_v43 = vsub.f32 %v7083_v51, %v7078_v22  ;;  %v7085_v54 = vld [vmem:[#allocation92_spill] sm:$0xff]  ;;  %v7086_v3 = vld [vmem:[#allocation93_spill] sm:$0xff] }
 0x185   : > { %v2268_v21 = vadd.f32 %v2252_v1, %v2235_v53  ;;  %v2563_v4 = vadd.f32 %v2547_v19, %v2530_v62  ;;  %3327 = vpow2.f32 %v1132_v61  ;;  %v1301_v35 = vsub.f32 %v7084_v48, %v7078_v22 }
 0x186   : > { %v1692_v8 = vmax.f32 %v1676_v26, 1.1754944e-38  ;;  %v1988_v38 = vmax.f32 %v1972_v60, 1.1754944e-38  ;;  %3329 = vpow2.f32 %v1180_v55  ;;  %v1276_v9 = vmul.f32 1.442695, %v1253_v43 }
 0x187   : > { %v2284_v41 = vmax.f32 %v2268_v21, 1.1754944e-38  ;;  %v2579_v7 = vmax.f32 %v2563_v4, 1.1754944e-38  ;;  %3331 = vpow2.f32 %v1228_v34  ;;  %v1324_v30 = vmul.f32 1.442695, %v1301_v35 }
 0x188   : > { %3333 = vlog2.f32 %v1692_v8  ;;  %v1349_v0 = vsub.f32 %v7085_v54, %v7078_v22  ;;  %v1397_v1 = vsub.f32 %v7086_v3, %v7078_v22  ;;  %v2333_v19 = vmul.f32 %v5557_v59, %v5035_v13 }
 0x189   : > { %3335 = vlog2.f32 %v1988_v38  ;;  %v2350_v44 = vmul.f32 %v5567_v58, %v5038_v6  ;;  %v2383_v15 = vmul.f32 %v5575_v47, %v5043_v31  ;;  %v5660_v23 = vmul.f32 %v5591_v40, %v5051_v20 }
 0x18a   : > { %v5662_v2 = vpop.eup %3325  ;;  %3337 = vlog2.f32 %v2284_v41  ;;  %v1372_v57 = vmul.f32 1.442695, %v1349_v0  ;;  %v1420_v17 = vmul.f32 1.442695, %v1397_v1  ;;  %v5666_v22 = vmul.f32 %v5595_v49, %v5054_v16 }
 0x18b   : > { %v5668_v59 = vpop.eup %3327  ;;  %3339 = vlog2.f32 %v2579_v7  ;;  %v1446_v58 = vmul.f32 %v5662_v2, %v4813_v52  ;;  %v1742_v47 = vmul.f32 %v5662_v2, %v6967_v12  ;;  %v2038_v40 = vmul.f32 %v5662_v2, %v4962_v33 }
 0x18c   : > { %v5676_v28 = vpop.eup %3329  ;;  %3341 = vpow2.f32 %v1276_v9  ;;  %v1463_v11 = vmul.f32 %v5668_v59, %v6968_v39  ;;  %v1759_v49 = vmul.f32 %v5668_v59, %v6969_v24  ;;  %v2055_v27 = vmul.f32 %v5668_v59, %v4967_v46 }
 0x18d   : > { %v5684_v61 = vpop.eup %3331  ;;  %3343 = vpow2.f32 %v1324_v30  ;;  %v1496_v53 = vmul.f32 %v5676_v28, %v6970_v56  ;;  %v1792_v62 = vmul.f32 %v5676_v28, %v6971_v45  ;;  %v2088_v55 = vmul.f32 %v5676_v28, %v4969_v63 }
 0x18e   : > { %v3334_v34 = vpop.eup %3333  ;;  %3345 = vpow2.f32 %v1372_v57  ;;  %v1479_v26 = vadd.f32 %v1463_v11, %v1446_v58  ;;  %v1529_v60 = vmul.f32 %v5684_v61, %v6972_v37  ;;  %v1775_v51 = vadd.f32 %v1759_v49, %v1742_v47 }
 0x18f   : > { %v3336_v43 = vpop.eup %3335  ;;  %v1715_v21 = vmul.f32 0.6931472, %v3334_v34  ;;  %3347 = vpow2.f32 %v1420_v17  ;;  %v1825_v4 = vmul.f32 %v5684_v61, %v6973_v14  ;;  %v2071_v48 = vadd.f32 %v2055_v27, %v2038_v40 }
 0x190   : > { %v3338_v35 = vpop.eup %3337  ;;  %v2011_v8 = vmul.f32 0.6931472, %v3336_v43  ;;  %v1512_v38 = vadd.f32 %v1496_v53, %v1479_v26  ;;  %v1808_v9 = vadd.f32 %v1792_v62, %v1775_v51  ;;  %v2121_v41 = vmul.f32 %v5684_v61, %v4974_v5  ;;  %v7088_v62 = vld [vmem:[#allocation144_spill] sm:$0xff]  ;;  %v7090_v51 = vld [vmem:[#allocation127_spill] sm:$0xff] }
 0x191   : > { %v3340_v7 = vpop.eup %3339  ;;  %2801 = vmatmul.f32.gmra.mxu1 %v1715_v21  ;;  %v2307_v30 = vmul.f32 0.6931472, %v3338_v35  ;;  %v2104_v54 = vadd.f32 %v2088_v55, %v2071_v48  ;;  %v2366_v0 = vadd.f32 %v2350_v44, %v2333_v19  ;;  %v2482_v3 = vmul.f32 %v5605_v25, %v5059_v32  ;;  %v7092_v35 = vld [vmem:[#allocation128_spill] sm:$0xff] }
 0x192   : > { %v5700_v1 = vpop.eup %3341  ;;  %2866 = vmatmul.f32.gmra.mxu2 %v2011_v8  ;;  %v2601_v57 = vmul.f32 0.6931472, %v3340_v7  ;;  %v1545_v17 = vadd.f32 %v1529_v60, %v1512_v38  ;;  %v1841_v58 = vadd.f32 %v1825_v4, %v1808_v9  ;;  %v2515_v47 = vmul.f32 %v5613_v10, %v5134_v36  ;;  %v7087_v10 = vld [vmem:[#allocation134_spill] sm:$0xff]  ;;  %v7091_v4 = vld [vmem:[#allocation135_spill] sm:$0xff]  ;;  %v7093_v38 = vld [vmem:[#allocation136_spill] sm:$0xff] }
 0x193   : > { %v5704_v40 = vpop.eup %3343  ;;  %2931 = vmatmul.f32.gmra.mxu3 %v2307_v30  ;;  %v1562_v11 = vmul.f32 %v5700_v1, %v6974_v18  ;;  %v1858_v19 = vmul.f32 %v5700_v1, %v6993_v50  ;;  %v2137_v44 = vadd.f32 %v2121_v41, %v2104_v54  ;;  %v2154_v25 = vmul.f32 %v5700_v1, %v7051_v42  ;;  %v7094_v7 = vld [vmem:[#allocation146_spill] sm:$0xff] }
 0x194   : > { %v5712_v49 = vpop.eup %3345  ;;  %2993 = vmatmul.f32.gmra.mxu0 %v2601_v57  ;;  %v1595_v27 = vmul.f32 %v5704_v40, %v6994_v29  ;;  %v1891_v53 = vmul.f32 %v5704_v40, %v7087_v10  ;;  %v2187_v55 = vmul.f32 %v5704_v40, %v7088_v62  ;;  %v2399_v34 = vadd.f32 %v2383_v15, %v2366_v0  ;;  %v7095_v0 = vld [vmem:[#allocation147_spill] sm:$0xff] }
 0x195   : > { %v5720_v26 = vpop.eup %3347  ;;  %v1578_v60 = vadd.f32 %v1562_v11, %v1545_v17  ;;  %v1628_v43 = vmul.f32 %v5712_v49, %v7090_v51  ;;  %v1874_v21 = vadd.f32 %v1858_v19, %v1841_v58  ;;  %v1924_v48 = vmul.f32 %v5712_v49, %v7091_v4  ;;  %v7096_v11 = vld [vmem:[#allocation75_spill] sm:$0xff]  ;;  %v7097_v19 = vld [vmem:[#allocation121_spill] sm:$0xff]  ;;  %v7098_v4 = vld [vmem:[#allocation22_spill] sm:$0xff] }
 0x196   : > { %7089 = vst [vmem:[#allocation130_spill] sm:$0xff] %v5720_v26  ;;  %v1661_v8 = vmul.f32 %v5720_v26, %v7092_v35  ;;  %v1957_v9 = vmul.f32 %v5720_v26, %v7093_v38  ;;  %v2170_v41 = vadd.f32 %v2154_v25, %v2137_v44  ;;  %v2220_v15 = vmul.f32 %v5712_v49, %v7094_v7  ;;  %v7099_v35 = vld [vmem:[#allocation10_spill] sm:$0xff]  ;;  %v7100_v38 = vld [vmem:[#allocation11_spill] sm:$0xff] }
 0x197   : > { %v1611_v30 = vadd.f32 %v1595_v27, %v1578_v60  ;;  %v1907_v54 = vadd.f32 %v1891_v53, %v1874_v21  ;;  %v2253_v57 = vmul.f32 %v5720_v26, %v7095_v0  ;;  %v2432_v17 = vadd.f32 %v5660_v23, %v2399_v34  ;;  %v7101_v53 = vld [vmem:[#allocation12_spill] sm:$0xff] }
 0x198   : > { %v2203_v58 = vadd.f32 %v2187_v55, %v2170_v41  ;;  %v2548_v62 = vmul.f32 %v7097_v19, %v7096_v11  ;;  %v1062_v51 = vsub.f32 %v7099_v35, %v7098_v4  ;;  %v1110_v44 = vsub.f32 %v7100_v38, %v7098_v4  ;;  %v7102_v55 = vld [vmem:[#allocation14_spill] sm:$0xff] }
 0x199   : > { %v1644_v25 = vadd.f32 %v1628_v43, %v1611_v30  ;;  %v1940_v42 = vadd.f32 %v1924_v48, %v1907_v54  ;;  %v2465_v27 = vadd.f32 %v5666_v22, %v2432_v17  ;;  %v1158_v60 = vsub.f32 %v7101_v53, %v7098_v4  ;;  %v7103_v43 = vld [vmem:[#allocation15_spill] sm:$0xff]  ;;  %v7104_v17 = vld [vmem:[#allocation16_spill] sm:$0xff] }
 0x19a   : > { %v2236_v21 = vadd.f32 %v2220_v15, %v2203_v58  ;;  %v1086_v26 = vmul.f32 1.442695, %v1062_v51  ;;  %v1134_v23 = vmul.f32 1.442695, %v1110_v44  ;;  %v1206_v34 = vsub.f32 %v7102_v55, %v7098_v4 }
 0x19b   : > { %v1677_v41 = vadd.f32 %v1661_v8, %v1644_v25  ;;  %v1973_v19 = vadd.f32 %v1957_v9, %v1940_v42  ;;  %v2498_v11 = vadd.f32 %v2482_v3, %v2465_v27  ;;  %v1182_v35 = vmul.f32 1.442695, %v1158_v60  ;;  %v7105_v3 = vld [vmem:[#allocation17_spill] sm:$0xff] }
 0x19c   : > { %v2269_v0 = vadd.f32 %v2253_v57, %v2236_v21  ;;  %3349 = vpow2.f32 %v1086_v26  ;;  %v1230_v38 = vmul.f32 1.442695, %v1206_v34  ;;  %v1254_v48 = vsub.f32 %v7103_v43, %v7098_v4  ;;  %v7106_v26 = vld [vmem:[#allocation18_spill] sm:$0xff] }
 0x19d   : > { %v1693_v22 = vmax.f32 %v1677_v41, 1.1754944e-38  ;;  %v1989_v30 = vmax.f32 %v1973_v19, 1.1754944e-38  ;;  %v2531_v54 = vadd.f32 %v2515_v47, %v2498_v11  ;;  %3351 = vpow2.f32 %v1134_v23 }
 0x19e   : > { %v2285_v15 = vmax.f32 %v2269_v0, 1.1754944e-38  ;;  %3353 = vpow2.f32 %v1182_v35  ;;  %v1278_v51 = vmul.f32 1.442695, %v1254_v48  ;;  %v1302_v58 = vsub.f32 %v7104_v17, %v7098_v4 }
 0x19f   : > { %3355 = vlog2.f32 %v1693_v22  ;;  %v2564_v42 = vadd.f32 %v2548_v62, %v2531_v54  ;;  %v1350_v8 = vsub.f32 %v7105_v3, %v7098_v4  ;;  %v1398_v9 = vsub.f32 %v7106_v26, %v7098_v4 }
 0x1a0   : > { %3357 = vlog2.f32 %v1989_v30  ;;  %v1326_v57 = vmul.f32 1.442695, %v1302_v58  ;;  %v2334_v47 = vmul.f32 %v5662_v2, %v5035_v13  ;;  %v2351_v0 = vmul.f32 %v5668_v59, %v5038_v6 }
 0x1a1   : > { %3359 = vlog2.f32 %v2285_v15  ;;  %v2580_v11 = vmax.f32 %v2564_v42, 1.1754944e-38  ;;  %v1374_v44 = vmul.f32 1.442695, %v1350_v8  ;;  %v1422_v25 = vmul.f32 1.442695, %v1398_v9 }
 0x1a2   : > { %v5758_v27 = vpop.eup %3349  ;;  %3361 = vpow2.f32 %v1230_v38  ;;  %v2367_v62 = vadd.f32 %v2351_v0, %v2334_v47  ;;  %v2384_v53 = vmul.f32 %v5676_v28, %v5043_v31  ;;  %v2417_v4 = vmul.f32 %v5684_v61, %v5051_v20 }
 0x1a3   : > { %v5764_v60 = vpop.eup %3351  ;;  %3363 = vlog2.f32 %v2580_v11  ;;  %v1447_v2 = vmul.f32 %v5758_v27, %v4813_v52  ;;  %v1743_v59 = vmul.f32 %v5758_v27, %v6967_v12  ;;  %v2039_v21 = vmul.f32 %v5758_v27, %v4962_v33 }
 0x1a4   : > { %v5772_v23 = vpop.eup %3353  ;;  %3365 = vpow2.f32 %v1278_v51  ;;  %v1464_v28 = vmul.f32 %v5764_v60, %v6968_v39  ;;  %v1760_v61 = vmul.f32 %v5764_v60, %v6969_v24  ;;  %v2056_v55 = vmul.f32 %v5764_v60, %v4967_v46 }
 0x1a5   : > { %v3356_v34 = vpop.eup %3355  ;;  %3367 = vpow2.f32 %v1326_v57  ;;  %v1497_v41 = vmul.f32 %v5772_v23, %v6970_v56  ;;  %v1793_v19 = vmul.f32 %v5772_v23, %v6971_v45  ;;  %v2089_v35 = vmul.f32 %v5772_v23, %v4969_v63 }
 0x1a6   : > { %v3358_v38 = vpop.eup %3357  ;;  %v1717_v43 = vmul.f32 0.6931472, %v3356_v34  ;;  %3369 = vpow2.f32 %v1374_v44  ;;  %v1480_v48 = vadd.f32 %v1464_v28, %v1447_v2  ;;  %v1776_v22 = vadd.f32 %v1760_v61, %v1743_v59 }
 0x1a7   : > { %v3360_v30 = vpop.eup %3359  ;;  %v2013_v54 = vmul.f32 0.6931472, %v3358_v38  ;;  %3371 = vpow2.f32 %v1422_v25  ;;  %v2072_v15 = vadd.f32 %v2056_v55, %v2039_v21  ;;  %v2400_v51 = vadd.f32 %v2384_v53, %v2367_v62  ;;  %v7107_v55 = vld [vmem:[#allocation143_spill] sm:$0xff] }
 0x1a8   : > { %v5786_v17 = vpop.eup %3361  ;;  %2804 = vmatmul.f32.gmra.mxu1 %v1717_v43  ;;  %v2309_v58 = vmul.f32 0.6931472, %v3360_v30  ;;  %v1513_v42 = vadd.f32 %v1497_v41, %v1480_v48  ;;  %v1809_v3 = vadd.f32 %v1793_v19, %v1776_v22  ;;  %v2450_v8 = vmul.f32 %v5700_v1, %v5054_v16  ;;  %v7109_v48 = vld [vmem:[#allocation135_spill] sm:$0xff]  ;;  %v7110_v30 = vld [vmem:[#allocation128_spill] sm:$0xff] }
 0x1a9   : > { %v3364_v26 = vpop.eup %3363  ;;  %2869 = vmatmul.f32.gmra.mxu2 %v2013_v54  ;;  %v1530_v9 = vmul.f32 %v5786_v17, %v6972_v37  ;;  %v1826_v57 = vmul.f32 %v5786_v17, %v6973_v14  ;;  %v2105_v47 = vadd.f32 %v2089_v35, %v2072_v15  ;;  %v2122_v0 = vmul.f32 %v5786_v17, %v4974_v5  ;;  %v7108_v35 = vld [vmem:[#allocation127_spill] sm:$0xff]  ;;  %v7111_v15 = vld [vmem:[#allocation136_spill] sm:$0xff] }
 0x1aa   : > { %v5796_v11 = vpop.eup %3365  ;;  %2934 = vmatmul.f32.gmra.mxu3 %v2309_v58  ;;  %v2603_v44 = vmul.f32 0.6931472, %v3364_v26  ;;  %v2433_v25 = vadd.f32 %v2417_v4, %v2400_v51  ;;  %v2483_v1 = vmul.f32 %v5704_v40, %v5059_v32  ;;  %v2516_v62 = vmul.f32 %v5712_v49, %v5134_v36 }
 0x1ab   : > { %v5802_v53 = vpop.eup %3367  ;;  %v1546_v2 = vadd.f32 %v1530_v9, %v1513_v42  ;;  %v1563_v59 = vmul.f32 %v5796_v11, %v6974_v18  ;;  %v1842_v21 = vadd.f32 %v1826_v57, %v1809_v3  ;;  %v1859_v28 = vmul.f32 %v5796_v11, %v6993_v50  ;;  %v7112_v42 = vld [vmem:[#allocation144_spill] sm:$0xff] }
 0x1ac   : > { %v5808_v61 = vpop.eup %3369  ;;  %2996 = vmatmul.f32.gmra.mxu0 %v2603_v44  ;;  %v1596_v4 = vmul.f32 %v5802_v53, %v6994_v29  ;;  %v1892_v40 = vmul.f32 %v5802_v53, %v7087_v10  ;;  %v2138_v49 = vadd.f32 %v2122_v0, %v2105_v47  ;;  %v2155_v34 = vmul.f32 %v5796_v11, %v7107_v55  ;;  %v7113_v47 = vld [vmem:[#allocation147_spill] sm:$0xff] }
 0x1ad   : > { %v5816_v41 = vpop.eup %3371  ;;  %v1579_v19 = vadd.f32 %v1563_v59, %v1546_v2  ;;  %v1629_v38 = vmul.f32 %v5808_v61, %v7108_v35  ;;  %v1875_v43 = vadd.f32 %v1859_v28, %v1842_v21  ;;  %v1925_v22 = vmul.f32 %v5808_v61, %v7109_v48  ;;  %v7114_v59 = vld [vmem:[#allocation75_spill] sm:$0xff]  ;;  %v7115_v21 = vld [vmem:[#allocation130_spill] sm:$0xff]  ;;  %v7117_v48 = vld [vmem:[#allocation37_spill] sm:$0xff] }
 0x1ae   : > { %v1662_v54 = vmul.f32 %v5816_v41, %v7110_v30  ;;  %v1958_v51 = vmul.f32 %v5816_v41, %v7111_v15  ;;  %v2171_v58 = vadd.f32 %v2155_v34, %v2138_v49  ;;  %v2188_v3 = vmul.f32 %v5802_v53, %v7112_v42  ;;  %v7116_v30 = vld [vmem:[#allocation46_spill] sm:$0xff] }
 0x1af   : > { %v1612_v26 = vadd.f32 %v1596_v4, %v1579_v19  ;;  %v1908_v9 = vadd.f32 %v1892_v40, %v1875_v43  ;;  %v2221_v57 = vmul.f32 %v5808_v61, %v7094_v7  ;;  %v2254_v0 = vmul.f32 %v5816_v41, %v7113_v47  ;;  %v7118_v42 = vld [vmem:[#allocation38_spill] sm:$0xff]  ;;  %v7119_v40 = vld [vmem:[#allocation40_spill] sm:$0xff] }
 0x1b0   : > { %v2204_v44 = vadd.f32 %v2188_v3, %v2171_v58  ;;  %v2466_v2 = vadd.f32 %v2450_v8, %v2433_v25  ;;  %v2549_v28 = vmul.f32 %v7115_v21, %v7114_v59  ;;  %v1063_v15 = vsub.f32 %v7117_v48, %v7116_v30  ;;  %v7120_v58 = vld [vmem:[#allocation41_spill] sm:$0xff] }
 0x1b1   : > { %v1645_v49 = vadd.f32 %v1629_v38, %v1612_v26  ;;  %v1941_v34 = vadd.f32 %v1925_v22, %v1908_v9  ;;  %v1111_v4 = vsub.f32 %v7118_v42, %v7116_v30  ;;  %v1159_v19 = vsub.f32 %v7119_v40, %v7116_v30  ;;  %v7121_v42 = vld [vmem:[#allocation42_spill] sm:$0xff] }
 0x1b2   : > { %v2237_v43 = vadd.f32 %v2221_v57, %v2204_v44  ;;  %v2499_v7 = vadd.f32 %v2483_v1, %v2466_v2  ;;  %v1088_v35 = vmul.f32 1.442695, %v1063_v15  ;;  %v1207_v8 = vsub.f32 %v7120_v58, %v7116_v30  ;;  %v7122_v15 = vld [vmem:[#allocation43_spill] sm:$0xff] }
 0x1b3   : > { %v1678_v25 = vadd.f32 %v1662_v54, %v1645_v49  ;;  %v1974_v3 = vadd.f32 %v1958_v51, %v1941_v34  ;;  %v1136_v21 = vmul.f32 1.442695, %v1111_v4  ;;  %v1184_v47 = vmul.f32 1.442695, %v1159_v19  ;;  %v7123_v51 = vld [vmem:[#allocation44_spill] sm:$0xff] }
 0x1b4   : > { %v2270_v10 = vadd.f32 %v2254_v0, %v2237_v43  ;;  %v2532_v48 = vadd.f32 %v2516_v62, %v2499_v7  ;;  %3373 = vpow2.f32 %v1088_v35  ;;  %v1232_v38 = vmul.f32 1.442695, %v1207_v8  ;;  %v7124_v7 = vld [vmem:[#allocation45_spill] sm:$0xff] }
 0x1b5   : > { %v1694_v22 = vmax.f32 %v1678_v25, 1.1754944e-38  ;;  %v1990_v26 = vmax.f32 %v1974_v3, 1.1754944e-38  ;;  %3375 = vpow2.f32 %v1136_v21  ;;  %v1255_v9 = vsub.f32 %v7121_v42, %v7116_v30 }
 0x1b6   : > { %v2286_v57 = vmax.f32 %v2270_v10, 1.1754944e-38  ;;  %v2565_v1 = vadd.f32 %v2549_v28, %v2532_v48  ;;  %3377 = vpow2.f32 %v1184_v47  ;;  %v1303_v44 = vsub.f32 %v7122_v15, %v7116_v30 }
 0x1b7   : > { %3379 = vlog2.f32 %v1694_v22  ;;  %v1280_v54 = vmul.f32 1.442695, %v1255_v9  ;;  %v1351_v0 = vsub.f32 %v7123_v51, %v7116_v30  ;;  %v1399_v62 = vsub.f32 %v7124_v7, %v7116_v30 }
 0x1b8   : > { %3381 = vlog2.f32 %v1990_v26  ;;  %v2581_v35 = vmax.f32 %v2565_v1, 1.1754944e-38  ;;  %v1328_v2 = vmul.f32 1.442695, %v1303_v44  ;;  %v2335_v49 = vmul.f32 %v5758_v27, %v5035_v13 }
 0x1b9   : > { %3383 = vlog2.f32 %v2286_v57  ;;  %v1376_v10 = vmul.f32 1.442695, %v1351_v0  ;;  %v1424_v47 = vmul.f32 1.442695, %v1399_v62  ;;  %v2352_v28 = vmul.f32 %v5764_v60, %v5038_v6 }
 0x1ba   : > { %v5854_v34 = vpop.eup %3373  ;;  %3385 = vlog2.f32 %v2581_v35  ;;  %v2385_v4 = vmul.f32 %v5772_v23, %v5043_v31  ;;  %v2418_v30 = vmul.f32 %v5786_v17, %v5051_v20  ;;  %v5862_v40 = vmul.f32 %v5796_v11, %v5054_v16 }
 0x1bb   : > { %v5864_v27 = vpop.eup %3375  ;;  %3387 = vpow2.f32 %v1232_v38  ;;  %v1448_v19 = vmul.f32 %v5854_v34, %v4813_v52  ;;  %v1744_v60 = vmul.f32 %v5854_v34, %v6967_v12  ;;  %v2040_v43 = vmul.f32 %v5854_v34, %v4962_v33 }
 0x1bc   : > { %v5872_v23 = vpop.eup %3377  ;;  %3389 = vpow2.f32 %v1280_v54  ;;  %v1465_v17 = vmul.f32 %v5864_v27, %v6968_v39  ;;  %v1761_v11 = vmul.f32 %v5864_v27, %v6969_v24  ;;  %v2057_v58 = vmul.f32 %v5864_v27, %v4967_v46 }
 0x1bd   : > { %v3380_v8 = vpop.eup %3379  ;;  %3391 = vpow2.f32 %v1328_v2  ;;  %v1498_v25 = vmul.f32 %v5872_v23, %v6970_v56  ;;  %v1794_v3 = vmul.f32 %v5872_v23, %v6971_v45  ;;  %v2090_v21 = vmul.f32 %v5872_v23, %v4969_v63 }
 0x1be   : > { %v3382_v48 = vpop.eup %3381  ;;  %v1719_v38 = vmul.f32 0.6931472, %v3380_v8  ;;  %3393 = vpow2.f32 %v1376_v10  ;;  %v1481_v22 = vadd.f32 %v1465_v17, %v1448_v19  ;;  %v1777_v26 = vadd.f32 %v1761_v11, %v1744_v60 }
 0x1bf   : > { %v3384_v42 = vpop.eup %3383  ;;  %v2015_v9 = vmul.f32 0.6931472, %v3382_v48  ;;  %3395 = vpow2.f32 %v1424_v47  ;;  %v2073_v57 = vadd.f32 %v2057_v58, %v2040_v43  ;;  %v2368_v1 = vadd.f32 %v2352_v28, %v2335_v49  ;;  %v7127_v48 = vld [vmem:[#allocation127_spill] sm:$0xff] }
 0x1c0   : > { %v3386_v15 = vpop.eup %3385  ;;  %2807 = vmatmul.f32.gmra.mxu1 %v1719_v38  ;;  %v2311_v44 = vmul.f32 0.6931472, %v3384_v42  ;;  %v1514_v54 = vadd.f32 %v1498_v25, %v1481_v22  ;;  %v1810_v51 = vadd.f32 %v1794_v3, %v1777_v26  ;;  %v2484_v0 = vmul.f32 %v5802_v53, %v5059_v32  ;;  %v7125_v25 = vld [vmem:[#allocation134_spill] sm:$0xff]  ;;  %v7128_v22 = vld [vmem:[#allocation135_spill] sm:$0xff] }
 0x1c1   : > { %v5888_v7 = vpop.eup %3387  ;;  %2872 = vmatmul.f32.gmra.mxu2 %v2015_v9  ;;  %v2605_v62 = vmul.f32 0.6931472, %v3386_v15  ;;  %v2106_v35 = vadd.f32 %v2090_v21, %v2073_v57  ;;  %v2401_v2 = vadd.f32 %v2385_v4, %v2368_v1  ;;  %v2517_v10 = vmul.f32 %v5808_v61, %v5134_v36  ;;  %v7130_v1 = vld [vmem:[#allocation128_spill] sm:$0xff] }
 0x1c2   : > { %v5892_v47 = vpop.eup %3389  ;;  %2937 = vmatmul.f32.gmra.mxu3 %v2311_v44  ;;  %v1531_v49 = vmul.f32 %v5888_v7, %v6972_v37  ;;  %v1827_v28 = vmul.f32 %v5888_v7, %v6973_v14  ;;  %v2123_v53 = vmul.f32 %v5888_v7, %v4974_v5  ;;  %v2550_v19 = vmul.f32 %v5816_v41, %v7114_v59 }
 0x1c3   : > { %v5902_v60 = vpop.eup %3391  ;;  %2999 = vmatmul.f32.gmra.mxu0 %v2605_v62  ;;  %v1564_v61 = vmul.f32 %v5892_v47, %v6974_v18  ;;  %v1860_v4 = vmul.f32 %v5892_v47, %v6993_v50  ;;  %v2156_v43 = vmul.f32 %v5892_v47, %v7107_v55  ;;  %v2434_v17 = vadd.f32 %v2418_v30, %v2401_v2  ;;  %v7129_v30 = vld [vmem:[#allocation144_spill] sm:$0xff]  ;;  %v7132_v2 = vld [vmem:[#allocation146_spill] sm:$0xff] }
 0x1c4   : > { %v5910_v11 = vpop.eup %3393  ;;  %v1547_v58 = vadd.f32 %v1531_v49, %v1514_v54  ;;  %v1597_v8 = vmul.f32 %v5902_v60, %v6994_v29  ;;  %v1843_v41 = vadd.f32 %v1827_v28, %v1810_v51  ;;  %v1893_v3 = vmul.f32 %v5902_v60, %v7125_v25  ;;  %v7131_v54 = vld [vmem:[#allocation136_spill] sm:$0xff]  ;;  %v7133_v28 = vld [vmem:[#allocation147_spill] sm:$0xff] }
 0x1c5   : > { %v5916_v21 = vpop.eup %3395  ;;  %v1630_v38 = vmul.f32 %v5910_v11, %v7127_v48  ;;  %v1926_v26 = vmul.f32 %v5910_v11, %v7128_v22  ;;  %v2139_v42 = vadd.f32 %v2123_v53, %v2106_v35  ;;  %v2189_v9 = vmul.f32 %v5902_v60, %v7129_v30  ;;  %v7134_v48 = vld [vmem:[#allocation73_spill] sm:$0xff] }
 0x1c6   : > { %7126 = vst [vmem:[#allocation122_spill] sm:$0xff] %v5916_v21  ;;  %v1580_v57 = vadd.f32 %v1564_v61, %v1547_v58  ;;  %v1663_v15 = vmul.f32 %v5916_v21, %v7130_v1  ;;  %v1876_v44 = vadd.f32 %v1860_v4, %v1843_v41  ;;  %v1959_v51 = vmul.f32 %v5916_v21, %v7131_v54  ;;  %v7135_v61 = vld [vmem:[#allocation64_spill] sm:$0xff]  ;;  %v7136_v1 = vld [vmem:[#allocation65_spill] sm:$0xff] }
 0x1c7   : > { %v2172_v62 = vadd.f32 %v2156_v43, %v2139_v42  ;;  %v2222_v49 = vmul.f32 %v5910_v11, %v7132_v2  ;;  %v2255_v59 = vmul.f32 %v5916_v21, %v7133_v28  ;;  %v2467_v35 = vadd.f32 %v5862_v40, %v2434_v17  ;;  %v7137_v43 = vld [vmem:[#allocation66_spill] sm:$0xff]  ;;  %v7138_v2 = vld [vmem:[#allocation67_spill] sm:$0xff] }
 0x1c8   : > { %v1613_v53 = vadd.f32 %v1597_v8, %v1580_v57  ;;  %v1909_v22 = vadd.f32 %v1893_v3, %v1876_v44  ;;  %v1064_v58 = vsub.f32 %v7135_v61, %v7134_v48  ;;  %v1112_v4 = vsub.f32 %v7136_v1, %v7134_v48 }
 0x1c9   : > { %v2205_v41 = vadd.f32 %v2189_v9, %v2172_v62  ;;  %v2500_v30 = vadd.f32 %v2484_v0, %v2467_v35  ;;  %v1160_v42 = vsub.f32 %v7137_v43, %v7134_v48  ;;  %v1208_v54 = vsub.f32 %v7138_v2, %v7134_v48  ;;  %v7139_v9 = vld [vmem:[#allocation69_spill] sm:$0xff]  ;;  %v7140_v35 = vld [vmem:[#allocation70_spill] sm:$0xff] }
 0x1ca   : > { %v1646_v25 = vadd.f32 %v1630_v38, %v1613_v53  ;;  %v1942_v21 = vadd.f32 %v1926_v26, %v1909_v22  ;;  %v1090_v28 = vmul.f32 1.442695, %v1064_v58  ;;  %v1138_v40 = vmul.f32 1.442695, %v1112_v4 }
 0x1cb   : > { %v2238_v17 = vadd.f32 %v2222_v49, %v2205_v41  ;;  %v2533_v8 = vadd.f32 %v2517_v10, %v2500_v30  ;;  %v1186_v3 = vmul.f32 1.442695, %v1160_v42  ;;  %v1234_v57 = vmul.f32 1.442695, %v1208_v54 }
 0x1cc   : > { %v1679_v44 = vadd.f32 %v1663_v15, %v1646_v25  ;;  %v1975_v61 = vadd.f32 %v1959_v51, %v1942_v21  ;;  %3397 = vpow2.f32 %v1090_v28  ;;  %v1256_v0 = vsub.f32 %v7139_v9, %v7134_v48  ;;  %v7141_v25 = vld [vmem:[#allocation71_spill] sm:$0xff]  ;;  %v7142_v15 = vld [vmem:[#allocation72_spill] sm:$0xff] }
 0x1cd   : > { %v2271_v1 = vadd.f32 %v2255_v59, %v2238_v17  ;;  %v2566_v62 = vadd.f32 %v2550_v19, %v2533_v8  ;;  %3399 = vpow2.f32 %v1138_v40  ;;  %v1304_v2 = vsub.f32 %v7140_v35, %v7134_v48 }
 0x1ce   : > { %v1695_v38 = vmax.f32 %v1679_v44, 1.1754944e-38  ;;  %v1991_v22 = vmax.f32 %v1975_v61, 1.1754944e-38  ;;  %3401 = vpow2.f32 %v1186_v3  ;;  %v1282_v26 = vmul.f32 1.442695, %v1256_v0 }
 0x1cf   : > { %v2287_v49 = vmax.f32 %v2271_v1, 1.1754944e-38  ;;  %v2582_v10 = vmax.f32 %v2566_v62, 1.1754944e-38  ;;  %3403 = vpow2.f32 %v1234_v57  ;;  %v1330_v30 = vmul.f32 1.442695, %v1304_v2 }
 0x1d0   : > { %3405 = vlog2.f32 %v1695_v38  ;;  %v1352_v21 = vsub.f32 %v7141_v25, %v7134_v48  ;;  %v1400_v59 = vsub.f32 %v7142_v15, %v7134_v48  ;;  %v2336_v19 = vmul.f32 %v5854_v34, %v5035_v13 }
 0x1d1   : > { %3407 = vlog2.f32 %v1991_v22  ;;  %v2353_v54 = vmul.f32 %v5864_v27, %v5038_v6  ;;  %v2386_v51 = vmul.f32 %v5872_v23, %v5043_v31  ;;  %v5957_v28 = vmul.f32 %v5888_v7, %v5051_v20 }
 0x1d2   : > { %v5959_v53 = vpop.eup %3397  ;;  %3409 = vlog2.f32 %v2287_v49  ;;  %v1378_v58 = vmul.f32 1.442695, %v1352_v21  ;;  %v1426_v4 = vmul.f32 1.442695, %v1400_v59  ;;  %v5963_v48 = vmul.f32 %v5892_v47, %v5054_v16 }
 0x1d3   : > { %v5965_v34 = vpop.eup %3399  ;;  %3411 = vlog2.f32 %v2582_v10  ;;  %v1449_v27 = vmul.f32 %v5959_v53, %v4813_v52  ;;  %v1745_v23 = vmul.f32 %v5959_v53, %v6967_v12  ;;  %v2041_v7 = vmul.f32 %v5959_v53, %v4962_v33 }
 0x1d4   : > { %v5973_v41 = vpop.eup %3401  ;;  %3413 = vpow2.f32 %v1282_v26  ;;  %v1466_v43 = vmul.f32 %v5965_v34, %v6968_v39  ;;  %v1762_v47 = vmul.f32 %v5965_v34, %v6969_v24  ;;  %v2058_v42 = vmul.f32 %v5965_v34, %v4967_v46 }
 0x1d5   : > { %v5981_v40 = vpop.eup %3403  ;;  %3415 = vpow2.f32 %v1330_v30  ;;  %v1499_v17 = vmul.f32 %v5973_v41, %v6970_v56  ;;  %v1795_v8 = vmul.f32 %v5973_v41, %v6971_v45  ;;  %v2091_v3 = vmul.f32 %v5973_v41, %v4969_v63 }
 0x1d6   : > { %v3406_v57 = vpop.eup %3405  ;;  %3417 = vpow2.f32 %v1378_v58  ;;  %v1482_v44 = vadd.f32 %v1466_v43, %v1449_v27  ;;  %v1532_v61 = vmul.f32 %v5981_v40, %v6972_v37  ;;  %v1778_v9 = vadd.f32 %v1762_v47, %v1745_v23 }
 0x1d7   : > { %v3408_v0 = vpop.eup %3407  ;;  %v1721_v1 = vmul.f32 0.6931472, %v3406_v57  ;;  %3419 = vpow2.f32 %v1426_v4  ;;  %v1828_v62 = vmul.f32 %v5981_v40, %v6973_v14  ;;  %v2074_v35 = vadd.f32 %v2058_v42, %v2041_v7 }
 0x1d8   : > { %v3410_v2 = vpop.eup %3409  ;;  %v2017_v38 = vmul.f32 0.6931472, %v3408_v0  ;;  %v1515_v22 = vadd.f32 %v1499_v17, %v1482_v44  ;;  %v1811_v26 = vadd.f32 %v1795_v8, %v1778_v9  ;;  %v2124_v49 = vmul.f32 %v5981_v40, %v4974_v5  ;;  %v7144_v8 = vld [vmem:[#allocation144_spill] sm:$0xff]  ;;  %v7146_v9 = vld [vmem:[#allocation127_spill] sm:$0xff] }
 0x1d9   : > { %v3412_v10 = vpop.eup %3411  ;;  %2810 = vmatmul.f32.gmra.mxu1 %v1721_v1  ;;  %v2313_v30 = vmul.f32 0.6931472, %v3410_v2  ;;  %v2107_v25 = vadd.f32 %v2091_v3, %v2074_v35  ;;  %v2369_v21 = vadd.f32 %v2353_v54, %v2336_v19  ;;  %v2485_v15 = vmul.f32 %v5902_v60, %v5059_v32  ;;  %v7148_v2 = vld [vmem:[#allocation128_spill] sm:$0xff] }
 0x1da   : > { %v5997_v59 = vpop.eup %3413  ;;  %2875 = vmatmul.f32.gmra.mxu2 %v2017_v38  ;;  %v2607_v58 = vmul.f32 0.6931472, %v3412_v10  ;;  %v1548_v4 = vadd.f32 %v1532_v61, %v1515_v22  ;;  %v1844_v27 = vadd.f32 %v1828_v62, %v1811_v26  ;;  %v2518_v23 = vmul.f32 %v5910_v11, %v5134_v36  ;;  %v7143_v11 = vld [vmem:[#allocation134_spill] sm:$0xff]  ;;  %v7147_v62 = vld [vmem:[#allocation135_spill] sm:$0xff]  ;;  %v7149_v22 = vld [vmem:[#allocation136_spill] sm:$0xff] }
 0x1db   : > { %v6001_v7 = vpop.eup %3415  ;;  %2940 = vmatmul.f32.gmra.mxu3 %v2313_v30  ;;  %v1565_v43 = vmul.f32 %v5997_v59, %v6974_v18  ;;  %v1861_v19 = vmul.f32 %v5997_v59, %v6993_v50  ;;  %v2140_v54 = vadd.f32 %v2124_v49, %v2107_v25  ;;  %v2157_v60 = vmul.f32 %v5997_v59, %v7107_v55  ;;  %v7150_v10 = vld [vmem:[#allocation146_spill] sm:$0xff] }
 0x1dc   : > { %v6009_v47 = vpop.eup %3417  ;;  %3002 = vmatmul.f32.gmra.mxu0 %v2607_v58  ;;  %v1598_v42 = vmul.f32 %v6001_v7, %v6994_v29  ;;  %v1894_v17 = vmul.f32 %v6001_v7, %v7143_v11  ;;  %v2190_v3 = vmul.f32 %v6001_v7, %v7144_v8  ;;  %v2402_v57 = vadd.f32 %v2386_v51, %v2369_v21  ;;  %v7151_v21 = vld [vmem:[#allocation147_spill] sm:$0xff] }
 0x1dd   : > { %v6017_v44 = vpop.eup %3419  ;;  %v1581_v61 = vadd.f32 %v1565_v43, %v1548_v4  ;;  %v1631_v0 = vmul.f32 %v6009_v47, %v7146_v9  ;;  %v1877_v1 = vadd.f32 %v1861_v19, %v1844_v27  ;;  %v1927_v35 = vmul.f32 %v6009_v47, %v7147_v62  ;;  %v7152_v43 = vld [vmem:[#allocation75_spill] sm:$0xff]  ;;  %v7153_v19 = vld [vmem:[#allocation122_spill] sm:$0xff] }
 0x1de   : > { %7145 = vst [vmem:[#allocation131_spill] sm:$0xff] %v6017_v44  ;;  %v1664_v38 = vmul.f32 %v6017_v44, %v7148_v2  ;;  %v1960_v26 = vmul.f32 %v6017_v44, %v7149_v22  ;;  %v2173_v49 = vadd.f32 %v2157_v60, %v2140_v54  ;;  %v2223_v51 = vmul.f32 %v6009_v47, %v7150_v10  ;;  %v7154_v62 = vld [vmem:[#allocation107_spill] sm:$0xff]  ;;  %v7155_v2 = vld [vmem:[#allocation94_spill] sm:$0xff] }
 0x1df   : > { %v1614_v30 = vadd.f32 %v1598_v42, %v1581_v61  ;;  %v1910_v25 = vadd.f32 %v1894_v17, %v1877_v1  ;;  %v2256_v58 = vmul.f32 %v6017_v44, %v7151_v21  ;;  %v2435_v4 = vadd.f32 %v5957_v28, %v2402_v57  ;;  %v7156_v22 = vld [vmem:[#allocation95_spill] sm:$0xff]  ;;  %v7157_v17 = vld [vmem:[#allocation96_spill] sm:$0xff] }
 0x1e0   : > { %v2206_v27 = vadd.f32 %v2190_v3, %v2173_v49  ;;  %v2551_v8 = vmul.f32 %v7153_v19, %v7152_v43  ;;  %v1065_v9 = vsub.f32 %v7155_v2, %v7154_v62  ;;  %v1113_v54 = vsub.f32 %v7156_v22, %v7154_v62  ;;  %v7158_v3 = vld [vmem:[#allocation98_spill] sm:$0xff] }
 0x1e1   : > { %v1647_v60 = vadd.f32 %v1631_v0, %v1614_v30  ;;  %v1943_v55 = vadd.f32 %v1927_v35, %v1910_v25  ;;  %v2468_v42 = vadd.f32 %v5963_v48, %v2435_v4  ;;  %v1161_v61 = vsub.f32 %v7157_v17, %v7154_v62  ;;  %v7159_v0 = vld [vmem:[#allocation99_spill] sm:$0xff]  ;;  %v7160_v4 = vld [vmem:[#allocation100_spill] sm:$0xff] }
 0x1e2   : > { %v2239_v1 = vadd.f32 %v2223_v51, %v2206_v27  ;;  %v1092_v44 = vmul.f32 1.442695, %v1065_v9  ;;  %v1140_v28 = vmul.f32 1.442695, %v1113_v54  ;;  %v1209_v57 = vsub.f32 %v7158_v3, %v7154_v62 }
 0x1e3   : > { %v1680_v49 = vadd.f32 %v1664_v38, %v1647_v60  ;;  %v1976_v19 = vadd.f32 %v1960_v26, %v1943_v55  ;;  %v2501_v43 = vadd.f32 %v2485_v15, %v2468_v42  ;;  %v1188_v2 = vmul.f32 1.442695, %v1161_v61  ;;  %v7161_v15 = vld [vmem:[#allocation101_spill] sm:$0xff] }
 0x1e4   : > { %v2272_v21 = vadd.f32 %v2256_v58, %v2239_v1  ;;  %3421 = vpow2.f32 %v1092_v44  ;;  %v1236_v22 = vmul.f32 1.442695, %v1209_v57  ;;  %v1257_v35 = vsub.f32 %v7159_v0, %v7154_v62  ;;  %v7162_v44 = vld [vmem:[#allocation102_spill] sm:$0xff] }
 0x1e5   : > { %v1696_v48 = vmax.f32 %v1680_v49, 1.1754944e-38  ;;  %v1992_v30 = vmax.f32 %v1976_v19, 1.1754944e-38  ;;  %v2534_v25 = vadd.f32 %v2518_v23, %v2501_v43  ;;  %3423 = vpow2.f32 %v1140_v28 }
 0x1e6   : > { %v2288_v51 = vmax.f32 %v2272_v21, 1.1754944e-38  ;;  %3425 = vpow2.f32 %v1188_v2  ;;  %v1284_v9 = vmul.f32 1.442695, %v1257_v35  ;;  %v1305_v27 = vsub.f32 %v7160_v4, %v7154_v62 }
 0x1e7   : > { %3427 = vlog2.f32 %v1696_v48  ;;  %v2567_v55 = vadd.f32 %v2551_v8, %v2534_v25  ;;  %v1353_v38 = vsub.f32 %v7161_v15, %v7154_v62  ;;  %v1401_v26 = vsub.f32 %v7162_v44, %v7154_v62 }
 0x1e8   : > { %3429 = vlog2.f32 %v1992_v30  ;;  %v1332_v58 = vmul.f32 1.442695, %v1305_v27  ;;  %v2337_v23 = vmul.f32 %v5959_v53, %v5035_v13  ;;  %v2354_v21 = vmul.f32 %v5965_v34, %v5038_v6 }
 0x1e9   : > { %3431 = vlog2.f32 %v2288_v51  ;;  %v2583_v43 = vmax.f32 %v2567_v55, 1.1754944e-38  ;;  %v1380_v54 = vmul.f32 1.442695, %v1353_v38  ;;  %v1428_v60 = vmul.f32 1.442695, %v1401_v26 }
 0x1ea   : > { %v6055_v42 = vpop.eup %3421  ;;  %3433 = vpow2.f32 %v1236_v22  ;;  %v2370_v8 = vadd.f32 %v2354_v21, %v2337_v23  ;;  %v2387_v17 = vmul.f32 %v5973_v41, %v5043_v31  ;;  %v2420_v62 = vmul.f32 %v5981_v40, %v5051_v20 }
 0x1eb   : > { %v6061_v61 = vpop.eup %3423  ;;  %3435 = vlog2.f32 %v2583_v43  ;;  %v1450_v53 = vmul.f32 %v6055_v42, %v4813_v52  ;;  %v1746_v34 = vmul.f32 %v6055_v42, %v6967_v12  ;;  %v2042_v1 = vmul.f32 %v6055_v42, %v4962_v33 }
 0x1ec   : > { %v6069_v28 = vpop.eup %3425  ;;  %3437 = vpow2.f32 %v1284_v9  ;;  %v1467_v41 = vmul.f32 %v6061_v61, %v6968_v39  ;;  %v1763_v40 = vmul.f32 %v6061_v61, %v6969_v24  ;;  %v2059_v3 = vmul.f32 %v6061_v61, %v4967_v46 }
 0x1ed   : > { %v3428_v57 = vpop.eup %3427  ;;  %3439 = vpow2.f32 %v1332_v58  ;;  %v1500_v49 = vmul.f32 %v6069_v28, %v6970_v56  ;;  %v1796_v19 = vmul.f32 %v6069_v28, %v6971_v45  ;;  %v2092_v2 = vmul.f32 %v6069_v28, %v4969_v63 }
 0x1ee   : > { %v3430_v22 = vpop.eup %3429  ;;  %v1723_v0 = vmul.f32 0.6931472, %v3428_v57  ;;  %3441 = vpow2.f32 %v1380_v54  ;;  %v1483_v35 = vadd.f32 %v1467_v41, %v1450_v53  ;;  %v1779_v48 = vadd.f32 %v1763_v40, %v1746_v34 }
 0x1ef   : > { %v3432_v30 = vpop.eup %3431  ;;  %v2019_v25 = vmul.f32 0.6931472, %v3430_v22  ;;  %3443 = vpow2.f32 %v1428_v60  ;;  %v2075_v51 = vadd.f32 %v2059_v3, %v2042_v1  ;;  %v2403_v9 = vadd.f32 %v2387_v17, %v2370_v8  ;;  %v7163_v3 = vld [vmem:[#allocation143_spill] sm:$0xff] }
 0x1f0   : > { %v6083_v4 = vpop.eup %3433  ;;  %2813 = vmatmul.f32.gmra.mxu1 %v1723_v0  ;;  %v2315_v27 = vmul.f32 0.6931472, %v3432_v30  ;;  %v1516_v55 = vadd.f32 %v1500_v49, %v1483_v35  ;;  %v1812_v15 = vadd.f32 %v1796_v19, %v1779_v48  ;;  %v2453_v38 = vmul.f32 %v5997_v59, %v5054_v16  ;;  %v7165_v35 = vld [vmem:[#allocation135_spill] sm:$0xff]  ;;  %v7166_v30 = vld [vmem:[#allocation128_spill] sm:$0xff] }
 0x1f1   : > { %v3436_v44 = vpop.eup %3435  ;;  %2878 = vmatmul.f32.gmra.mxu2 %v2019_v25  ;;  %v1533_v26 = vmul.f32 %v6083_v4, %v6972_v37  ;;  %v1829_v58 = vmul.f32 %v6083_v4, %v6973_v14  ;;  %v2108_v23 = vadd.f32 %v2092_v2, %v2075_v51  ;;  %v2125_v21 = vmul.f32 %v6083_v4, %v4974_v5  ;;  %v7164_v2 = vld [vmem:[#allocation127_spill] sm:$0xff]  ;;  %v7167_v51 = vld [vmem:[#allocation136_spill] sm:$0xff] }
 0x1f2   : > { %v6093_v43 = vpop.eup %3437  ;;  %2943 = vmatmul.f32.gmra.mxu3 %v2315_v27  ;;  %v2609_v54 = vmul.f32 0.6931472, %v3436_v44  ;;  %v2436_v60 = vadd.f32 %v2420_v62, %v2403_v9  ;;  %v2486_v59 = vmul.f32 %v6001_v7, %v5059_v32  ;;  %v2519_v8 = vmul.f32 %v6009_v47, %v5134_v36 }
 0x1f3   : > { %v6099_v17 = vpop.eup %3439  ;;  %v1549_v53 = vadd.f32 %v1533_v26, %v1516_v55  ;;  %v1566_v34 = vmul.f32 %v6093_v43, %v6974_v18  ;;  %v1845_v1 = vadd.f32 %v1829_v58, %v1812_v15  ;;  %v1862_v41 = vmul.f32 %v6093_v43, %v6993_v50  ;;  %v7168_v55 = vld [vmem:[#allocation144_spill] sm:$0xff] }
 0x1f4   : > { %v6105_v40 = vpop.eup %3441  ;;  %3005 = vmatmul.f32.gmra.mxu0 %v2609_v54  ;;  %v1599_v62 = vmul.f32 %v6099_v17, %v6994_v29  ;;  %v1895_v7 = vmul.f32 %v6099_v17, %v7143_v11  ;;  %v2141_v47 = vadd.f32 %v2125_v21, %v2108_v23  ;;  %v2158_v57 = vmul.f32 %v6093_v43, %v7163_v3  ;;  %v7169_v23 = vld [vmem:[#allocation147_spill] sm:$0xff] }
 0x1f5   : > { %v6113_v49 = vpop.eup %3443  ;;  %v1582_v19 = vadd.f32 %v1566_v34, %v1549_v53  ;;  %v1632_v22 = vmul.f32 %v6105_v40, %v7164_v2  ;;  %v1878_v0 = vadd.f32 %v1862_v41, %v1845_v1  ;;  %v1928_v48 = vmul.f32 %v6105_v40, %v7165_v35  ;;  %v7170_v34 = vld [vmem:[#allocation75_spill] sm:$0xff] }
 0x1f6   : > { %v1665_v25 = vmul.f32 %v6113_v49, %v7166_v30  ;;  %v1961_v9 = vmul.f32 %v6113_v49, %v7167_v51  ;;  %v2174_v27 = vadd.f32 %v2158_v57, %v2141_v47  ;;  %v2191_v15 = vmul.f32 %v6099_v17, %v7168_v55  ;;  %v7171_v1 = vld [vmem:[#allocation131_spill] sm:$0xff]  ;;  %v7174_v55 = vld [vmem:[#allocation20_spill] sm:$0xff] }
 0x1f7   : > { %v1615_v44 = vadd.f32 %v1599_v62, %v1582_v19  ;;  %v1911_v26 = vadd.f32 %v1895_v7, %v1878_v0  ;;  %v2224_v58 = vmul.f32 %v6105_v40, %v7150_v10  ;;  %v2257_v21 = vmul.f32 %v6113_v49, %v7169_v23  ;;  %v7172_v30 = vld [vmem:[#allocation31_spill] sm:$0xff]  ;;  %v7175_v7 = vld [vmem:[#allocation21_spill] sm:$0xff] }
 0x1f8   : > { %v2207_v54 = vadd.f32 %v2191_v15, %v2174_v27  ;;  %v2469_v53 = vadd.f32 %v2453_v38, %v2436_v60  ;;  %v2552_v41 = vmul.f32 %v7171_v1, %v7170_v34  ;;  %v7173_v35 = vld [vmem:[#allocation19_spill] sm:$0xff]  ;;  %v1114_v62 = vsub.f32 %v7174_v55, %v7172_v30  ;;  %v7177_v55 = vld [vmem:[#allocation24_spill] sm:$0xff] }
 0x1f9   : > { %v1066_v51 = vsub.f32 %v7173_v35, %v7172_v30  ;;  %v1648_v47 = vadd.f32 %v1632_v22, %v1615_v44  ;;  %v1944_v57 = vadd.f32 %v1928_v48, %v1911_v26  ;;  %v1162_v19 = vsub.f32 %v7175_v7, %v7172_v30  ;;  %v7176_v27 = vld [vmem:[#allocation23_spill] sm:$0xff] }
 0x1fa   : > { %v2240_v0 = vadd.f32 %v2224_v58, %v2207_v54  ;;  %v2502_v10 = vadd.f32 %v2486_v59, %v2469_v53  ;;  %v1210_v38 = vsub.f32 %v7176_v27, %v7172_v30  ;;  %v1142_v1 = vmul.f32 1.442695, %v1114_v62 }
 0x1fb   : > { %v1094_v2 = vmul.f32 1.442695, %v1066_v51  ;;  %v1681_v60 = vadd.f32 %v1665_v25, %v1648_v47  ;;  %v1977_v15 = vadd.f32 %v1961_v9, %v1944_v57  ;;  %v1190_v23 = vmul.f32 1.442695, %v1162_v19  ;;  %v7178_v51 = vld [vmem:[#allocation25_spill] sm:$0xff]  ;;  %v7179_v9 = vld [vmem:[#allocation26_spill] sm:$0xff] }
 0x1fc   : > { %v2273_v11 = vadd.f32 %v2257_v21, %v2240_v0  ;;  %v2535_v35 = vadd.f32 %v2519_v8, %v2502_v10  ;;  %v1238_v22 = vmul.f32 1.442695, %v1210_v38  ;;  %v1258_v26 = vsub.f32 %v7177_v55, %v7172_v30  ;;  %v7180_v10 = vld [vmem:[#allocation27_spill] sm:$0xff] }
 0x1fd   : > { %3445 = vpow2.f32 %v1094_v2  ;;  %v1697_v48 = vmax.f32 %v1681_v60, 1.1754944e-38  ;;  %v1993_v44 = vmax.f32 %v1977_v15, 1.1754944e-38  ;;  %v1306_v54 = vsub.f32 %v7178_v51, %v7172_v30 }
 0x1fe   : > { %3447 = vpow2.f32 %v1142_v1  ;;  %v2289_v58 = vmax.f32 %v2273_v11, 1.1754944e-38  ;;  %v2568_v59 = vadd.f32 %v2552_v41, %v2535_v35  ;;  %v1286_v25 = vmul.f32 1.442695, %v1258_v26 }
 0x1ff   : > { %3449 = vpow2.f32 %v1190_v23  ;;  %v1354_v21 = vsub.f32 %v7179_v9, %v7172_v30  ;;  %v1402_v8 = vsub.f32 %v7180_v10, %v7172_v30  ;;  %v1334_v53 = vmul.f32 1.442695, %v1306_v54 }
 0x200   : > { %3451 = vlog2.f32 %v1697_v48  ;;  %v2584_v2 = vmax.f32 %v2568_v59, 1.1754944e-38  ;;  %v2338_v47 = vmul.f32 %v6055_v42, %v5035_v13  ;;  %v2355_v41 = vmul.f32 %v6061_v61, %v5038_v6 }
 0x201   : > { %3453 = vlog2.f32 %v1993_v44  ;;  %v1382_v11 = vmul.f32 1.442695, %v1354_v21  ;;  %v1430_v23 = vmul.f32 1.442695, %v1402_v8  ;;  %v2388_v62 = vmul.f32 %v6069_v28, %v5043_v31 }
 0x202   : > { %3455 = vlog2.f32 %v2289_v58  ;;  %v2421_v30 = vmul.f32 %v6083_v4, %v5051_v20  ;;  %v6159_v7 = vmul.f32 %v6093_v43, %v5054_v16  ;;  %v2371_v59 = vadd.f32 %v2355_v41, %v2338_v47 }
 0x203   : > { %v6151_v57 = vpop.eup %3445  ;;  %3457 = vlog2.f32 %v2584_v2  ;;  %v2487_v21 = vmul.f32 %v6099_v17, %v5059_v32 }
 0x204   : > { %v6161_v42 = vpop.eup %3447  ;;  %3459 = vpow2.f32 %v1238_v22  ;;  %v1451_v19 = vmul.f32 %v6151_v57, %v4813_v52  ;;  %v1747_v61 = vmul.f32 %v6151_v57, %v6967_v12  ;;  %v2043_v0 = vmul.f32 %v6151_v57, %v4962_v33 }
 0x205   : > { %v6169_v28 = vpop.eup %3449  ;;  %3461 = vpow2.f32 %v1286_v25  ;;  %v1468_v4 = vmul.f32 %v6161_v42, %v6968_v39  ;;  %v1764_v43 = vmul.f32 %v6161_v42, %v6969_v24  ;;  %v2060_v27 = vmul.f32 %v6161_v42, %v4967_v46 }
 0x206   : > { %v3452_v38 = vpop.eup %3451  ;;  %3463 = vpow2.f32 %v1334_v53  ;;  %v1501_v60 = vmul.f32 %v6169_v28, %v6970_v56  ;;  %v1797_v15 = vmul.f32 %v6169_v28, %v6971_v45  ;;  %v2093_v1 = vmul.f32 %v6169_v28, %v4969_v63 }
 0x207   : > { %v3454_v35 = vpop.eup %3453  ;;  %v1725_v22 = vmul.f32 0.6931472, %v3452_v38  ;;  %3465 = vpow2.f32 %v1382_v11  ;;  %v1484_v48 = vadd.f32 %v1468_v4, %v1451_v19  ;;  %v1780_v44 = vadd.f32 %v1764_v43, %v1747_v61 }
 0x208   : > { %v3456_v55 = vpop.eup %3455  ;;  %v2021_v26 = vmul.f32 0.6931472, %v3454_v35  ;;  %3467 = vpow2.f32 %v1430_v23  ;;  %v2076_v58 = vadd.f32 %v2060_v27, %v2043_v0  ;;  %v2404_v53 = vadd.f32 %v2388_v62, %v2371_v59  ;;  %v7183_v35 = vld [vmem:[#allocation127_spill] sm:$0xff]  ;;  %v7186_v59 = vld [vmem:[#allocation128_spill] sm:$0xff] }
 0x209   : > { %v3458_v51 = vpop.eup %3457  ;;  %2816 = vmatmul.f32.gmra.mxu1 %v1725_v22  ;;  %v2317_v54 = vmul.f32 0.6931472, %v3456_v55  ;;  %v1517_v25 = vadd.f32 %v1501_v60, %v1484_v48  ;;  %v1813_v9 = vadd.f32 %v1797_v15, %v1780_v44  ;;  %v2520_v11 = vmul.f32 %v6105_v40, %v5134_v36  ;;  %v7181_v60 = vld [vmem:[#allocation134_spill] sm:$0xff]  ;;  %v7184_v48 = vld [vmem:[#allocation135_spill] sm:$0xff] }
 0x20a   : > { %v6185_v10 = vpop.eup %3459  ;;  %2881 = vmatmul.f32.gmra.mxu2 %v2021_v26  ;;  %v2611_v8 = vmul.f32 0.6931472, %v3458_v51  ;;  %v2109_v2 = vadd.f32 %v2093_v1, %v2076_v58  ;;  %v2553_v19 = vmul.f32 %v6113_v49, %v7170_v34  ;;  %v2437_v4 = vadd.f32 %v2421_v30, %v2404_v53  ;;  %v7185_v30 = vld [vmem:[#allocation144_spill] sm:$0xff]  ;;  %v7188_v53 = vld [vmem:[#allocation146_spill] sm:$0xff] }
 0x20b   : > { %v6189_v23 = vpop.eup %3461  ;;  %2946 = vmatmul.f32.gmra.mxu3 %v2317_v54  ;;  %v1534_v47 = vmul.f32 %v6185_v10, %v6972_v37  ;;  %v1830_v41 = vmul.f32 %v6185_v10, %v6973_v14  ;;  %v2126_v17 = vmul.f32 %v6185_v10, %v4974_v5 }
 0x20c   : > { %v6199_v61 = vpop.eup %3463  ;;  %3008 = vmatmul.f32.gmra.mxu0 %v2611_v8  ;;  %v1567_v40 = vmul.f32 %v6189_v23, %v6974_v18  ;;  %v1863_v62 = vmul.f32 %v6189_v23, %v6993_v50  ;;  %v2159_v0 = vmul.f32 %v6189_v23, %v7163_v3 }
 0x20d   : > { %v6207_v43 = vpop.eup %3465  ;;  %v1550_v27 = vadd.f32 %v1534_v47, %v1517_v25  ;;  %v1600_v38 = vmul.f32 %v6199_v61, %v6994_v29  ;;  %v1846_v49 = vadd.f32 %v1830_v41, %v1813_v9  ;;  %v1896_v15 = vmul.f32 %v6199_v61, %v7181_v60  ;;  %v7187_v25 = vld [vmem:[#allocation136_spill] sm:$0xff]  ;;  %v7189_v41 = vld [vmem:[#allocation147_spill] sm:$0xff] }
 0x20e   : > { %v6213_v1 = vpop.eup %3467  ;;  %v1633_v22 = vmul.f32 %v6207_v43, %v7183_v35  ;;  %v1929_v44 = vmul.f32 %v6207_v43, %v7184_v48  ;;  %v2142_v55 = vadd.f32 %v2126_v17, %v2109_v2  ;;  %v2192_v26 = vmul.f32 %v6199_v61, %v7185_v30  ;;  %v7190_v35 = vld [vmem:[#allocation58_spill] sm:$0xff] }
 0x20f   : > { %7182 = vst [vmem:[#allocation123_spill] sm:$0xff] %v6213_v1  ;;  %v1583_v58 = vadd.f32 %v1567_v40, %v1550_v27  ;;  %v1666_v51 = vmul.f32 %v6213_v1, %v7186_v59  ;;  %v1879_v54 = vadd.f32 %v1863_v62, %v1846_v49  ;;  %v1962_v9 = vmul.f32 %v6213_v1, %v7187_v25  ;;  %v7191_v40 = vld [vmem:[#allocation47_spill] sm:$0xff]  ;;  %v7192_v59 = vld [vmem:[#allocation48_spill] sm:$0xff] }
 0x210   : > { %v2175_v8 = vadd.f32 %v2159_v0, %v2142_v55  ;;  %v2225_v47 = vmul.f32 %v6207_v43, %v7188_v53  ;;  %v2258_v34 = vmul.f32 %v6213_v1, %v7189_v41  ;;  %v2470_v2 = vadd.f32 %v6159_v7, %v2437_v4  ;;  %v7193_v0 = vld [vmem:[#allocation49_spill] sm:$0xff]  ;;  %v7194_v53 = vld [vmem:[#allocation50_spill] sm:$0xff] }
 0x211   : > { %v1616_v17 = vadd.f32 %v1600_v38, %v1583_v58  ;;  %v1912_v48 = vadd.f32 %v1896_v15, %v1879_v54  ;;  %v1067_v27 = vsub.f32 %v7191_v40, %v7190_v35  ;;  %v1115_v62 = vsub.f32 %v7192_v59, %v7190_v35 }
 0x212   : > { %v2208_v49 = vadd.f32 %v2192_v26, %v2175_v8  ;;  %v2503_v30 = vadd.f32 %v2487_v21, %v2470_v2  ;;  %v1163_v55 = vsub.f32 %v7193_v0, %v7190_v35  ;;  %v1211_v25 = vsub.f32 %v7194_v53, %v7190_v35  ;;  %v7195_v26 = vld [vmem:[#allocation51_spill] sm:$0xff]  ;;  %v7196_v2 = vld [vmem:[#allocation52_spill] sm:$0xff] }
 0x213   : > { %v1649_v60 = vadd.f32 %v1633_v22, %v1616_v17  ;;  %v1945_v1 = vadd.f32 %v1929_v44, %v1912_v48  ;;  %v1096_v41 = vmul.f32 1.442695, %v1067_v27  ;;  %v1144_v7 = vmul.f32 1.442695, %v1115_v62 }
 0x214   : > { %v2241_v4 = vadd.f32 %v2225_v47, %v2208_v49  ;;  %v2536_v38 = vadd.f32 %v2520_v11, %v2503_v30  ;;  %v1192_v15 = vmul.f32 1.442695, %v1163_v55  ;;  %v1240_v58 = vmul.f32 1.442695, %v1211_v25 }
 0x215   : > { %v1682_v54 = vadd.f32 %v1666_v51, %v1649_v60  ;;  %v1978_v40 = vadd.f32 %v1962_v9, %v1945_v1  ;;  %3469 = vpow2.f32 %v1096_v41  ;;  %v1259_v21 = vsub.f32 %v7195_v26, %v7190_v35  ;;  %v7197_v60 = vld [vmem:[#allocation53_spill] sm:$0xff]  ;;  %v7198_v51 = vld [vmem:[#allocation54_spill] sm:$0xff] }
 0x216   : > { %v2274_v59 = vadd.f32 %v2258_v34, %v2241_v4  ;;  %v2569_v8 = vadd.f32 %v2553_v19, %v2536_v38  ;;  %3471 = vpow2.f32 %v1144_v7  ;;  %v1307_v53 = vsub.f32 %v7196_v2, %v7190_v35 }
 0x217   : > { %v1698_v22 = vmax.f32 %v1682_v54, 1.1754944e-38  ;;  %v1994_v48 = vmax.f32 %v1978_v40, 1.1754944e-38  ;;  %3473 = vpow2.f32 %v1192_v15  ;;  %v1288_v44 = vmul.f32 1.442695, %v1259_v21 }
 0x218   : > { %v2290_v47 = vmax.f32 %v2274_v59, 1.1754944e-38  ;;  %v2585_v11 = vmax.f32 %v2569_v8, 1.1754944e-38  ;;  %3475 = vpow2.f32 %v1240_v58  ;;  %v1336_v30 = vmul.f32 1.442695, %v1307_v53 }
 0x219   : > { %3477 = vlog2.f32 %v1698_v22  ;;  %v1355_v1 = vsub.f32 %v7197_v60, %v7190_v35  ;;  %v1403_v34 = vsub.f32 %v7198_v51, %v7190_v35  ;;  %v2339_v19 = vmul.f32 %v6151_v57, %v5035_v13 }
 0x21a   : > { %3479 = vlog2.f32 %v1994_v48  ;;  %v2356_v25 = vmul.f32 %v6161_v42, %v5038_v6  ;;  %v2389_v9 = vmul.f32 %v6169_v28, %v5043_v31  ;;  %v6254_v41 = vmul.f32 %v6185_v10, %v5051_v20 }
 0x21b   : > { %v6256_v17 = vpop.eup %3469  ;;  %3481 = vlog2.f32 %v2290_v47  ;;  %v1384_v27 = vmul.f32 1.442695, %v1355_v1  ;;  %v1432_v62 = vmul.f32 1.442695, %v1403_v34  ;;  %v6260_v35 = vmul.f32 %v6189_v23, %v5054_v16 }
 0x21c   : > { %v6262_v57 = vpop.eup %3471  ;;  %3483 = vlog2.f32 %v2585_v11  ;;  %v1452_v42 = vmul.f32 %v6256_v17, %v4813_v52  ;;  %v1748_v28 = vmul.f32 %v6256_v17, %v6967_v12  ;;  %v2044_v10 = vmul.f32 %v6256_v17, %v4962_v33 }
 0x21d   : > { %v6270_v49 = vpop.eup %3473  ;;  %3485 = vpow2.f32 %v1288_v44  ;;  %v1469_v0 = vmul.f32 %v6262_v57, %v6968_v39  ;;  %v1765_v23 = vmul.f32 %v6262_v57, %v6969_v24  ;;  %v2061_v55 = vmul.f32 %v6262_v57, %v4967_v46 }
 0x21e   : > { %v6278_v7 = vpop.eup %3475  ;;  %3487 = vpow2.f32 %v1336_v30  ;;  %v1502_v4 = vmul.f32 %v6270_v49, %v6970_v56  ;;  %v1798_v38 = vmul.f32 %v6270_v49, %v6971_v45  ;;  %v2094_v15 = vmul.f32 %v6270_v49, %v4969_v63 }
 0x21f   : > { %v3478_v58 = vpop.eup %3477  ;;  %3489 = vpow2.f32 %v1384_v27  ;;  %v1485_v54 = vadd.f32 %v1469_v0, %v1452_v42  ;;  %v1535_v40 = vmul.f32 %v6278_v7, %v6972_v37  ;;  %v1781_v26 = vadd.f32 %v1765_v23, %v1748_v28 }
 0x220   : > { %v3480_v21 = vpop.eup %3479  ;;  %v1727_v59 = vmul.f32 0.6931472, %v3478_v58  ;;  %3491 = vpow2.f32 %v1432_v62  ;;  %v1831_v8 = vmul.f32 %v6278_v7, %v6973_v14  ;;  %v2077_v2 = vadd.f32 %v2061_v55, %v2044_v10 }
 0x221   : > { %v3482_v53 = vpop.eup %3481  ;;  %v2023_v22 = vmul.f32 0.6931472, %v3480_v21  ;;  %v1518_v48 = vadd.f32 %v1502_v4, %v1485_v54  ;;  %v1814_v44 = vadd.f32 %v1798_v38, %v1781_v26  ;;  %v2127_v47 = vmul.f32 %v6278_v7, %v4974_v5  ;;  %v7200_v38 = vld [vmem:[#allocation144_spill] sm:$0xff]  ;;  %v7203_v21 = vld [vmem:[#allocation127_spill] sm:$0xff] }
 0x222   : > { %v3484_v11 = vpop.eup %3483  ;;  %2819 = vmatmul.f32.gmra.mxu1 %v1727_v59  ;;  %v2319_v30 = vmul.f32 0.6931472, %v3482_v53  ;;  %v2110_v60 = vadd.f32 %v2094_v15, %v2077_v2  ;;  %v2372_v1 = vadd.f32 %v2356_v25, %v2339_v19  ;;  %v2488_v51 = vmul.f32 %v6199_v61, %v5059_v32  ;;  %v7204_v2 = vld [vmem:[#allocation135_spill] sm:$0xff] }
 0x223   : > { %v6294_v34 = vpop.eup %3485  ;;  %2884 = vmatmul.f32.gmra.mxu2 %v2023_v22  ;;  %v2613_v27 = vmul.f32 0.6931472, %v3484_v11  ;;  %v1551_v62 = vadd.f32 %v1535_v40, %v1518_v48  ;;  %v1847_v42 = vadd.f32 %v1831_v8, %v1814_v44  ;;  %v2521_v28 = vmul.f32 %v6207_v43, %v5134_v36  ;;  %v7199_v43 = vld [vmem:[#allocation134_spill] sm:$0xff]  ;;  %v6316_v40 = vpop.f32.mrf.mxu1  ;;  %v7205_v22 = vld [vmem:[#allocation128_spill] sm:$0xff] }
 0x224   : > { %v6298_v10 = vpop.eup %3487  ;;  %2949 = vmatmul.f32.gmra.mxu3 %v2319_v30  ;;  %v1568_v0 = vmul.f32 %v6294_v34, %v6974_v18  ;;  %v1864_v19 = vmul.f32 %v6294_v34, %v6993_v50  ;;  %v2143_v25 = vadd.f32 %v2127_v47, %v2110_v60  ;;  %v2160_v61 = vmul.f32 %v6294_v34, %v7163_v3  ;;  %v7206_v44 = vld [vmem:[#allocation136_spill] sm:$0xff] }
 0x225   : > { %v6306_v23 = vpop.eup %3489  ;;  %3011 = vmatmul.f32.gmra.mxu0 %v2613_v27  ;;  %v1601_v55 = vmul.f32 %v6298_v10, %v6994_v29  ;;  %v1897_v4 = vmul.f32 %v6298_v10, %v7199_v43  ;;  %v2193_v15 = vmul.f32 %v6298_v10, %v7200_v38  ;;  %v2405_v58 = vadd.f32 %v2389_v9, %v2372_v1  ;;  %v7207_v9 = vld [vmem:[#allocation146_spill] sm:$0xff]  ;;  %v7208_v27 = vld [vmem:[#allocation147_spill] sm:$0xff] }
 0x226   : > { %v6314_v54 = vpop.eup %3491  ;;  %7202 = vst [vmem:[#allocation125_spill] sm:$0xff] %v6316_v40  ;;  %v1584_v26 = vadd.f32 %v1568_v0, %v1551_v62  ;;  %v1634_v59 = vmul.f32 %v6306_v23, %v7203_v21  ;;  %v1880_v8 = vadd.f32 %v1864_v19, %v1847_v42  ;;  %v1930_v53 = vmul.f32 %v6306_v23, %v7204_v2  ;;  %v7209_v19 = vld [vmem:[#allocation75_spill] sm:$0xff]  ;;  %v7211_v2 = vld [vmem:[#allocation88_spill] sm:$0xff] }
 0x227   : > { %7201 = vst [vmem:[#allocation132_spill] sm:$0xff] %v6314_v54  ;;  %v1667_v48 = vmul.f32 %v6314_v54, %v7205_v22  ;;  %v1963_v47 = vmul.f32 %v6314_v54, %v7206_v44  ;;  %v2176_v11 = vadd.f32 %v2160_v61, %v2143_v25  ;;  %v2226_v30 = vmul.f32 %v6306_v23, %v7207_v9  ;;  %v7210_v40 = vld [vmem:[#allocation123_spill] sm:$0xff]  ;;  %v7212_v22 = vld [vmem:[#allocation77_spill] sm:$0xff]  ;;  %v7213_v44 = vld [vmem:[#allocation78_spill] sm:$0xff] }
 0x228   : > { %v1617_v60 = vadd.f32 %v1601_v55, %v1584_v26  ;;  %v1913_v1 = vadd.f32 %v1897_v4, %v1880_v8  ;;  %v2259_v62 = vmul.f32 %v6314_v54, %v7208_v27  ;;  %v2438_v42 = vadd.f32 %v6254_v41, %v2405_v58  ;;  %v7214_v4 = vld [vmem:[#allocation79_spill] sm:$0xff] }
 0x229   : > { %v2209_v0 = vadd.f32 %v2193_v15, %v2176_v11  ;;  %v2554_v38 = vmul.f32 %v7210_v40, %v7209_v19  ;;  %v1068_v21 = vsub.f32 %v7212_v22, %v7211_v2  ;;  %v1116_v25 = vsub.f32 %v7213_v44, %v7211_v2  ;;  %v7215_v15 = vld [vmem:[#allocation80_spill] sm:$0xff] }
 0x22a   : > { %v1650_v61 = vadd.f32 %v1634_v59, %v1617_v60  ;;  %v1946_v3 = vadd.f32 %v1930_v53, %v1913_v1  ;;  %v2471_v55 = vadd.f32 %v6260_v35, %v2438_v42  ;;  %v1164_v26 = vsub.f32 %v7214_v4, %v7211_v2  ;;  %v7216_v59 = vld [vmem:[#allocation81_spill] sm:$0xff] }
 0x22b   : > { %v2242_v8 = vadd.f32 %v2226_v30, %v2209_v0  ;;  %v1098_v54 = vmul.f32 1.442695, %v1068_v21  ;;  %v1146_v41 = vmul.f32 1.442695, %v1116_v25  ;;  %v1212_v58 = vsub.f32 %v7215_v15, %v7211_v2  ;;  %v6344_v30 = vpop.f32.mrf.mxu2  ;;  %v6346_v21 = vpop.f32.mrf.mxu3  ;;  %v7222_v0 = vld [vmem:[#allocation83_spill] sm:$0xff] }
 0x22c   : > { %v1683_v40 = vadd.f32 %v1667_v48, %v1650_v61  ;;  %v1979_v11 = vadd.f32 %v1963_v47, %v1946_v3  ;;  %v2504_v19 = vadd.f32 %v2488_v51, %v2471_v55  ;;  %v1194_v22 = vmul.f32 1.442695, %v1164_v26  ;;  %7217 = vst [vmem:[#allocation115_spill] sm:$0xff] %v6344_v30  ;;  %v7219_v3 = vld [vmem:[#allocation82_spill] sm:$0xff]  ;;  %v6350_v47 = vpop.f32.mrf.mxu1 }
 0x22d   : > { %v2275_v27 = vadd.f32 %v2259_v62, %v2242_v8  ;;  %3493 = vpow2.f32 %v1098_v54  ;;  %v1242_v44 = vmul.f32 1.442695, %v1212_v58  ;;  %v1260_v53 = vsub.f32 %v7216_v59, %v7211_v2  ;;  %7218 = vst [vmem:[#allocation103_spill] sm:$0xff] %v6346_v21  ;;  %v6352_v54 = vpop.f32.mrf.mxu0 }
 0x22e   : > { %v1699_v35 = vmax.f32 %v1683_v40, 1.1754944e-38  ;;  %v1995_v60 = vmax.f32 %v1979_v11, 1.1754944e-38  ;;  %v2537_v1 = vadd.f32 %v2521_v28, %v2504_v19  ;;  %3495 = vpow2.f32 %v1146_v41  ;;  %7220 = vst [vmem:[#allocation104_spill] sm:$0xff] %v6350_v47  ;;  %v7223_v19 = vld [vmem:[#allocation84_spill] sm:$0xff]  ;;  %v7235_v47 = vld [vmem:[#allocation75_spill] sm:$0xff] }
 0x22f   : > { %v2291_v42 = vmax.f32 %v2275_v27, 1.1754944e-38  ;;  %3497 = vpow2.f32 %v1194_v22  ;;  %v1290_v48 = vmul.f32 1.442695, %v1260_v53  ;;  %v1308_v51 = vsub.f32 %v7219_v3, %v7211_v2  ;;  %7221 = vst [vmem:[#allocation105_spill] sm:$0xff] %v6352_v54 }
 0x230   : > { %3499 = vlog2.f32 %v1699_v35  ;;  %v2570_v62 = vadd.f32 %v2554_v38, %v2537_v1  ;;  %v1356_v28 = vsub.f32 %v7222_v0, %v7211_v2  ;;  %v1404_v25 = vsub.f32 %v7223_v19, %v7211_v2 }
 0x231   : > { %3501 = vlog2.f32 %v1995_v60  ;;  %v1338_v61 = vmul.f32 1.442695, %v1308_v51  ;;  %v2340_v27 = vmul.f32 %v6256_v17, %v5035_v13  ;;  %v2357_v55 = vmul.f32 %v6262_v57, %v5038_v6 }
 0x232   : > { %3503 = vlog2.f32 %v2291_v42  ;;  %v2586_v4 = vmax.f32 %v2570_v62, 1.1754944e-38  ;;  %v1386_v26 = vmul.f32 1.442695, %v1356_v28  ;;  %v1434_v8 = vmul.f32 1.442695, %v1404_v25 }
 0x233   : > { %v6362_v41 = vpop.eup %3493  ;;  %3505 = vpow2.f32 %v1242_v44  ;;  %v2373_v38 = vadd.f32 %v2357_v55, %v2340_v27  ;;  %v2390_v15 = vmul.f32 %v6270_v49, %v5043_v31  ;;  %v2423_v2 = vmul.f32 %v6278_v7, %v5051_v20  ;;  %v6392_v25 = vpop.f32.mrf.mxu2 }
 0x234   : > { %v6368_v58 = vpop.eup %3495  ;;  %3507 = vlog2.f32 %v2586_v4  ;;  %v1453_v17 = vmul.f32 %v6362_v41, %v4813_v52  ;;  %v1749_v57 = vmul.f32 %v6362_v41, %v6967_v12  ;;  %v2045_v40 = vmul.f32 %v6362_v41, %v4962_v33  ;;  %7224 = vst [vmem:[#allocation106_spill] sm:$0xff] %v6392_v25 }
 0x235   : > { %v6376_v11 = vpop.eup %3497  ;;  %3509 = vpow2.f32 %v1290_v48  ;;  %v1470_v49 = vmul.f32 %v6368_v58, %v6968_v39  ;;  %v1766_v7 = vmul.f32 %v6368_v58, %v6969_v24  ;;  %v2062_v22 = vmul.f32 %v6368_v58, %v4967_v46 }
 0x236   : > { %v3500_v44 = vpop.eup %3499  ;;  %3511 = vpow2.f32 %v1338_v61  ;;  %v1503_v59 = vmul.f32 %v6376_v11, %v6970_v56  ;;  %v1799_v53 = vmul.f32 %v6376_v11, %v6971_v45  ;;  %v2095_v35 = vmul.f32 %v6376_v11, %v4969_v63  ;;  %v6394_v61 = vpop.f32.mrf.mxu3 }
 0x237   : > { %v3502_v60 = vpop.eup %3501  ;;  %v1729_v1 = vmul.f32 0.6931472, %v3500_v44  ;;  %3513 = vpow2.f32 %v1386_v26  ;;  %v1486_v42 = vadd.f32 %v1470_v49, %v1453_v17  ;;  %v1782_v48 = vadd.f32 %v1766_v7, %v1749_v57  ;;  %7225 = vst [vmem:[#allocation108_spill] sm:$0xff] %v6394_v61  ;;  %v6398_v17 = vpop.f32.mrf.mxu1 }
 0x238   : > { %v3504_v3 = vpop.eup %3503  ;;  %v2025_v51 = vmul.f32 0.6931472, %v3502_v60  ;;  %3515 = vpow2.f32 %v1434_v8  ;;  %v2078_v62 = vadd.f32 %v2062_v22, %v2045_v40  ;;  %v2406_v0 = vadd.f32 %v2390_v15, %v2373_v38  ;;  %7226 = vst [vmem:[#allocation109_spill] sm:$0xff] %v6398_v17  ;;  %v6400_v8 = vpop.f32.mrf.mxu0 }
 0x239   : > { %v6390_v28 = vpop.eup %3505  ;;  %2822 = vmatmul.f32.gmra.mxu1 %v1729_v1  ;;  %v2321_v19 = vmul.f32 0.6931472, %v3504_v3  ;;  %v1519_v27 = vadd.f32 %v1503_v59, %v1486_v42  ;;  %v1815_v55 = vadd.f32 %v1799_v53, %v1782_v48  ;;  %v2456_v4 = vmul.f32 %v6294_v34, %v5054_v16  ;;  %7227 = vst [vmem:[#allocation110_spill] sm:$0xff] %v6400_v8  ;;  %v7228_v48 = vld [vmem:[#allocation143_spill] sm:$0xff]  ;;  %v7236_v8 = vld [vmem:[#allocation132_spill] sm:$0xff] }
 0x23a   : > { %v3508_v26 = vpop.eup %3507  ;;  %2887 = vmatmul.f32.gmra.mxu2 %v2025_v51  ;;  %v1536_v38 = vmul.f32 %v6390_v28, %v6972_v37  ;;  %v1832_v15 = vmul.f32 %v6390_v28, %v6973_v14  ;;  %v2111_v57 = vadd.f32 %v2095_v35, %v2078_v62  ;;  %v2128_v40 = vmul.f32 %v6390_v28, %v4974_v5 }
 0x23b   : > { %v6408_v49 = vpop.eup %3509  ;;  %2952 = vmatmul.f32.gmra.mxu3 %v2321_v19  ;;  %v2615_v34 = vmul.f32 0.6931472, %v3508_v26  ;;  %v2439_v7 = vadd.f32 %v2423_v2, %v2406_v0  ;;  %v2489_v22 = vmul.f32 %v6298_v10, %v5059_v32  ;;  %v2522_v44 = vmul.f32 %v6306_v23, %v5134_v36  ;;  %v7229_v0 = vld [vmem:[#allocation127_spill] sm:$0xff] }
 0x23c   : > { %v6414_v59 = vpop.eup %3511  ;;  %v1552_v53 = vadd.f32 %v1536_v38, %v1519_v27  ;;  %v1569_v35 = vmul.f32 %v6408_v49, %v6974_v18  ;;  %v1848_v60 = vadd.f32 %v1832_v15, %v1815_v55  ;;  %v1865_v1 = vmul.f32 %v6408_v49, %v6993_v50  ;;  %v7230_v55 = vld [vmem:[#allocation135_spill] sm:$0xff]  ;;  %v7231_v38 = vld [vmem:[#allocation128_spill] sm:$0xff] }
 0x23d   : > { %v6420_v42 = vpop.eup %3513  ;;  %3014 = vmatmul.f32.gmra.mxu0 %v2615_v34  ;;  %v1602_v2 = vmul.f32 %v6414_v59, %v6994_v29  ;;  %v1898_v10 = vmul.f32 %v6414_v59, %v7199_v43  ;;  %v2144_v23 = vadd.f32 %v2128_v40, %v2111_v57  ;;  %v2161_v3 = vmul.f32 %v6408_v49, %v7228_v48  ;;  %v7232_v34 = vld [vmem:[#allocation136_spill] sm:$0xff] }
 0x23e   : > { %v6428_v51 = vpop.eup %3515  ;;  %v1585_v62 = vadd.f32 %v1569_v35, %v1552_v53  ;;  %v1635_v19 = vmul.f32 %v6420_v42, %v7229_v0  ;;  %v1881_v27 = vadd.f32 %v1865_v1, %v1848_v60  ;;  %v1931_v26 = vmul.f32 %v6420_v42, %v7230_v55  ;;  %v7233_v40 = vld [vmem:[#allocation144_spill] sm:$0xff]  ;;  %v7234_v35 = vld [vmem:[#allocation147_spill] sm:$0xff]  ;;  %v6452_v0 = vpop.f32.mrf.mxu2 }
 0x23f   : > { %v1668_v15 = vmul.f32 %v6428_v51, %v7231_v38  ;;  %v1964_v61 = vmul.f32 %v6428_v51, %v7232_v34  ;;  %v2177_v57 = vadd.f32 %v2161_v3, %v2144_v23  ;;  %v2194_v21 = vmul.f32 %v6414_v59, %v7233_v40  ;;  %v7237_v55 = vld [vmem:[#allocation124_spill] sm:$0xff]  ;;  %v7239_v40 = vld [vmem:[#allocation113_spill] sm:$0xff] }
 0x240   : > { %v1618_v25 = vadd.f32 %v1602_v2, %v1585_v62  ;;  %v1914_v30 = vadd.f32 %v1898_v10, %v1881_v27  ;;  %v2227_v53 = vmul.f32 %v6420_v42, %v7207_v9  ;;  %v2260_v60 = vmul.f32 %v6428_v51, %v7234_v35  ;;  %v7238_v38 = vld [vmem:[#allocation112_spill] sm:$0xff]  ;;  %v7240_v10 = vld [vmem:[#allocation114_spill] sm:$0xff] }
 0x241   : > { %v2210_v1 = vadd.f32 %v2194_v21, %v2177_v57  ;;  %v2472_v17 = vadd.f32 %v2456_v4, %v2439_v7  ;;  %v2555_v54 = vmul.f32 %v7236_v8, %v7235_v47  ;;  %v1069_v34 = vsub.f32 %v7238_v38, %v7237_v55  ;;  %v6454_v21 = vpop.f32.mrf.mxu3  ;;  %v7242_v8 = vld [vmem:[#allocation116_spill] sm:$0xff] }
 0x242   : > { %v1651_v23 = vadd.f32 %v1635_v19, %v1618_v25  ;;  %v1947_v3 = vadd.f32 %v1931_v26, %v1914_v30  ;;  %v1117_v2 = vsub.f32 %v7239_v40, %v7237_v55  ;;  %v1165_v62 = vsub.f32 %v7240_v10, %v7237_v55  ;;  %7241 = vst [vmem:[#allocation111_spill] sm:$0xff] %v6454_v21  ;;  %v6458_v25 = vpop.f32.mrf.mxu1  ;;  %v6460_v30 = vpop.f32.mrf.mxu0 }
 0x243   : > { %v2243_v27 = vadd.f32 %v2227_v53, %v2210_v1  ;;  %v2505_v9 = vadd.f32 %v2489_v22, %v2472_v17  ;;  %v1100_v4 = vmul.f32 1.442695, %v1069_v34  ;;  %v1213_v7 = vsub.f32 %v7242_v8, %v7237_v55  ;;  %v7243_v53 = vld [vmem:[#allocation117_spill] sm:$0xff] }
 0x244   : > { %v1684_v57 = vadd.f32 %v1668_v15, %v1651_v23  ;;  %v1980_v38 = vadd.f32 %v1964_v61, %v1947_v3  ;;  %v1148_v19 = vmul.f32 1.442695, %v1117_v2  ;;  %v1196_v26 = vmul.f32 1.442695, %v1165_v62  ;;  %v7244_v61 = vld [vmem:[#allocation118_spill] sm:$0xff]  ;;  %v7245_v3 = vld [vmem:[#allocation119_spill] sm:$0xff] }
 0x245   : > { %v2276_v40 = vadd.f32 %v2260_v60, %v2243_v27  ;;  %v2538_v10 = vadd.f32 %v2522_v44, %v2505_v9  ;;  %3517 = vpow2.f32 %v1100_v4  ;;  %v1261_v34 = vsub.f32 %v7243_v53, %v7237_v55  ;;  %v7246_v9 = vld [vmem:[#allocation120_spill] sm:$0xff] }
 0x246   : > { %v1700_v17 = vmax.f32 %v1684_v57, 1.1754944e-38  ;;  %v1996_v22 = vmax.f32 %v1980_v38, 1.1754944e-38  ;;  %3519 = vpow2.f32 %v1148_v19  ;;  %v1309_v15 = vsub.f32 %v7244_v61, %v7237_v55 }
 0x247   : > { %v2292_v1 = vmax.f32 %v2276_v40, 1.1754944e-38  ;;  %v2571_v21 = vadd.f32 %v2555_v54, %v2538_v10  ;;  %3521 = vpow2.f32 %v1196_v26  ;;  %v1244_v23 = vmul.f32 1.442695, %v1213_v7  ;;  %v6496_v10 = vpop.f32.mrf.mxu2 }
 0x248   : > { %3523 = vlog2.f32 %v1700_v17  ;;  %v1357_v2 = vsub.f32 %v7245_v3, %v7237_v55  ;;  %v1405_v44 = vsub.f32 %v7246_v9, %v7237_v55  ;;  %v1292_v62 = vmul.f32 1.442695, %v1261_v34 }
 0x249   : > { %3525 = vlog2.f32 %v1996_v22  ;;  %v2587_v60 = vmax.f32 %v2571_v21, 1.1754944e-38  ;;  %v1340_v27 = vmul.f32 1.442695, %v1309_v15  ;;  %v2341_v54 = vmul.f32 %v6362_v41, %v5035_v13 }
 0x24a   : > { %3527 = vlog2.f32 %v2292_v1  ;;  %v1388_v4 = vmul.f32 1.442695, %v1357_v2  ;;  %v1436_v8 = vmul.f32 1.442695, %v1405_v44  ;;  %v2358_v7 = vmul.f32 %v6368_v58, %v5038_v6  ;;  %v6506_v22 = vpop.f32.mrf.mxu1 }
 0x24b   : > { %v6472_v57 = vpop.eup %3517  ;;  %3529 = vlog2.f32 %v2587_v60  ;;  %v2391_v38 = vmul.f32 %v6376_v11, %v5043_v31  ;;  %v2424_v55 = vmul.f32 %v6390_v28, %v5051_v20 }
 0x24c   : > { %v6480_v21 = vpop.eup %3519  ;;  %3531 = vpow2.f32 %v1244_v23  ;;  %v1454_v19 = vmul.f32 %v6472_v57, %v4813_v52  ;;  %v1750_v41 = vmul.f32 %v6472_v57, %v6967_v12  ;;  %v2046_v26 = vmul.f32 %v6472_v57, %v4962_v33  ;;  %v6498_v52 = vpop.f32.mrf.mxu3 }
 0x24d   : > { %v6488_v40 = vpop.eup %3521  ;;  %3533 = vpow2.f32 %v1292_v62  ;;  %v1471_v58 = vmul.f32 %v6480_v21, %v6968_v39  ;;  %v1767_v11 = vmul.f32 %v6480_v21, %v6969_v24  ;;  %v2063_v28 = vmul.f32 %v6480_v21, %v4967_v46  ;;  %v6508_v24 = vpop.f32.mrf.mxu0 }
 0x24e   : > { %v3524_v12 = vpop.eup %3523  ;;  %3535 = vpow2.f32 %v1340_v27  ;;  %v1504_v33 = vmul.f32 %v6488_v40, %v6970_v56  ;;  %v1800_v17 = vmul.f32 %v6488_v40, %v6971_v45  ;;  %v2096_v39 = vmul.f32 %v6488_v40, %v4969_v63 }
 0x24f   : > { %v3526_v46 = vpop.eup %3525  ;;  %v1731_v53 = vmul.f32 0.6931472, %v3524_v12  ;;  %3537 = vpow2.f32 %v1388_v4  ;;  %v1487_v34 = vadd.f32 %v1471_v58, %v1454_v19  ;;  %v1783_v1 = vadd.f32 %v1767_v11, %v1750_v41 }
 0x250   : > { %v3528_v61 = vpop.eup %3527  ;;  %v2027_v15 = vmul.f32 0.6931472, %v3526_v46  ;;  %3539 = vpow2.f32 %v1436_v8  ;;  %v2079_v23 = vadd.f32 %v2063_v28, %v2046_v26  ;;  %v2374_v56 = vadd.f32 %v2358_v7, %v2341_v54 }
 0x251   : > { %v3530_v3 = vpop.eup %3529  ;;  %2825 = vmatmul.f32.gmra.mxu1 %v1731_v53  ;;  %v2323_v45 = vmul.f32 0.6931472, %v3528_v61  ;;  %v1520_v2 = vadd.f32 %v1504_v33, %v1487_v34  ;;  %v1816_v9 = vadd.f32 %v1800_v17, %v1783_v1  ;;  %v2457_v63 = vmul.f32 %v6408_v49, %v5054_v16  ;;  %v7248_v53 = vld [vmem:[#allocation144_spill] sm:$0xff] }
 0x252   : > { %v3532_v44 = vpop.eup %3531  ;;  %2890 = vmatmul.f32.gmra.mxu2 %v2027_v15  ;;  %v2617_v60 = vmul.f32 0.6931472, %v3530_v3  ;;  %v2112_v62 = vadd.f32 %v2096_v39, %v2079_v23  ;;  %v2407_v27 = vadd.f32 %v2391_v38, %v2374_v56  ;;  %v2490_v4 = vmul.f32 %v6414_v59, %v5059_v32  ;;  %v7249_v1 = vld [vmem:[#allocation128_spill] sm:$0xff]  ;;  %v7250_v15 = vld [vmem:[#allocation135_spill] sm:$0xff] }
 0x253   : > { %v3534_v19 = vpop.eup %3533  ;;  %2955 = vmatmul.f32.gmra.mxu3 %v2323_v45  ;;  %v1537_v8 = vmul.f32 %v3532_v44, %v6972_v37  ;;  %v1833_v54 = vmul.f32 %v3532_v44, %v6973_v14  ;;  %v2129_v7 = vmul.f32 %v3532_v44, %v4974_v5  ;;  %v2523_v41 = vmul.f32 %v6420_v42, %v5134_v36  ;;  %v2849_v5 = vpop.f32.mrf.mxu2  ;;  %v7247_v42 = vld [vmem:[#allocation127_spill] sm:$0xff]  ;;  %v7252_v45 = vld [vmem:[#allocation146_spill] sm:$0xff] }
 0x254   : > { %v3536_v49 = vpop.eup %3535  ;;  %3017 = vmatmul.f32.gmra.mxu0 %v2617_v60  ;;  %v1570_v26 = vmul.f32 %v3534_v19, %v6974_v18  ;;  %v1866_v38 = vmul.f32 %v3534_v19, %v6993_v50  ;;  %v2162_v58 = vmul.f32 %v3534_v19, %v7228_v48  ;;  %v2440_v59 = vadd.f32 %v2424_v55, %v2407_v27  ;;  %v2914_v33 = vpop.f32.mrf.mxu3 }
 0x255   : > { %v3538_v11 = vpop.eup %3537  ;;  %v1553_v28 = vadd.f32 %v1537_v8, %v1520_v2  ;;  %v1603_v37 = vmul.f32 %v3536_v49, %v6994_v29  ;;  %v1849_v12 = vadd.f32 %v1833_v54, %v1816_v9  ;;  %v1899_v14 = vmul.f32 %v3536_v49, %v7199_v43  ;;  %v2787_v48 = vpop.f32.mrf.mxu1  ;;  %v7251_v43 = vld [vmem:[#allocation136_spill] sm:$0xff] }
 0x256   : > { %v3540_v17 = vpop.eup %3539  ;;  %v1636_v39 = vmul.f32 %v3538_v11, %v7247_v42  ;;  %v2145_v46 = vadd.f32 %v2129_v7, %v2112_v62  ;;  %v2195_v18 = vmul.f32 %v3536_v49, %v7248_v53  ;;  %v2556_v50 = vmul.f32 %v6428_v51, %v7235_v47  ;;  %v2979_v55 = vpop.f32.mrf.mxu0 }
 0x257   : > { %v1586_v34 = vadd.f32 %v1570_v26, %v1553_v28  ;;  %v1669_v61 = vmul.f32 %v3540_v17, %v7249_v1  ;;  %v1882_v29 = vadd.f32 %v1866_v38, %v1849_v12  ;;  %v1932_v23 = vmul.f32 %v3538_v11, %v7250_v15  ;;  %v7253_v28 = vld [vmem:[#allocation105_spill] sm:$0xff] }
 0x258   : > { %v1965_v56 = vmul.f32 %v3540_v17, %v7251_v43  ;;  %v2178_v3 = vadd.f32 %v2162_v58, %v2145_v46  ;;  %v2228_v2 = vmul.f32 %v3538_v11, %v7252_v45  ;;  %v2473_v9 = vadd.f32 %v2457_v63, %v2440_v59 }
 0x259   : > { %v1619_v60 = vadd.f32 %v1603_v37, %v1586_v34  ;;  %v1915_v62 = vadd.f32 %v1899_v14, %v1882_v29  ;;  %v2261_v27 = vmul.f32 %v3540_v17, %v7234_v35  ;;  %v2342_v51 = vmul.f32 %v6472_v57, %v5035_v13 }
 0x25a   : > { %v2211_v8 = vadd.f32 %v2195_v18, %v2178_v3  ;;  %v2506_v54 = vadd.f32 %v2490_v4, %v2473_v9  ;;  %v2359_v7 = vmul.f32 %v6480_v21, %v5038_v6  ;;  %v2392_v26 = vmul.f32 %v6488_v40, %v5043_v31  ;;  %v7254_v18 = vld [vmem:[#allocation110_spill] sm:$0xff] }
 0x25b   : > { %v1652_v38 = vadd.f32 %v1636_v39, %v1619_v60  ;;  %v1948_v58 = vadd.f32 %v1932_v23, %v1915_v62  ;;  %v2785_v63 = vadd.f32 %v6506_v22, %v7253_v28  ;;  %v2425_v35 = vmul.f32 %v3532_v44, %v5051_v20  ;;  %v2852_v4 = vpop.f32.mrf.mxu2 }
 0x25c   : > { %v2244_v59 = vadd.f32 %v2228_v2, %v2211_v8  ;;  %v2539_v37 = vadd.f32 %v2523_v41, %v2506_v54  ;;  %v2375_v12 = vadd.f32 %v2359_v7, %v2342_v51  ;;  %v2458_v57 = vmul.f32 %v3534_v19, %v5054_v16  ;;  %v2917_v42 = vpop.f32.mrf.mxu3 }
 0x25d   : > { %v1685_v14 = vadd.f32 %v1669_v61, %v1652_v38  ;;  %v1981_v13 = vadd.f32 %v1965_v56, %v1948_v58  ;;  %v2850_v40 = vadd.f32 %v2849_v5, %v2785_v63  ;;  %v2790_v39 = vpop.f32.mrf.mxu1  ;;  %v2491_v41 = vmul.f32 %v3536_v49, %v5059_v32 }
 0x25e   : > { %v2277_v6 = vadd.f32 %v2261_v27, %v2244_v59  ;;  %v2572_v21 = vadd.f32 %v2556_v50, %v2539_v37  ;;  %v2408_v31 = vadd.f32 %v2392_v26, %v2375_v12  ;;  %v2982_v46 = vpop.f32.mrf.mxu0  ;;  %v2788_v34 = vadd.f32 %v2787_v48, %v7254_v18  ;;  %v7255_v12 = vld [vmem:[#allocation125_spill] sm:$0xff] }
 0x25f   : > { %v1701_v53 = vmax.f32 %v1685_v14, 1.1754944e-38  ;;  %v1997_v22 = vmax.f32 %v1981_v13, 1.1754944e-38  ;;  %v2915_v61 = vadd.f32 %v2914_v33, %v2850_v40  ;;  %v2524_v32 = vmul.f32 %v3538_v11, %v5134_v36 }
 0x260   : > { %v2293_v20 = vmax.f32 %v2277_v6, 1.1754944e-38  ;;  %v2588_v44 = vmax.f32 %v2572_v21, 1.1754944e-38  ;;  %v2441_v1 = vadd.f32 %v2425_v35, %v2408_v31  ;;  %v2853_v16 = vadd.f32 %v2852_v4, %v2788_v34  ;;  %v7256_v21 = vld [vmem:[#allocation104_spill] sm:$0xff]  ;;  %v7257_v34 = vld [vmem:[#allocation109_spill] sm:$0xff] }
 0x261   : > { %3541 = vlog2.f32 %v1701_v53  ;;  %v2980_v49 = vadd.f32 %v2979_v55, %v2915_v61  ;;  %v2557_v50 = vmul.f32 %v3540_v17, %v7235_v47  ;;  %v2791_v48 = vadd.f32 %v2790_v39, %v6460_v30 }
 0x262   : > { %3543 = vlog2.f32 %v1997_v22  ;;  %v2474_v19 = vadd.f32 %v2458_v57, %v2441_v1  ;;  %v2918_v5 = vadd.f32 %v2917_v42, %v2853_v16 }
 0x263   : > { %3545 = vlog2.f32 %v2293_v20  ;;  %3028 = vst.msk [vmem:[%s6550_s19] sm:$0xff] %vm3027_vm0, %v2980_v49  ;;  %v2855_v15 = vpop.f32.mrf.mxu2 }
 0x264   : > { %3547 = vlog2.f32 %v2588_v44  ;;  %v2507_v33 = vadd.f32 %v2491_v41, %v2474_v19  ;;  %v2983_v29 = vadd.f32 %v2982_v46, %v2918_v5  ;;  %v2920_v23 = vpop.f32.mrf.mxu3  ;;  %v2856_v56 = vadd.f32 %v2855_v15, %v2791_v48 }
 0x265   : > { %v2793_v3 = vpop.f32.mrf.mxu1 }
 0x266   : > { %v2540_v43 = vadd.f32 %v2524_v32, %v2507_v33  ;;  %v2985_v45 = vpop.f32.mrf.mxu0  ;;  %3029 = vst.msk [vmem:[%s6550_s19 + $0x8] sm:$0xff] %vm3027_vm0, %v2983_v29  ;;  %v2921_v9 = vadd.f32 %v2920_v23, %v2856_v56  ;;  %v2794_v8 = vadd.f32 %v2793_v3, %v6508_v24  ;;  %v7258_v56 = vld [vmem:[#allocation115_spill] sm:$0xff] }
 0x267   : > { %v3542_v36 = vpop.eup %3541 }
 0x268   : > { %v3544_v11 = vpop.eup %3543  ;;  %v1733_v55 = vmul.f32 0.6931472, %v3542_v36  ;;  %v2573_v2 = vadd.f32 %v2557_v50, %v2540_v43  ;;  %v2986_v27 = vadd.f32 %v2985_v45, %v2921_v9 }
 0x269   : > { %v3546_v47 = vpop.eup %3545  ;;  %v2029_v17 = vmul.f32 0.6931472, %v3544_v11 }
 0x26a   : > { %v3548_v60 = vpop.eup %3547  ;;  %2828 = vmatmul.f32.gmra.mxu1 %v1733_v55  ;;  %v2325_v30 = vmul.f32 0.6931472, %v3546_v47  ;;  %v2589_v62 = vmax.f32 %v2573_v2, 1.1754944e-38  ;;  %3030 = vst.msk [vmem:[%s6550_s19 + $0x10] sm:$0xff] %vm3027_vm0, %v2986_v27  ;;  %v7259_v47 = vld [vmem:[#allocation106_spill] sm:$0xff] }
 0x26b   : > { %2893 = vmatmul.f32.gmra.mxu2 %v2029_v17  ;;  %v2619_v51 = vmul.f32 0.6931472, %v3548_v60  ;;  %v2858_v54 = vpop.f32.mrf.mxu2 }
 0x26c   : > { %2958 = vmatmul.f32.gmra.mxu3 %v2325_v30  ;;  %3549 = vlog2.f32 %v2589_v62  ;;  %v2923_v7 = vpop.f32.mrf.mxu3  ;;  %v2859_v26 = vadd.f32 %v2858_v54, %v2794_v8 }
 0x26d   : > { %3020 = vmatmul.f32.gmra.mxu0 %v2619_v51  ;;  %v2796_v38 = vpop.f32.mrf.mxu1 }
 0x26e   : > { %v2988_v58 = vpop.f32.mrf.mxu0  ;;  %v2924_v28 = vadd.f32 %v2923_v7, %v2859_v26  ;;  %v2797_v35 = vadd.f32 %v2796_v38, %v7255_v12 }
 0x270   : > { %v2989_v59 = vadd.f32 %v2988_v58, %v2924_v28 }
 0x272   : > { %v3550_v63 = vpop.eup %3549  ;;  %3031 = vst.msk [vmem:[%s6550_s19 + $0x18] sm:$0xff] %vm3027_vm0, %v2989_v59 }
 0x273   : > { %v2621_v37 = vmul.f32 0.6931472, %v3550_v63  ;;  %v2861_v14 = vpop.f32.mrf.mxu2 }
 0x274   : > { %v2926_v24 = vpop.f32.mrf.mxu3  ;;  %v2862_v13 = vadd.f32 %v2861_v14, %v2797_v35 }
 0x275   : > { %3023 = vmatmul.f32.gmra.mxu0 %v2621_v37  ;;  %v2799_v57 = vpop.f32.mrf.mxu1 }
 0x276   : > { %v2991_v4 = vpop.f32.mrf.mxu0  ;;  %v2927_v42 = vadd.f32 %v2926_v24, %v2862_v13  ;;  %v2800_v31 = vadd.f32 %v2799_v57, %v7256_v21 }
 0x278   : > { %v2992_v6 = vadd.f32 %v2991_v4, %v2927_v42  ;;  %v7260_v42 = vld [vmem:[#allocation103_spill] sm:$0xff] }
 0x27a   : > { %3032 = vst.msk [vmem:[%s6550_s19 + $0x20] sm:$0xff] %vm3027_vm0, %v2992_v6 }
 0x27b   : > { %v2864_v40 = vpop.f32.mrf.mxu2 }
 0x27c   : > { %v2929_v39 = vpop.f32.mrf.mxu3  ;;  %v2865_v46 = vadd.f32 %v2864_v40, %v2800_v31 }
 0x27d   : > { %v2802_v53 = vpop.f32.mrf.mxu1 }
 0x27e   : > { %v2994_v22 = vpop.f32.mrf.mxu0  ;;  %v2930_v41 = vadd.f32 %v2929_v39, %v2865_v46  ;;  %v2803_v20 = vadd.f32 %v2802_v53, %v7257_v34 }
 0x280   : > { %v2995_v18 = vadd.f32 %v2994_v22, %v2930_v41  ;;  %v7261_v41 = vld [vmem:[#allocation108_spill] sm:$0xff] }
 0x282   : > { %3033 = vst.msk [vmem:[%s6550_s19 + $0x28] sm:$0xff] %vm3027_vm0, %v2995_v18 }
 0x283   : > { %v2867_v44 = vpop.f32.mrf.mxu2 }
 0x284   : > { %v2932_v1 = vpop.f32.mrf.mxu3  ;;  %v2868_v61 = vadd.f32 %v2867_v44, %v2803_v20 }
 0x285   : > { %v2805_v16 = vpop.f32.mrf.mxu1 }
 0x286   : > { %v2997_v19 = vpop.f32.mrf.mxu0  ;;  %v2933_v32 = vadd.f32 %v2932_v1, %v2868_v61  ;;  %v2806_v5 = vadd.f32 %v2805_v16, %v6458_v25 }
 0x288   : > { %v2998_v49 = vadd.f32 %v2997_v19, %v2933_v32  ;;  %v7262_v32 = vld [vmem:[#allocation111_spill] sm:$0xff] }
 0x28a   : > { %3034 = vst.msk [vmem:[%s6550_s19 + $0x30] sm:$0xff] %vm3027_vm0, %v2998_v49 }
 0x28b   : > { %v2870_v33 = vpop.f32.mrf.mxu2 }
 0x28c   : > { %v2935_v50 = vpop.f32.mrf.mxu3  ;;  %v2871_v48 = vadd.f32 %v2870_v33, %v2806_v5 }
 0x28d   : > { %v2808_v29 = vpop.f32.mrf.mxu1 }
 0x28e   : > { %v3000_v15 = vpop.f32.mrf.mxu0  ;;  %v2936_v23 = vadd.f32 %v2935_v50, %v2871_v48  ;;  %v2809_v3 = vadd.f32 %v2808_v29, %v7258_v56 }
 0x290   : > { %v3001_v43 = vadd.f32 %v3000_v15, %v2936_v23 }
 0x292   : > { %3035 = vst.msk [vmem:[%s6550_s19 + $0x38] sm:$0xff] %vm3027_vm0, %v3001_v43 }
 0x293   : > { %v2873_v45 = vpop.f32.mrf.mxu2 }
 0x294   : > { %v2938_v36 = vpop.f32.mrf.mxu3  ;;  %v2874_v11 = vadd.f32 %v2873_v45, %v2809_v3 }
 0x295   : > { %v2811_v55 = vpop.f32.mrf.mxu1 }
 0x296   : > { %v3003_v25 = vpop.f32.mrf.mxu0  ;;  %v2939_v2 = vadd.f32 %v2938_v36, %v2874_v11  ;;  %v2812_v17 = vadd.f32 %v2811_v55, %v7259_v47 }
 0x298   : > { %v3004_v9 = vadd.f32 %v3003_v25, %v2939_v2 }
 0x29a   : > { %3036 = vst.msk [vmem:[%s6550_s19 + $0x40] sm:$0xff] %vm3027_vm0, %v3004_v9 }
 0x29b   : > { %v2876_v60 = vpop.f32.mrf.mxu2 }
 0x29c   : > { %v2941_v30 = vpop.f32.mrf.mxu3  ;;  %v2877_v62 = vadd.f32 %v2876_v60, %v2812_v17 }
 0x29d   : > { %v2814_v27 = vpop.f32.mrf.mxu1 }
 0x29e   : > { %v3006_v51 = vpop.f32.mrf.mxu0  ;;  %v2942_v8 = vadd.f32 %v2941_v30, %v2877_v62  ;;  %v2815_v7 = vadd.f32 %v2814_v27, %v6452_v0 }
 0x2a0   : > { %v3007_v54 = vadd.f32 %v3006_v51, %v2942_v8 }
 0x2a2   : > { %3037 = vst.msk [vmem:[%s6550_s19 + $0x48] sm:$0xff] %vm3027_vm0, %v3007_v54 }
 0x2a3   : > { %v2879_v26 = vpop.f32.mrf.mxu2 }
 0x2a4   : > { %v2944_v38 = vpop.f32.mrf.mxu3  ;;  %v2880_v58 = vadd.f32 %v2879_v26, %v2815_v7 }
 0x2a5   : > { %v2817_v63 = vpop.f32.mrf.mxu1 }
 0x2a6   : > { %v3009_v28 = vpop.f32.mrf.mxu0  ;;  %v2945_v59 = vadd.f32 %v2944_v38, %v2880_v58  ;;  %v2818_v12 = vadd.f32 %v2817_v63, %v6496_v10 }
 0x2a8   : > { %v3010_v37 = vadd.f32 %v3009_v28, %v2945_v59 }
 0x2aa   : > { %3038 = vst.msk [vmem:[%s6550_s19 + $0x50] sm:$0xff] %vm3027_vm0, %v3010_v37 }
 0x2ab   : > { %v2882_v35 = vpop.f32.mrf.mxu2 }
 0x2ac   : > { %v2947_v14 = vpop.f32.mrf.mxu3  ;;  %v2883_v24 = vadd.f32 %v2882_v35, %v2818_v12 }
 0x2ad   : > { %v2820_v57 = vpop.f32.mrf.mxu1 }
 0x2ae   : > { %v3012_v13 = vpop.f32.mrf.mxu0  ;;  %v2948_v0 = vadd.f32 %v2947_v14, %v2883_v24  ;;  %v2821_v6 = vadd.f32 %v2820_v57, %v7260_v42 }
 0x2b0   : > { %v3013_v4 = vadd.f32 %v3012_v13, %v2948_v0 }
 0x2b2   : > { %3039 = vst.msk [vmem:[%s6550_s19 + $0x58] sm:$0xff] %vm3027_vm0, %v3013_v4 }
 0x2b3   : > { %v2885_v21 = vpop.f32.mrf.mxu2 }
 0x2b4   : > { %v2950_v31 = vpop.f32.mrf.mxu3  ;;  %v2886_v40 = vadd.f32 %v2885_v21, %v2821_v6 }
 0x2b6   : > { %v2951_v39 = vadd.f32 %v2950_v31, %v2886_v40  ;;  %v2823_v53 = vpop.f32.mrf.mxu1 }
 0x2b7   : > { %v2824_v18 = vadd.f32 %v2823_v53, %v7261_v41 }
 0x2ba   : > { %v3015_v10 = vpop.f32.mrf.mxu0 }
 0x2bb   : > { %v3016_v46 = vadd.f32 %v3015_v10, %v2951_v39 }
 0x2bd   : > { %3040 = vst.msk [vmem:[%s6550_s19 + $0x60] sm:$0xff] %vm3027_vm0, %v3016_v46  ;;  %v2888_v22 = vpop.f32.mrf.mxu2 }
 0x2be   : > { %v2889_v34 = vadd.f32 %v2888_v22, %v2824_v18  ;;  %v2953_v20 = vpop.f32.mrf.mxu3 }
 0x2c0   : > { %v2954_v44 = vadd.f32 %v2953_v20, %v2889_v34 }
 0x2ce   : > { %v2826_v16 = vpop.f32.mrf.mxu1 }
 0x2cf   : > { %v2827_v49 = vadd.f32 %v2826_v16, %v7262_v32 }
 0x2d1   : > { %v3018_v1 = vpop.f32.mrf.mxu0 }
 0x2d2   : > { %v3019_v61 = vadd.f32 %v3018_v1, %v2954_v44 }
 0x2d4   : > { %3041 = vst.msk [vmem:[%s6550_s19 + $0x68] sm:$0xff] %vm3027_vm0, %v3019_v61 }
 0x2d5   : > { %v2891_v19 = vpop.f32.mrf.mxu2 }
 0x2d6   : > { %v2892_v5 = vadd.f32 %v2891_v19, %v2827_v49  ;;  %v2956_v33 = vpop.f32.mrf.mxu3 }
 0x2d8   : > { %v2957_v50 = vadd.f32 %v2956_v33, %v2892_v5 }
 0x2e7   : > { %v2829_v48 = vpop.f32.mrf.mxu1 }
 0x2e8   : > { %v2830_v23 = vadd.f32 %v2829_v48, %v6498_v52 }
 0x2ea   : > { %v3021_v29 = vpop.f32.mrf.mxu0 }
 0x2eb   : > { %v3022_v15 = vadd.f32 %v3021_v29, %v2957_v50 }
 0x2ed   : > { %3042 = vst.msk [vmem:[%s6550_s19 + $0x70] sm:$0xff] %vm3027_vm0, %v3022_v15 }
 0x2ee   : > { %v2894_v43 = vpop.f32.mrf.mxu2 }
 0x2ef   : > { %v2895_v56 = vadd.f32 %v2894_v43, %v2830_v23  ;;  %v2959_v3 = vpop.f32.mrf.mxu3 }
 0x2f1   : > { %v2960_v45 = vadd.f32 %v2959_v3, %v2895_v56 }
 0x2f2   : > { %v3024_v36 = vpop.f32.mrf.mxu0 }
 0x2f3   : > { %v3025_v11 = vadd.f32 %v3024_v36, %v2960_v45 }
 0x2f5   : > { %3043 = vst.msk [vmem:[%s6550_s19 + $0x78] sm:$0xff] %vm3027_vm0, %v3025_v11 }
 0x2f6 PF: > { %s16_s21 = sadd.s32 1, %s3557_s21  }
 0x2f7   : > { %p13_p4 = scmp.ge.s32.totalorder %s16_s21, 4  }
 0x2f9   :  { %15 = sbr.rel (!%p13_p4) target bundleno = 1 (0x1), region = 74 }

</bundles_post_ra>
